<compile_context>
chip_gen: v7x
topology: tpu7x:2x2x1
jax: 0.10.0
libtpu: 0.0.40
codegen_flags: <defaults>
</compile_context>

<pallas_src>
import jax
import jax.numpy as jnp
from jax.experimental import pallas as pl
from jax.experimental.pallas import tpu as pltpu


# ----------------------------------------------------------------------------
# Fused kernel: one grid point = one sampler's entire reverse chain.
# ----------------------------------------------------------------------------
def _make_sampler_kernel(T):
    def kernel(coef_ref, x_T_ref, noise_ref, w1t_ref, temb_ref, w2t_ref, out_ref):
        """coef_ref : SMEM f32[5, T]  time-reversed columns
                      [sqrt(1/ab), sqrt(1/ab - 1), post_coef1, post_coef2, sigma]
                      with sigma forced to 0 at time_step == 0 (torch noise=0 branch).
           x_T_ref  : VMEM f32[C, N]      start image, channels-first, lane-dense N
           noise_ref: VMEM f32[T, C, N]   per-timestep noise, shared by all samplers
           w1t_ref  : VMEM f32[HID, C]    layer-1 weight (transposed)
           temb_ref : VMEM f32[T, HID, 1] time embedding (time-reversed)
           w2t_ref  : VMEM f32[C, HID]    layer-2 weight (transposed)
           out_ref  : VMEM f32[C, N]      final clipped x_0
        """
        x = x_T_ref[...]                                  # state lives in vregs
        w1t = w1t_ref[...]
        w2t = w2t_ref[...]

        # Whole reverse chain unrolled in-kernel (T is small here).
        # TODO(synk): for realistic T (e.g. 1000) switch to
        # lax.fori_loop(0, T, body, x, unroll=<small>) to bound code size.
        for step in range(T):                             # step s <-> time_step T-1-s
            # eps-model: eps = W2^T @ silu(W1^T @ x + temb[t])
            # TODO(synk): K=4 / M=4 matmuls use <2% of the MXU; acceptable only
            # because this toy model stands in for the UNet.  At real sizes do
            # layer 1 as VPU broadcast-FMAs or batch the contraction.
            h = jnp.dot(w1t, x, preferred_element_type=jnp.float32)    # (HID, N)
            h = h + temb_ref[step]                                      # (HID, 1) bcast
            h = h * jax.nn.sigmoid(h)                                   # SiLU (EUP)
            eps = jnp.dot(w2t, h, preferred_element_type=jnp.float32)   # (C, N)

            cr  = coef_ref[0, step]    # sqrt(1 / alphas_bar)
            crm = coef_ref[1, step]    # sqrt(1 / alphas_bar - 1)
            p1  = coef_ref[2, step]    # posterior_mean_coef1
            p2  = coef_ref[3, step]    # posterior_mean_coef2
            sig = coef_ref[4, step]    # exp(0.5 * model_log_var); 0 at time_step==0

            x0 = cr * x - crm * eps
            # TODO(synk): if the reference p_mean_variance clips predicted x_0
            # each step, insert `x0 = jnp.clip(x0, -1.0, 1.0)` here.
            mean = p1 * x0 + p2 * x
            x = mean + sig * noise_ref[step]

        # Final torch.clip(x, -1, 1), fused into the single output store.
        out_ref[...] = jnp.clip(x, -1.0, 1.0)

    return kernel


# ----------------------------------------------------------------------------
# Diffusion schedule (matches GaussianDiffusionSampler buffers).
# ----------------------------------------------------------------------------
def make_schedule(beta_1, beta_T, T):
    betas = jnp.linspace(beta_1, beta_T, T, dtype=jnp.float32)
    alphas = 1.0 - betas
    alphas_bar = jnp.cumprod(alphas)
    alphas_bar_prev = jnp.concatenate(
        [jnp.ones((1,), jnp.float32), alphas_bar[:-1]])

    sqrt_recip_ab = jnp.sqrt(1.0 / alphas_bar)
    sqrt_recipm1_ab = jnp.sqrt(1.0 / alphas_bar - 1.0)

    posterior_var = betas * (1.0 - alphas_bar_prev) / (1.0 - alphas_bar)
    post_coef1 = jnp.sqrt(alphas_bar_prev) * betas / (1.0 - alphas_bar)
    post_coef2 = jnp.sqrt(alphas) * (1.0 - alphas_bar_prev) / (1.0 - alphas_bar)

    # var_type='fixedlarge'
    model_log_var = jnp.log(jnp.concatenate([posterior_var[1:2], betas[1:]]))
    sigma = jnp.exp(0.5 * model_log_var)
    sigma = sigma.at[0].set(0.0)            # torch: noise = 0 at time_step == 0

    # (5, T), long axis last -> small SMEM footprint even at realistic T.
    coef = jnp.stack(
        [sqrt_recip_ab, sqrt_recipm1_ab, post_coef1, post_coef2, sigma], axis=0)
    return coef[:, ::-1]                    # time-reversed: column s <-> T-1-s


# ----------------------------------------------------------------------------
# SamplerList.forward equivalent (single fused pallas_call).
# ----------------------------------------------------------------------------
def sampler_list_forward(x_T_nchw, params_list, beta_1, beta_T, T, noise_key):
    B, C, H, W = x_T_nchw.shape
    N = B * H * W
    S = len(params_list)
    HIDDEN = params_list[0][0].shape[1]

    coef_rev = make_schedule(beta_1, beta_T, T)                       # (5, T)

    # One noise tensor per timestep, SHARED by all samplers (matches torch).
    # The time_step==0 slice is multiplied by sigma=0 and has no effect.
    # TODO(synk): jax PRNG does not bit-match torch.randn_like; at realistic
    # sizes generate noise in-kernel (pltpu.prng_seed + stateful_normal)
    # instead of streaming a (T, C, N) table from HBM.
    noise_rev = jax.random.normal(noise_key, (T, C, N), dtype=jnp.float32)

    # Per-sampler parameter stacks, channels-first and time-reversed.
    w1t = jnp.stack([w1.T for (w1, _, _) in params_list])             # (S, HID, C)
    w2t = jnp.stack([w2.T for (_, _, w2) in params_list])             # (S, C, HID)
    temb_rev = jnp.stack(
        [te[::-1][:, :, None] for (_, te, _) in params_list])         # (S, T, HID, 1)

    # NCHW -> lane-dense channels-first (C, B*H*W), N = 512 (multiple of 128).
    x_flat = jnp.transpose(x_T_nchw, (1, 0, 2, 3)).reshape(C, N)

    out = pl.pallas_call(
        _make_sampler_kernel(T),
        out_shape=jax.ShapeDtypeStruct((S, C, N), jnp.float32),
        grid=(S,),                                   # one grid point per sampler
        in_specs=[
            pl.BlockSpec(memory_space=pltpu.MemorySpace.SMEM),          # coef (5, T)
            pl.BlockSpec((C, N), lambda s: (0, 0)),                     # x_T (resident)
            pl.BlockSpec((T, C, N), lambda s: (0, 0, 0)),               # noise table (resident)
            pl.BlockSpec((None, HIDDEN, C), lambda s: (s, 0, 0)),       # W1^T[s]
            pl.BlockSpec((None, T, HIDDEN, 1), lambda s: (s, 0, 0, 0)), # temb[s], all T at once
            pl.BlockSpec((None, C, HIDDEN), lambda s: (s, 0, 0)),       # W2^T[s]
        ],
        out_specs=pl.BlockSpec((None, C, N), lambda s: (s, 0, 0)),
        compiler_params=pltpu.CompilerParams(
            dimension_semantics=("parallel",)),      # independent chains -> 2 TCs on v7x
    )(coef_rev, x_flat, noise_rev, w1t, temb_rev, w2t)

    # (S, C, B*H*W) -> list of NCHW tensors.
    return [jnp.transpose(out[i].reshape(C, B, H, W), (1, 0, 2, 3))
            for i in range(S)]


# ----------------------------------------------------------------------------
# Main
# ----------------------------------------------------------------------------
if __name__ == "__main__":
    B, C, H, W = 2, 4, 16, 16
    HIDDEN = 32
    T = 8
    NUM_SAMPLERS = 2
    beta_1, beta_T = 1e-4, 0.02

    root = jax.random.PRNGKey(0)
    keys = jax.random.split(root, 2 + 3 * NUM_SAMPLERS)
    xk, nk = keys[0], keys[1]

    # Deterministic per-sampler "model" parameters.
    params_list = []
    for i in range(NUM_SAMPLERS):
        k1, k2, k3 = keys[2 + 3 * i], keys[3 + 3 * i], keys[4 + 3 * i]
        w1 = 0.1 * jax.random.normal(k1, (C, HIDDEN), dtype=jnp.float32)
        temb = 0.1 * jax.random.normal(k2, (T, HIDDEN), dtype=jnp.float32)
        w2 = 0.1 * jax.random.normal(k3, (HIDDEN, C), dtype=jnp.float32)
        params_list.append((w1, temb, w2))

    x_T = jax.random.normal(xk, (B, C, H, W), dtype=jnp.float32)

    outs = sampler_list_forward(x_T, params_list, beta_1, beta_T, T, nk)
    outs = [jax.block_until_ready(o) for o in outs]

    assert len(outs) == NUM_SAMPLERS
    for o in outs:
        assert o.shape == (B, C, H, W)
        assert bool(jnp.all(jnp.isfinite(o)))
        assert bool(jnp.all(o <= 1.0)) and bool(jnp.all(o >= -1.0))
    print("KERNEL_OK")
</pallas_src>

<mosaic_0001>
module attributes {stable_mosaic.version = 11 : i64} {
  func.func @kernel(%arg0: i32, %arg1: memref<5x8xf32, #tpu.memory_space<smem>>, %arg2: memref<4x512xf32, #tpu.memory_space<vmem>>, %arg3: memref<8x4x512xf32, #tpu.memory_space<vmem>>, %arg4: memref<1x32x4xf32, #tpu.memory_space<vmem>>, %arg5: memref<1x8x32x1xf32, #tpu.memory_space<vmem>>, %arg6: memref<1x4x32xf32, #tpu.memory_space<vmem>>, %arg7: memref<1x4x512xf32, #tpu.memory_space<vmem>>) attributes {dimension_semantics = [#tpu.dimension_semantics<parallel>], iteration_bounds = array<i64: 2>, scalar_prefetch = 0 : i64, scratch_operands = 0 : i64, tpu.core_type = #tpu.core_type<tc>, window_params = [{transform_indices = @transform_0, window_bounds = array<i64: 5, 8>}, {pipeline_mode = #tpu.pipeline_mode<synchronous>, transform_indices = @transform_1, window_bounds = array<i64: 4, 512>}, {pipeline_mode = #tpu.pipeline_mode<synchronous>, transform_indices = @transform_2, window_bounds = array<i64: 8, 4, 512>}, {transform_indices = @transform_3, window_bounds = array<i64: 1, 32, 4>}, {transform_indices = @transform_4, window_bounds = array<i64: 1, 8, 32, 1>}, {transform_indices = @transform_5, window_bounds = array<i64: 1, 4, 32>}, {transform_indices = @transform_6, window_bounds = array<i64: 1, 4, 512>}]} {
    %c0 = arith.constant 0 : index
    %c0_0 = arith.constant 0 : index
    %0 = vector.load %arg2[%c0, %c0_0] : memref<4x512xf32, #tpu.memory_space<vmem>>, vector<4x512xf32>
    %c0_1 = arith.constant 0 : index
    %c0_2 = arith.constant 0 : index
    %c0_3 = arith.constant 0 : index
    %1 = vector.load %arg4[%c0_1, %c0_2, %c0_3] : memref<1x32x4xf32, #tpu.memory_space<vmem>>, vector<1x32x4xf32>
    %2 = vector.shape_cast %1 : vector<1x32x4xf32> to vector<32x4xf32>
    %c0_4 = arith.constant 0 : index
    %c0_5 = arith.constant 0 : index
    %c0_6 = arith.constant 0 : index
    %3 = vector.load %arg6[%c0_4, %c0_5, %c0_6] : memref<1x4x32xf32, #tpu.memory_space<vmem>>, vector<1x4x32xf32>
    %4 = vector.shape_cast %3 : vector<1x4x32xf32> to vector<4x32xf32>
    %cst = arith.constant dense<0.000000e+00> : vector<32x512xf32>
    %5 = tpu.matmul %2, %0, %cst {dimension_numbers = #tpu.dot_dimension_numbers<[1], [0], [0], [1], [0, 0, 1, 1], [], []>} : vector<32x4xf32>, vector<4x512xf32>, vector<32x512xf32> -> vector<32x512xf32>
    %c0_7 = arith.constant 0 : index
    %c0_8 = arith.constant 0 : index
    %c0_9 = arith.constant 0 : index
    %c0_10 = arith.constant 0 : index
    %6 = vector.load %arg5[%c0_7, %c0_8, %c0_9, %c0_10] : memref<1x8x32x1xf32, #tpu.memory_space<vmem>>, vector<1x1x32x1xf32>
    %7 = vector.shape_cast %6 : vector<1x1x32x1xf32> to vector<32x1xf32>
    %8 = vector.broadcast %7 : vector<32x1xf32> to vector<32x512xf32>
    %9 = arith.addf %5, %8 : vector<32x512xf32>
    %10 = arith.negf %9 : vector<32x512xf32>
    %11 = math.exp %10 : vector<32x512xf32>
    %cst_11 = arith.constant 1.000000e+00 : f32
    %12 = vector.broadcast %cst_11 : f32 to vector<32x512xf32>
    %13 = arith.addf %12, %11 : vector<32x512xf32>
    %14 = arith.divf %12, %13 : vector<32x512xf32>
    %15 = arith.mulf %9, %14 : vector<32x512xf32>
    %cst_12 = arith.constant dense<0.000000e+00> : vector<4x512xf32>
    %16 = tpu.matmul %4, %15, %cst_12 {dimension_numbers = #tpu.dot_dimension_numbers<[1], [0], [0], [1], [0, 0, 1, 1], [], []>} : vector<4x32xf32>, vector<32x512xf32>, vector<4x512xf32> -> vector<4x512xf32>
    %c0_13 = arith.constant 0 : index
    %c0_14 = arith.constant 0 : index
    %17 = memref.load %arg1[%c0_13, %c0_14] : memref<5x8xf32, #tpu.memory_space<smem>>
    %c1 = arith.constant 1 : index
    %c0_15 = arith.constant 0 : index
    %18 = memref.load %arg1[%c1, %c0_15] : memref<5x8xf32, #tpu.memory_space<smem>>
    %c2 = arith.constant 2 : index
    %c0_16 = arith.constant 0 : index
    %19 = memref.load %arg1[%c2, %c0_16] : memref<5x8xf32, #tpu.memory_space<smem>>
    %c3 = arith.constant 3 : index
    %c0_17 = arith.constant 0 : index
    %20 = memref.load %arg1[%c3, %c0_17] : memref<5x8xf32, #tpu.memory_space<smem>>
    %c4 = arith.constant 4 : index
    %c0_18 = arith.constant 0 : index
    %21 = memref.load %arg1[%c4, %c0_18] : memref<5x8xf32, #tpu.memory_space<smem>>
    %22 = vector.broadcast %17 : f32 to vector<4x512xf32>
    %23 = arith.mulf %22, %0 : vector<4x512xf32>
    %24 = vector.broadcast %18 : f32 to vector<4x512xf32>
    %25 = arith.mulf %24, %16 : vector<4x512xf32>
    %26 = arith.subf %23, %25 : vector<4x512xf32>
    %27 = vector.broadcast %19 : f32 to vector<4x512xf32>
    %28 = arith.mulf %27, %26 : vector<4x512xf32>
    %29 = vector.broadcast %20 : f32 to vector<4x512xf32>
    %30 = arith.mulf %29, %0 : vector<4x512xf32>
    %31 = arith.addf %28, %30 : vector<4x512xf32>
    %c0_19 = arith.constant 0 : index
    %c0_20 = arith.constant 0 : index
    %c0_21 = arith.constant 0 : index
    %32 = vector.load %arg3[%c0_19, %c0_20, %c0_21] : memref<8x4x512xf32, #tpu.memory_space<vmem>>, vector<1x4x512xf32>
    %33 = vector.shape_cast %32 : vector<1x4x512xf32> to vector<4x512xf32>
    %34 = vector.broadcast %21 : f32 to vector<4x512xf32>
    %35 = arith.mulf %34, %33 : vector<4x512xf32>
    %36 = arith.addf %31, %35 : vector<4x512xf32>
    %cst_22 = arith.constant dense<0.000000e+00> : vector<32x512xf32>
    %37 = tpu.matmul %2, %36, %cst_22 {dimension_numbers = #tpu.dot_dimension_numbers<[1], [0], [0], [1], [0, 0, 1, 1], [], []>} : vector<32x4xf32>, vector<4x512xf32>, vector<32x512xf32> -> vector<32x512xf32>
    %c0_23 = arith.constant 0 : index
    %c1_24 = arith.constant 1 : index
    %c0_25 = arith.constant 0 : index
    %c0_26 = arith.constant 0 : index
    %38 = vector.load %arg5[%c0_23, %c1_24, %c0_25, %c0_26] : memref<1x8x32x1xf32, #tpu.memory_space<vmem>>, vector<1x1x32x1xf32>
    %39 = vector.shape_cast %38 : vector<1x1x32x1xf32> to vector<32x1xf32>
    %40 = vector.broadcast %39 : vector<32x1xf32> to vector<32x512xf32>
    %41 = arith.addf %37, %40 : vector<32x512xf32>
    %42 = arith.negf %41 : vector<32x512xf32>
    %43 = math.exp %42 : vector<32x512xf32>
    %cst_27 = arith.constant 1.000000e+00 : f32
    %44 = vector.broadcast %cst_27 : f32 to vector<32x512xf32>
    %45 = arith.addf %44, %43 : vector<32x512xf32>
    %46 = arith.divf %44, %45 : vector<32x512xf32>
    %47 = arith.mulf %41, %46 : vector<32x512xf32>
    %cst_28 = arith.constant dense<0.000000e+00> : vector<4x512xf32>
    %48 = tpu.matmul %4, %47, %cst_28 {dimension_numbers = #tpu.dot_dimension_numbers<[1], [0], [0], [1], [0, 0, 1, 1], [], []>} : vector<4x32xf32>, vector<32x512xf32>, vector<4x512xf32> -> vector<4x512xf32>
    %c0_29 = arith.constant 0 : index
    %c1_30 = arith.constant 1 : index
    %49 = memref.load %arg1[%c0_29, %c1_30] : memref<5x8xf32, #tpu.memory_space<smem>>
    %c1_31 = arith.constant 1 : index
    %c1_32 = arith.constant 1 : index
    %50 = memref.load %arg1[%c1_31, %c1_32] : memref<5x8xf32, #tpu.memory_space<smem>>
    %c2_33 = arith.constant 2 : index
    %c1_34 = arith.constant 1 : index
    %51 = memref.load %arg1[%c2_33, %c1_34] : memref<5x8xf32, #tpu.memory_space<smem>>
    %c3_35 = arith.constant 3 : index
    %c1_36 = arith.constant 1 : index
    %52 = memref.load %arg1[%c3_35, %c1_36] : memref<5x8xf32, #tpu.memory_space<smem>>
    %c4_37 = arith.constant 4 : index
    %c1_38 = arith.constant 1 : index
    %53 = memref.load %arg1[%c4_37, %c1_38] : memref<5x8xf32, #tpu.memory_space<smem>>
    %54 = vector.broadcast %49 : f32 to vector<4x512xf32>
    %55 = arith.mulf %54, %36 : vector<4x512xf32>
    %56 = vector.broadcast %50 : f32 to vector<4x512xf32>
    %57 = arith.mulf %56, %48 : vector<4x512xf32>
    %58 = arith.subf %55, %57 : vector<4x512xf32>
    %59 = vector.broadcast %51 : f32 to vector<4x512xf32>
    %60 = arith.mulf %59, %58 : vector<4x512xf32>
    %61 = vector.broadcast %52 : f32 to vector<4x512xf32>
    %62 = arith.mulf %61, %36 : vector<4x512xf32>
    %63 = arith.addf %60, %62 : vector<4x512xf32>
    %c1_39 = arith.constant 1 : index
    %c0_40 = arith.constant 0 : index
    %c0_41 = arith.constant 0 : index
    %64 = vector.load %arg3[%c1_39, %c0_40, %c0_41] : memref<8x4x512xf32, #tpu.memory_space<vmem>>, vector<1x4x512xf32>
    %65 = vector.shape_cast %64 : vector<1x4x512xf32> to vector<4x512xf32>
    %66 = vector.broadcast %53 : f32 to vector<4x512xf32>
    %67 = arith.mulf %66, %65 : vector<4x512xf32>
    %68 = arith.addf %63, %67 : vector<4x512xf32>
    %cst_42 = arith.constant dense<0.000000e+00> : vector<32x512xf32>
    %69 = tpu.matmul %2, %68, %cst_42 {dimension_numbers = #tpu.dot_dimension_numbers<[1], [0], [0], [1], [0, 0, 1, 1], [], []>} : vector<32x4xf32>, vector<4x512xf32>, vector<32x512xf32> -> vector<32x512xf32>
    %c0_43 = arith.constant 0 : index
    %c2_44 = arith.constant 2 : index
    %c0_45 = arith.constant 0 : index
    %c0_46 = arith.constant 0 : index
    %70 = vector.load %arg5[%c0_43, %c2_44, %c0_45, %c0_46] : memref<1x8x32x1xf32, #tpu.memory_space<vmem>>, vector<1x1x32x1xf32>
    %71 = vector.shape_cast %70 : vector<1x1x32x1xf32> to vector<32x1xf32>
    %72 = vector.broadcast %71 : vector<32x1xf32> to vector<32x512xf32>
    %73 = arith.addf %69, %72 : vector<32x512xf32>
    %74 = arith.negf %73 : vector<32x512xf32>
    %75 = math.exp %74 : vector<32x512xf32>
    %cst_47 = arith.constant 1.000000e+00 : f32
    %76 = vector.broadcast %cst_47 : f32 to vector<32x512xf32>
    %77 = arith.addf %76, %75 : vector<32x512xf32>
    %78 = arith.divf %76, %77 : vector<32x512xf32>
    %79 = arith.mulf %73, %78 : vector<32x512xf32>
    %cst_48 = arith.constant dense<0.000000e+00> : vector<4x512xf32>
    %80 = tpu.matmul %4, %79, %cst_48 {dimension_numbers = #tpu.dot_dimension_numbers<[1], [0], [0], [1], [0, 0, 1, 1], [], []>} : vector<4x32xf32>, vector<32x512xf32>, vector<4x512xf32> -> vector<4x512xf32>
    %c0_49 = arith.constant 0 : index
    %c2_50 = arith.constant 2 : index
    %81 = memref.load %arg1[%c0_49, %c2_50] : memref<5x8xf32, #tpu.memory_space<smem>>
    %c1_51 = arith.constant 1 : index
    %c2_52 = arith.constant 2 : index
    %82 = memref.load %arg1[%c1_51, %c2_52] : memref<5x8xf32, #tpu.memory_space<smem>>
    %c2_53 = arith.constant 2 : index
    %c2_54 = arith.constant 2 : index
    %83 = memref.load %arg1[%c2_53, %c2_54] : memref<5x8xf32, #tpu.memory_space<smem>>
    %c3_55 = arith.constant 3 : index
    %c2_56 = arith.constant 2 : index
    %84 = memref.load %arg1[%c3_55, %c2_56] : memref<5x8xf32, #tpu.memory_space<smem>>
    %c4_57 = arith.constant 4 : index
    %c2_58 = arith.constant 2 : index
    %85 = memref.load %arg1[%c4_57, %c2_58] : memref<5x8xf32, #tpu.memory_space<smem>>
    %86 = vector.broadcast %81 : f32 to vector<4x512xf32>
    %87 = arith.mulf %86, %68 : vector<4x512xf32>
    %88 = vector.broadcast %82 : f32 to vector<4x512xf32>
    %89 = arith.mulf %88, %80 : vector<4x512xf32>
    %90 = arith.subf %87, %89 : vector<4x512xf32>
    %91 = vector.broadcast %83 : f32 to vector<4x512xf32>
    %92 = arith.mulf %91, %90 : vector<4x512xf32>
    %93 = vector.broadcast %84 : f32 to vector<4x512xf32>
    %94 = arith.mulf %93, %68 : vector<4x512xf32>
    %95 = arith.addf %92, %94 : vector<4x512xf32>
    %c2_59 = arith.constant 2 : index
    %c0_60 = arith.constant 0 : index
    %c0_61 = arith.constant 0 : index
    %96 = vector.load %arg3[%c2_59, %c0_60, %c0_61] : memref<8x4x512xf32, #tpu.memory_space<vmem>>, vector<1x4x512xf32>
    %97 = vector.shape_cast %96 : vector<1x4x512xf32> to vector<4x512xf32>
    %98 = vector.broadcast %85 : f32 to vector<4x512xf32>
    %99 = arith.mulf %98, %97 : vector<4x512xf32>
    %100 = arith.addf %95, %99 : vector<4x512xf32>
    %cst_62 = arith.constant dense<0.000000e+00> : vector<32x512xf32>
    %101 = tpu.matmul %2, %100, %cst_62 {dimension_numbers = #tpu.dot_dimension_numbers<[1], [0], [0], [1], [0, 0, 1, 1], [], []>} : vector<32x4xf32>, vector<4x512xf32>, vector<32x512xf32> -> vector<32x512xf32>
    %c0_63 = arith.constant 0 : index
    %c3_64 = arith.constant 3 : index
    %c0_65 = arith.constant 0 : index
    %c0_66 = arith.constant 0 : index
    %102 = vector.load %arg5[%c0_63, %c3_64, %c0_65, %c0_66] : memref<1x8x32x1xf32, #tpu.memory_space<vmem>>, vector<1x1x32x1xf32>
    %103 = vector.shape_cast %102 : vector<1x1x32x1xf32> to vector<32x1xf32>
    %104 = vector.broadcast %103 : vector<32x1xf32> to vector<32x512xf32>
    %105 = arith.addf %101, %104 : vector<32x512xf32>
    %106 = arith.negf %105 : vector<32x512xf32>
    %107 = math.exp %106 : vector<32x512xf32>
    %cst_67 = arith.constant 1.000000e+00 : f32
    %108 = vector.broadcast %cst_67 : f32 to vector<32x512xf32>
    %109 = arith.addf %108, %107 : vector<32x512xf32>
    %110 = arith.divf %108, %109 : vector<32x512xf32>
    %111 = arith.mulf %105, %110 : vector<32x512xf32>
    %cst_68 = arith.constant dense<0.000000e+00> : vector<4x512xf32>
    %112 = tpu.matmul %4, %111, %cst_68 {dimension_numbers = #tpu.dot_dimension_numbers<[1], [0], [0], [1], [0, 0, 1, 1], [], []>} : vector<4x32xf32>, vector<32x512xf32>, vector<4x512xf32> -> vector<4x512xf32>
    %c0_69 = arith.constant 0 : index
    %c3_70 = arith.constant 3 : index
    %113 = memref.load %arg1[%c0_69, %c3_70] : memref<5x8xf32, #tpu.memory_space<smem>>
    %c1_71 = arith.constant 1 : index
    %c3_72 = arith.constant 3 : index
    %114 = memref.load %arg1[%c1_71, %c3_72] : memref<5x8xf32, #tpu.memory_space<smem>>
    %c2_73 = arith.constant 2 : index
    %c3_74 = arith.constant 3 : index
    %115 = memref.load %arg1[%c2_73, %c3_74] : memref<5x8xf32, #tpu.memory_space<smem>>
    %c3_75 = arith.constant 3 : index
    %c3_76 = arith.constant 3 : index
    %116 = memref.load %arg1[%c3_75, %c3_76] : memref<5x8xf32, #tpu.memory_space<smem>>
    %c4_77 = arith.constant 4 : index
    %c3_78 = arith.constant 3 : index
    %117 = memref.load %arg1[%c4_77, %c3_78] : memref<5x8xf32, #tpu.memory_space<smem>>
    %118 = vector.broadcast %113 : f32 to vector<4x512xf32>
    %119 = arith.mulf %118, %100 : vector<4x512xf32>
    %120 = vector.broadcast %114 : f32 to vector<4x512xf32>
    %121 = arith.mulf %120, %112 : vector<4x512xf32>
    %122 = arith.subf %119, %121 : vector<4x512xf32>
    %123 = vector.broadcast %115 : f32 to vector<4x512xf32>
    %124 = arith.mulf %123, %122 : vector<4x512xf32>
    %125 = vector.broadcast %116 : f32 to vector<4x512xf32>
    %126 = arith.mulf %125, %100 : vector<4x512xf32>
    %127 = arith.addf %124, %126 : vector<4x512xf32>
    %c3_79 = arith.constant 3 : index
    %c0_80 = arith.constant 0 : index
    %c0_81 = arith.constant 0 : index
    %128 = vector.load %arg3[%c3_79, %c0_80, %c0_81] : memref<8x4x512xf32, #tpu.memory_space<vmem>>, vector<1x4x512xf32>
    %129 = vector.shape_cast %128 : vector<1x4x512xf32> to vector<4x512xf32>
    %130 = vector.broadcast %117 : f32 to vector<4x512xf32>
    %131 = arith.mulf %130, %129 : vector<4x512xf32>
    %132 = arith.addf %127, %131 : vector<4x512xf32>
    %cst_82 = arith.constant dense<0.000000e+00> : vector<32x512xf32>
    %133 = tpu.matmul %2, %132, %cst_82 {dimension_numbers = #tpu.dot_dimension_numbers<[1], [0], [0], [1], [0, 0, 1, 1], [], []>} : vector<32x4xf32>, vector<4x512xf32>, vector<32x512xf32> -> vector<32x512xf32>
    %c0_83 = arith.constant 0 : index
    %c4_84 = arith.constant 4 : index
    %c0_85 = arith.constant 0 : index
    %c0_86 = arith.constant 0 : index
    %134 = vector.load %arg5[%c0_83, %c4_84, %c0_85, %c0_86] : memref<1x8x32x1xf32, #tpu.memory_space<vmem>>, vector<1x1x32x1xf32>
    %135 = vector.shape_cast %134 : vector<1x1x32x1xf32> to vector<32x1xf32>
    %136 = vector.broadcast %135 : vector<32x1xf32> to vector<32x512xf32>
    %137 = arith.addf %133, %136 : vector<32x512xf32>
    %138 = arith.negf %137 : vector<32x512xf32>
    %139 = math.exp %138 : vector<32x512xf32>
    %cst_87 = arith.constant 1.000000e+00 : f32
    %140 = vector.broadcast %cst_87 : f32 to vector<32x512xf32>
    %141 = arith.addf %140, %139 : vector<32x512xf32>
    %142 = arith.divf %140, %141 : vector<32x512xf32>
    %143 = arith.mulf %137, %142 : vector<32x512xf32>
    %cst_88 = arith.constant dense<0.000000e+00> : vector<4x512xf32>
    %144 = tpu.matmul %4, %143, %cst_88 {dimension_numbers = #tpu.dot_dimension_numbers<[1], [0], [0], [1], [0, 0, 1, 1], [], []>} : vector<4x32xf32>, vector<32x512xf32>, vector<4x512xf32> -> vector<4x512xf32>
    %c0_89 = arith.constant 0 : index
    %c4_90 = arith.constant 4 : index
    %145 = memref.load %arg1[%c0_89, %c4_90] : memref<5x8xf32, #tpu.memory_space<smem>>
    %c1_91 = arith.constant 1 : index
    %c4_92 = arith.constant 4 : index
    %146 = memref.load %arg1[%c1_91, %c4_92] : memref<5x8xf32, #tpu.memory_space<smem>>
    %c2_93 = arith.constant 2 : index
    %c4_94 = arith.constant 4 : index
    %147 = memref.load %arg1[%c2_93, %c4_94] : memref<5x8xf32, #tpu.memory_space<smem>>
    %c3_95 = arith.constant 3 : index
    %c4_96 = arith.constant 4 : index
    %148 = memref.load %arg1[%c3_95, %c4_96] : memref<5x8xf32, #tpu.memory_space<smem>>
    %c4_97 = arith.constant 4 : index
    %c4_98 = arith.constant 4 : index
    %149 = memref.load %arg1[%c4_97, %c4_98] : memref<5x8xf32, #tpu.memory_space<smem>>
    %150 = vector.broadcast %145 : f32 to vector<4x512xf32>
    %151 = arith.mulf %150, %132 : vector<4x512xf32>
    %152 = vector.broadcast %146 : f32 to vector<4x512xf32>
    %153 = arith.mulf %152, %144 : vector<4x512xf32>
    %154 = arith.subf %151, %153 : vector<4x512xf32>
    %155 = vector.broadcast %147 : f32 to vector<4x512xf32>
    %156 = arith.mulf %155, %154 : vector<4x512xf32>
    %157 = vector.broadcast %148 : f32 to vector<4x512xf32>
    %158 = arith.mulf %157, %132 : vector<4x512xf32>
    %159 = arith.addf %156, %158 : vector<4x512xf32>
    %c4_99 = arith.constant 4 : index
    %c0_100 = arith.constant 0 : index
    %c0_101 = arith.constant 0 : index
    %160 = vector.load %arg3[%c4_99, %c0_100, %c0_101] : memref<8x4x512xf32, #tpu.memory_space<vmem>>, vector<1x4x512xf32>
    %161 = vector.shape_cast %160 : vector<1x4x512xf32> to vector<4x512xf32>
    %162 = vector.broadcast %149 : f32 to vector<4x512xf32>
    %163 = arith.mulf %162, %161 : vector<4x512xf32>
    %164 = arith.addf %159, %163 : vector<4x512xf32>
    %cst_102 = arith.constant dense<0.000000e+00> : vector<32x512xf32>
    %165 = tpu.matmul %2, %164, %cst_102 {dimension_numbers = #tpu.dot_dimension_numbers<[1], [0], [0], [1], [0, 0, 1, 1], [], []>} : vector<32x4xf32>, vector<4x512xf32>, vector<32x512xf32> -> vector<32x512xf32>
    %c0_103 = arith.constant 0 : index
    %c5 = arith.constant 5 : index
    %c0_104 = arith.constant 0 : index
    %c0_105 = arith.constant 0 : index
    %166 = vector.load %arg5[%c0_103, %c5, %c0_104, %c0_105] : memref<1x8x32x1xf32, #tpu.memory_space<vmem>>, vector<1x1x32x1xf32>
    %167 = vector.shape_cast %166 : vector<1x1x32x1xf32> to vector<32x1xf32>
    %168 = vector.broadcast %167 : vector<32x1xf32> to vector<32x512xf32>
    %169 = arith.addf %165, %168 : vector<32x512xf32>
    %170 = arith.negf %169 : vector<32x512xf32>
    %171 = math.exp %170 : vector<32x512xf32>
    %cst_106 = arith.constant 1.000000e+00 : f32
    %172 = vector.broadcast %cst_106 : f32 to vector<32x512xf32>
    %173 = arith.addf %172, %171 : vector<32x512xf32>
    %174 = arith.divf %172, %173 : vector<32x512xf32>
    %175 = arith.mulf %169, %174 : vector<32x512xf32>
    %cst_107 = arith.constant dense<0.000000e+00> : vector<4x512xf32>
    %176 = tpu.matmul %4, %175, %cst_107 {dimension_numbers = #tpu.dot_dimension_numbers<[1], [0], [0], [1], [0, 0, 1, 1], [], []>} : vector<4x32xf32>, vector<32x512xf32>, vector<4x512xf32> -> vector<4x512xf32>
    %c0_108 = arith.constant 0 : index
    %c5_109 = arith.constant 5 : index
    %177 = memref.load %arg1[%c0_108, %c5_109] : memref<5x8xf32, #tpu.memory_space<smem>>
    %c1_110 = arith.constant 1 : index
    %c5_111 = arith.constant 5 : index
    %178 = memref.load %arg1[%c1_110, %c5_111] : memref<5x8xf32, #tpu.memory_space<smem>>
    %c2_112 = arith.constant 2 : index
    %c5_113 = arith.constant 5 : index
    %179 = memref.load %arg1[%c2_112, %c5_113] : memref<5x8xf32, #tpu.memory_space<smem>>
    %c3_114 = arith.constant 3 : index
    %c5_115 = arith.constant 5 : index
    %180 = memref.load %arg1[%c3_114, %c5_115] : memref<5x8xf32, #tpu.memory_space<smem>>
    %c4_116 = arith.constant 4 : index
    %c5_117 = arith.constant 5 : index
    %181 = memref.load %arg1[%c4_116, %c5_117] : memref<5x8xf32, #tpu.memory_space<smem>>
    %182 = vector.broadcast %177 : f32 to vector<4x512xf32>
    %183 = arith.mulf %182, %164 : vector<4x512xf32>
    %184 = vector.broadcast %178 : f32 to vector<4x512xf32>
    %185 = arith.mulf %184, %176 : vector<4x512xf32>
    %186 = arith.subf %183, %185 : vector<4x512xf32>
    %187 = vector.broadcast %179 : f32 to vector<4x512xf32>
    %188 = arith.mulf %187, %186 : vector<4x512xf32>
    %189 = vector.broadcast %180 : f32 to vector<4x512xf32>
    %190 = arith.mulf %189, %164 : vector<4x512xf32>
    %191 = arith.addf %188, %190 : vector<4x512xf32>
    %c5_118 = arith.constant 5 : index
    %c0_119 = arith.constant 0 : index
    %c0_120 = arith.constant 0 : index
    %192 = vector.load %arg3[%c5_118, %c0_119, %c0_120] : memref<8x4x512xf32, #tpu.memory_space<vmem>>, vector<1x4x512xf32>
    %193 = vector.shape_cast %192 : vector<1x4x512xf32> to vector<4x512xf32>
    %194 = vector.broadcast %181 : f32 to vector<4x512xf32>
    %195 = arith.mulf %194, %193 : vector<4x512xf32>
    %196 = arith.addf %191, %195 : vector<4x512xf32>
    %cst_121 = arith.constant dense<0.000000e+00> : vector<32x512xf32>
    %197 = tpu.matmul %2, %196, %cst_121 {dimension_numbers = #tpu.dot_dimension_numbers<[1], [0], [0], [1], [0, 0, 1, 1], [], []>} : vector<32x4xf32>, vector<4x512xf32>, vector<32x512xf32> -> vector<32x512xf32>
    %c0_122 = arith.constant 0 : index
    %c6 = arith.constant 6 : index
    %c0_123 = arith.constant 0 : index
    %c0_124 = arith.constant 0 : index
    %198 = vector.load %arg5[%c0_122, %c6, %c0_123, %c0_124] : memref<1x8x32x1xf32, #tpu.memory_space<vmem>>, vector<1x1x32x1xf32>
    %199 = vector.shape_cast %198 : vector<1x1x32x1xf32> to vector<32x1xf32>
    %200 = vector.broadcast %199 : vector<32x1xf32> to vector<32x512xf32>
    %201 = arith.addf %197, %200 : vector<32x512xf32>
    %202 = arith.negf %201 : vector<32x512xf32>
    %203 = math.exp %202 : vector<32x512xf32>
    %cst_125 = arith.constant 1.000000e+00 : f32
    %204 = vector.broadcast %cst_125 : f32 to vector<32x512xf32>
    %205 = arith.addf %204, %203 : vector<32x512xf32>
    %206 = arith.divf %204, %205 : vector<32x512xf32>
    %207 = arith.mulf %201, %206 : vector<32x512xf32>
    %cst_126 = arith.constant dense<0.000000e+00> : vector<4x512xf32>
    %208 = tpu.matmul %4, %207, %cst_126 {dimension_numbers = #tpu.dot_dimension_numbers<[1], [0], [0], [1], [0, 0, 1, 1], [], []>} : vector<4x32xf32>, vector<32x512xf32>, vector<4x512xf32> -> vector<4x512xf32>
    %c0_127 = arith.constant 0 : index
    %c6_128 = arith.constant 6 : index
    %209 = memref.load %arg1[%c0_127, %c6_128] : memref<5x8xf32, #tpu.memory_space<smem>>
    %c1_129 = arith.constant 1 : index
    %c6_130 = arith.constant 6 : index
    %210 = memref.load %arg1[%c1_129, %c6_130] : memref<5x8xf32, #tpu.memory_space<smem>>
    %c2_131 = arith.constant 2 : index
    %c6_132 = arith.constant 6 : index
    %211 = memref.load %arg1[%c2_131, %c6_132] : memref<5x8xf32, #tpu.memory_space<smem>>
    %c3_133 = arith.constant 3 : index
    %c6_134 = arith.constant 6 : index
    %212 = memref.load %arg1[%c3_133, %c6_134] : memref<5x8xf32, #tpu.memory_space<smem>>
    %c4_135 = arith.constant 4 : index
    %c6_136 = arith.constant 6 : index
    %213 = memref.load %arg1[%c4_135, %c6_136] : memref<5x8xf32, #tpu.memory_space<smem>>
    %214 = vector.broadcast %209 : f32 to vector<4x512xf32>
    %215 = arith.mulf %214, %196 : vector<4x512xf32>
    %216 = vector.broadcast %210 : f32 to vector<4x512xf32>
    %217 = arith.mulf %216, %208 : vector<4x512xf32>
    %218 = arith.subf %215, %217 : vector<4x512xf32>
    %219 = vector.broadcast %211 : f32 to vector<4x512xf32>
    %220 = arith.mulf %219, %218 : vector<4x512xf32>
    %221 = vector.broadcast %212 : f32 to vector<4x512xf32>
    %222 = arith.mulf %221, %196 : vector<4x512xf32>
    %223 = arith.addf %220, %222 : vector<4x512xf32>
    %c6_137 = arith.constant 6 : index
    %c0_138 = arith.constant 0 : index
    %c0_139 = arith.constant 0 : index
    %224 = vector.load %arg3[%c6_137, %c0_138, %c0_139] : memref<8x4x512xf32, #tpu.memory_space<vmem>>, vector<1x4x512xf32>
    %225 = vector.shape_cast %224 : vector<1x4x512xf32> to vector<4x512xf32>
    %226 = vector.broadcast %213 : f32 to vector<4x512xf32>
    %227 = arith.mulf %226, %225 : vector<4x512xf32>
    %228 = arith.addf %223, %227 : vector<4x512xf32>
    %cst_140 = arith.constant dense<0.000000e+00> : vector<32x512xf32>
    %229 = tpu.matmul %2, %228, %cst_140 {dimension_numbers = #tpu.dot_dimension_numbers<[1], [0], [0], [1], [0, 0, 1, 1], [], []>} : vector<32x4xf32>, vector<4x512xf32>, vector<32x512xf32> -> vector<32x512xf32>
    %c0_141 = arith.constant 0 : index
    %c7 = arith.constant 7 : index
    %c0_142 = arith.constant 0 : index
    %c0_143 = arith.constant 0 : index
    %230 = vector.load %arg5[%c0_141, %c7, %c0_142, %c0_143] : memref<1x8x32x1xf32, #tpu.memory_space<vmem>>, vector<1x1x32x1xf32>
    %231 = vector.shape_cast %230 : vector<1x1x32x1xf32> to vector<32x1xf32>
    %232 = vector.broadcast %231 : vector<32x1xf32> to vector<32x512xf32>
    %233 = arith.addf %229, %232 : vector<32x512xf32>
    %234 = arith.negf %233 : vector<32x512xf32>
    %235 = math.exp %234 : vector<32x512xf32>
    %cst_144 = arith.constant 1.000000e+00 : f32
    %236 = vector.broadcast %cst_144 : f32 to vector<32x512xf32>
    %237 = arith.addf %236, %235 : vector<32x512xf32>
    %238 = arith.divf %236, %237 : vector<32x512xf32>
    %239 = arith.mulf %233, %238 : vector<32x512xf32>
    %cst_145 = arith.constant dense<0.000000e+00> : vector<4x512xf32>
    %240 = tpu.matmul %4, %239, %cst_145 {dimension_numbers = #tpu.dot_dimension_numbers<[1], [0], [0], [1], [0, 0, 1, 1], [], []>} : vector<4x32xf32>, vector<32x512xf32>, vector<4x512xf32> -> vector<4x512xf32>
    %c0_146 = arith.constant 0 : index
    %c7_147 = arith.constant 7 : index
    %241 = memref.load %arg1[%c0_146, %c7_147] : memref<5x8xf32, #tpu.memory_space<smem>>
    %c1_148 = arith.constant 1 : index
    %c7_149 = arith.constant 7 : index
    %242 = memref.load %arg1[%c1_148, %c7_149] : memref<5x8xf32, #tpu.memory_space<smem>>
    %c2_150 = arith.constant 2 : index
    %c7_151 = arith.constant 7 : index
    %243 = memref.load %arg1[%c2_150, %c7_151] : memref<5x8xf32, #tpu.memory_space<smem>>
    %c3_152 = arith.constant 3 : index
    %c7_153 = arith.constant 7 : index
    %244 = memref.load %arg1[%c3_152, %c7_153] : memref<5x8xf32, #tpu.memory_space<smem>>
    %c4_154 = arith.constant 4 : index
    %c7_155 = arith.constant 7 : index
    %245 = memref.load %arg1[%c4_154, %c7_155] : memref<5x8xf32, #tpu.memory_space<smem>>
    %246 = vector.broadcast %241 : f32 to vector<4x512xf32>
    %247 = arith.mulf %246, %228 : vector<4x512xf32>
    %248 = vector.broadcast %242 : f32 to vector<4x512xf32>
    %249 = arith.mulf %248, %240 : vector<4x512xf32>
    %250 = arith.subf %247, %249 : vector<4x512xf32>
    %251 = vector.broadcast %243 : f32 to vector<4x512xf32>
    %252 = arith.mulf %251, %250 : vector<4x512xf32>
    %253 = vector.broadcast %244 : f32 to vector<4x512xf32>
    %254 = arith.mulf %253, %228 : vector<4x512xf32>
    %255 = arith.addf %252, %254 : vector<4x512xf32>
    %c7_156 = arith.constant 7 : index
    %c0_157 = arith.constant 0 : index
    %c0_158 = arith.constant 0 : index
    %256 = vector.load %arg3[%c7_156, %c0_157, %c0_158] : memref<8x4x512xf32, #tpu.memory_space<vmem>>, vector<1x4x512xf32>
    %257 = vector.shape_cast %256 : vector<1x4x512xf32> to vector<4x512xf32>
    %258 = vector.broadcast %245 : f32 to vector<4x512xf32>
    %259 = arith.mulf %258, %257 : vector<4x512xf32>
    %260 = arith.addf %255, %259 : vector<4x512xf32>
    %cst_159 = arith.constant -1.000000e+00 : f32
    %cst_160 = arith.constant 1.000000e+00 : f32
    %261 = vector.broadcast %cst_159 : f32 to vector<4x512xf32>
    %262 = arith.maximumf %261, %260 : vector<4x512xf32>
    %263 = vector.broadcast %cst_160 : f32 to vector<4x512xf32>
    %264 = arith.minimumf %263, %262 : vector<4x512xf32>
    %c0_161 = arith.constant 0 : index
    %c0_162 = arith.constant 0 : index
    %c0_163 = arith.constant 0 : index
    %265 = vector.load %arg7[%c0_161, %c0_162, %c0_163] : memref<1x4x512xf32, #tpu.memory_space<vmem>>, vector<1x4x512xf32>
    %266 = vector.shape_cast %265 : vector<1x4x512xf32> to vector<4x512xf32>
    %267 = vector.shape_cast %264 : vector<4x512xf32> to vector<1x4x512xf32>
    tpu.vector_store %arg7[%c0_161, %c0_162, %c0_163], %267 {strides = array<i32>} : memref<1x4x512xf32, #tpu.memory_space<vmem>>, vector<1x4x512xf32>,
    return
  }
  func.func @transform_0(%arg0: i32) -> (i32, i32) {
    %c0_i32 = arith.constant 0 : i32
    %c0_i32_0 = arith.constant 0 : i32
    %c0_i32_1 = arith.constant 0 : i32
    return %c0_i32, %c0_i32_0 : i32, i32
  }
  func.func @transform_1(%arg0: i32) -> (i32, i32) {
    %c0_i32 = arith.constant 0 : i32
    %c0_i32_0 = arith.constant 0 : i32
    %c0_i32_1 = arith.constant 0 : i32
    return %c0_i32, %c0_i32_0 : i32, i32
  }
  func.func @transform_2(%arg0: i32) -> (i32, i32, i32) {
    %c0_i32 = arith.constant 0 : i32
    %c0_i32_0 = arith.constant 0 : i32
    %c0_i32_1 = arith.constant 0 : i32
    %c0_i32_2 = arith.constant 0 : i32
    return %c0_i32, %c0_i32_0, %c0_i32_1 : i32, i32, i32
  }
  func.func @transform_3(%arg0: i32) -> (i32, i32, i32) {
    %c0_i32 = arith.constant 0 : i32
    %c0_i32_0 = arith.constant 0 : i32
    %c0_i32_1 = arith.constant 0 : i32
    return %arg0, %c0_i32, %c0_i32_0 : i32, i32, i32
  }
  func.func @transform_4(%arg0: i32) -> (i32, i32, i32, i32) {
    %c0_i32 = arith.constant 0 : i32
    %c0_i32_0 = arith.constant 0 : i32
    %c0_i32_1 = arith.constant 0 : i32
    %c0_i32_2 = arith.constant 0 : i32
    return %arg0, %c0_i32, %c0_i32_0, %c0_i32_1 : i32, i32, i32, i32
  }
  func.func @transform_5(%arg0: i32) -> (i32, i32, i32) {
    %c0_i32 = arith.constant 0 : i32
    %c0_i32_0 = arith.constant 0 : i32
    %c0_i32_1 = arith.constant 0 : i32
    return %arg0, %c0_i32, %c0_i32_0 : i32, i32, i32
  }
  func.func @transform_6(%arg0: i32) -> (i32, i32, i32) {
    %c0_i32 = arith.constant 0 : i32
    %c0_i32_0 = arith.constant 0 : i32
    %c0_i32_1 = arith.constant 0 : i32
    return %arg0, %c0_i32, %c0_i32_0 : i32, i32, i32
  }
}

</mosaic_0001>

<bundles_post_ra>
// kernel: tpu_custom_call.1
= control target key start
LH: loop header
LB: loop body
LE: loop exit
PB: predicated region body
PF: predicated region fallthrough
CT: control target
= control target key end

     0   :  { %11 = vsyncpa [#allocation4], 0  ;;  %s6841_s0 = inlined_call_operand.vmem [shape: f32[5,8], index: 0, kind: input, shape index: {}]   ;;  %s6842_s1 = inlined_call_operand.vmem [shape: f32[4,512], index: 1, kind: input, shape index: {}]   ;;  %s6843_s2 = inlined_call_operand.vmem [shape: f32[8,4,512], index: 2, kind: input, shape index: {}]   ;;  %s6844_s3 = inlined_call_operand.vmem [shape: f32[2,32,4], index: 3, kind: input, shape index: {}]   ;;  %s6845_s4 = inlined_call_operand.vmem [shape: f32[2,8,32,1], index: 4, kind: input, shape index: {}]   ;;  %s6846_s5 = inlined_call_operand.vmem [shape: f32[2,4,32], index: 5, kind: input, shape index: {}]   ;;  %s6847_s6 = inlined_call_operand.hbm [shape: f32[2,4,512], index: 6, kind: output, shape index: {}]  }
   0x1   :  { %12 = vsyncpa [#allocation3], 0 }
   0x2   :  { %14 = vsyncpa [#allocation3 + $0x1], 0  ;;  %s5675_s21 = smov 0   ;;  %s5677_s22 = smov 0  }
   0x3   :  { %s5679_s23 = smov 0   ;;  %s5681_s24 = smov 0  }
   0x4 LB: > { %s5696_s25 = sadd.s32 4294967295, %s5634_s24   ;;  %s4504_s26 = sadd.s32 4294967294, %s5634_s24   ;;  %s5634_s24 = sphi %s5681_s24, %s6854_s24   ;;  %s5630_s23 = sphi %s5679_s23, %s6853_s23   ;;  %s5626_s22 = sphi %s5677_s22, %s6852_s22   ;;  %s5622_s21 = sphi %s5675_s21, %s6851_s21  }
   0x5   : > { %s5700_s27 = sadd.s32 1, %s5634_s24   ;;  %s168_s28 = sadd.s32 1, %s5630_s23 }
   0x6   : > { %s165_s29 = ssub.s32 %s5634_s24, %s5700_s27  ;;  %p178_p0 = scmp.ne.s32.totalorder %s5630_s23, %s5626_s22 }
   0x7   : > { %p166_p1 = scmp.eq.s32.totalorder %s165_s29, 0  ;;  %p179_p2 = scmp.eq.s32.totalorder %s5696_s25, 1 }
   0x8   : > { %p184_p3 = scmp.ne.s32.totalorder %s5626_s22, %s5622_s21  ;;  %p185_p4 = scmp.eq.s32.totalorder %s4504_s26, 1 }
   0x9   : > { %s5711_s30 = scalar_select %p166_p1, %s5630_s23, %s168_s28  }
   0xa   : > { %p5713_p5 = por %p179_p2, %p178_p0  ;;  %p5717_p6 = por %p185_p4, %p184_p3 }
   0xb   : > { %p4505_p7 = scmp.ge.s32.totalorder %s5634_s24, 1  ;;  %p192_p8 = scmp.lt.s32.totalorder %s5634_s24, 3 }
   0xc   : > { %p4989_p9 = scmp.eq.s32.totalorder %s5696_s25, 0  ;;  %s205_s12 = sshll.u32 %s6841_s0, 4  ;;  %s206_s12 = int_to_ptr.vmem [resolvable:$true] %s205_s12 }
   0xd   : > { %p5724_p10 = pnand %p4505_p7, %p192_p8  ;;  %s5553_s13 = scalar_lea.vmem %s206_s12, 128 }
   0xe   : > { %p5554_p13 = scmp.ne.s32.totalorder %s206_s12, %s5553_s13  ;;  %p5561_p3 = scmp.lt.s32.totalorder %s206_s12, %s206_s12 }
   0xf   : > { %p4981_p11 = pneg %p5724_p10  ;;  %p5562_p4 = scmp.lt.s32.totalorder %s5553_s13, %s5553_s13 }
  0x11   : > { %p4982_p12 = pnand %p4989_p9, %p4981_p11  ;;  %p5563_p7 = por %p5562_p4, %p5561_p3 }
  0x13   : > { %p5555_p0 = pneg %p4982_p12 }
  0x15   : > { %p5556_p1 = pnand %p5555_p0, %p5554_p13 }
  0x17   : > { %p5557_p2 = pneg %p5556_p1 }
  0x19   : > { %p5564_p8 = pnand %p5563_p7, %p5557_p2 }
  0x1b   : > { %5567 = shalt.err (!%p5564_p8)
}
  0x1c   : > { %s5636_s14 = smov [#allocation2]   ;;  %247 = sbr.rel (%p5724_p10) target bundleno = 4090 (0xffa), region = 44 }
  0x1d   : > { %4984 = dma.vmem_to_smem (!%p4982_p12), %s206_s12, 128, %s5636_s14, [#allocation4]  }
  0x23   : > { %5613 = dma.done.wait (%p4989_p9), [#allocation4], 128  }
  0x24   : > { %5615 = vsyncadd (%p4989_p9), [#allocation4], 4294967168 }
  0x25   : > { %253 = sfence }
  0x26   : > { %v5744_v0 = vld [vmem:[%s6842_s1] sm:$0xff]  ;;  %vm349_vm0 = vcmask 1043456   ;;  %v5749_v1 = vld [vmem:[%s6842_s1 + $0x8] sm:$0xff]  ;;  %v5637_v4 = vmov 0.0   ;;  %p287_p9 = scmp.lt.s32.totalorder %s5696_s25, 1  ;;  %v5638_v5 = vmov 0  }
  0x27   : > { %v334_v2 = vcombine.high %v5744_v0, %v5744_v0  ;;  %v335_v3 = vcombine.high %v5749_v1, %v5749_v1  ;;  %422 = vmatprep.mubr.f32.mxu0 %v5637_v4  ;;  %511 = vmatprep.mubr.f32.mxu1 %v5637_v4  ;;  %vm336_vm1 = vcmask 31744   ;;  %vm648_vm2 = vcmask 261120   ;;  %s4546_s17 = sld [smem:[#allocation2 + $0x80]]  ;;  %s4587_s14 = sld [smem:[#allocation2 + $0x181]] }
  0x28   : > { %5027 = vset.pattern.permute.xlu0 %v5638_v5  ;;  %5028 = vset.pattern.permute.xlu1 %v5638_v5  ;;  %s5761_s19 = scalar_select %p287_p9, %s5696_s25, 1 }
  0x29   : > { %4516 = vmatprep.subr.msk.mxu0 %vm349_vm0, %v334_v2  ;;  %4522 = vmatprep.subr.msk.mxu1 %vm349_vm0, %v335_v3  ;;  %s794_s18 = sld [smem:[#allocation2]]  ;;  %s4586_s15 = sld [smem:[#allocation2 + $0x101]] }
  0x2a   : > { %4517 = vmatpush1.msk.msra.mxu0 %vm349_vm0, %v5744_v0  ;;  %4523 = vmatpush1.msk.msra.mxu1 %vm349_vm0, %v5749_v1  ;;  %s4844_s20 = sshll.u32 %s5761_s19, 5  ;;  %s4845_s26 = sshll.u32 %s5761_s19, 8 }
  0x2b   : > { %s5772_s9 = scalar_lea.vmem %s6844_s3, %s4844_s20  ;;  %s5777_s12 = scalar_lea.vmem %s6845_s4, %s4845_s26 }
  0x2c   : > { %v5780_v6 = vld [vmem:[%s5772_s9] sm:$0xff]  ;;  %v5790_v8 = vld [vmem:[%s5772_s9 + $0x8] sm:$0xff]  ;;  %v310_v9 = vld [vmem:[%s5777_s12 + $0x10] sm:$0xff]  ;;  %s4515_s13 = sshll.u32 %s5761_s19, 2  ;;  %s4548_s19 = sld [smem:[#allocation2 + $0x180]] }
  0x2d   : > { %4518 = vmatmul.mubr.msk.f32.vlgmr.msra.gmra.mrb[0].mxu0 %vm336_vm1, %v5780_v6  ;;  %4524 = vmatmul.mubr.msk.f32.vlgmr.msra.gmra.mrb[0].mxu1 %vm336_vm1, %v5780_v6  ;;  %v308_v7 = vld [vmem:[%s5777_s12] sm:$0xff]  ;;  %v309_v10 = vld [vmem:[%s5777_s12 + $0x8] sm:$0xff]  ;;  %v311_v11 = vld [vmem:[%s5777_s12 + $0x18] sm:$0xff]  ;;  %s5915_s16 = scalar_lea.vmem %s6846_s5, %s4515_s13  ;;  %s4547_s20 = sld [smem:[#allocation2 + $0x100]] }
  0x2e   : > { %428 = vmatprep.mubr.f32.mxu0 %v5637_v4  ;;  %517 = vmatprep.mubr.f32.mxu1 %v5637_v4  ;;  %v5802_v12 = vld [vmem:[%s5772_s9 + $0x10] sm:$0xff]  ;;  %v4550_v13 = vld [vmem:[%s5777_s12 + $0x20] sm:$0xff]  ;;  %v4551_v14 = vld [vmem:[%s5777_s12 + $0x28] sm:$0xff]  ;;  %s4549_s26 = sld [smem:[#allocation2 + $0x200]]  ;;  %s4584_s13 = sld [smem:[#allocation2 + $0x1]] }
  0x2f   : > { %314 = vperm.xlu0 %5027, %v308_v7   ;;  %324 = vperm.xlu1 %5028, %v310_v9   ;;  %v5813_v15 = vld [vmem:[%s5772_s9 + $0x18] sm:$0xff]  ;;  %v4552_v16 = vld [vmem:[%s5777_s12 + $0x30] sm:$0xff]  ;;  %v4591_v18 = vld [vmem:[%s5777_s12 + $0x40] sm:$0xff]  ;;  %s4626_s28 = sld [smem:[#allocation2 + $0x82]] }
  0x30   : > { %v4553_v17 = vld [vmem:[%s5777_s12 + $0x38] sm:$0xff]  ;;  %v4592_v19 = vld [vmem:[%s5777_s12 + $0x48] sm:$0xff]  ;;  %v4593_v20 = vld [vmem:[%s5777_s12 + $0x50] sm:$0xff]  ;;  %s4625_s29 = sld [smem:[#allocation2 + $0x2]] }
  0x31   : > { %4519 = vmatmul.mubr.msk.f32.gmra.mrb[2].mxu0 %vm336_vm1, %v5790_v8  ;;  %4525 = vmatmul.mubr.msk.f32.gmra.mrb[2].mxu1 %vm336_vm1, %v5790_v8  ;;  %v4594_v21 = vld [vmem:[%s5777_s12 + $0x58] sm:$0xff]  ;;  %v4632_v22 = vld [vmem:[%s5777_s12 + $0x60] sm:$0xff]  ;;  %v4633_v23 = vld [vmem:[%s5777_s12 + $0x68] sm:$0xff]  ;;  %s4628_s10 = sld [smem:[#allocation2 + $0x182]] }
  0x32   : > { %434 = vmatprep.mubr.f32.mxu0 %v5637_v4  ;;  %523 = vmatprep.mubr.f32.mxu1 %v5637_v4  ;;  %v4634_v24 = vld [vmem:[%s5777_s12 + $0x70] sm:$0xff]  ;;  %v4635_v25 = vld [vmem:[%s5777_s12 + $0x78] sm:$0xff]  ;;  %v4673_v26 = vld [vmem:[%s5777_s12 + $0x80] sm:$0xff]  ;;  %s4627_s11 = sld [smem:[#allocation2 + $0x102]] }
  0x33   : > { %319 = vperm.xlu0 %5027, %v309_v10   ;;  %329 = vperm.xlu1 %5028, %v311_v11   ;;  %v4674_v27 = vld [vmem:[%s5777_s12 + $0x88] sm:$0xff]  ;;  %v4675_v28 = vld [vmem:[%s5777_s12 + $0x90] sm:$0xff]  ;;  %v4676_v29 = vld [vmem:[%s5777_s12 + $0x98] sm:$0xff] }
  0x34   : > { %v4714_v30 = vld [vmem:[%s5777_s12 + $0xa0] sm:$0xff]  ;;  %v4715_v31 = vld [vmem:[%s5777_s12 + $0xa8] sm:$0xff]  ;;  %v4716_v32 = vld [vmem:[%s5777_s12 + $0xb0] sm:$0xff] }
  0x35   : > { %4520 = vmatmul.mubr.msk.f32.gmra.mrb[4].mxu0 %vm336_vm1, %v5802_v12  ;;  %4526 = vmatmul.mubr.msk.f32.gmra.mrb[4].mxu1 %vm336_vm1, %v5802_v12  ;;  %v4717_v33 = vld [vmem:[%s5777_s12 + $0xb8] sm:$0xff]  ;;  %v4755_v34 = vld [vmem:[%s5777_s12 + $0xc0] sm:$0xff]  ;;  %v4756_v35 = vld [vmem:[%s5777_s12 + $0xc8] sm:$0xff] }
  0x36   : > { %440 = vmatprep.mubr.f32.mxu0 %v5637_v4  ;;  %529 = vmatprep.mubr.f32.mxu1 %v5637_v4  ;;  %v4757_v36 = vld [vmem:[%s5777_s12 + $0xd0] sm:$0xff]  ;;  %v4758_v37 = vld [vmem:[%s5777_s12 + $0xd8] sm:$0xff]  ;;  %v4796_v38 = vld [vmem:[%s5777_s12 + $0xe0] sm:$0xff] }
  0x37   : > { %839 = vperm.xlu0 %5027, %v4550_v13   ;;  %844 = vperm.xlu1 %5028, %v4551_v14   ;;  %v4797_v39 = vld [vmem:[%s5777_s12 + $0xe8] sm:$0xff]  ;;  %v4798_v40 = vld [vmem:[%s5777_s12 + $0xf0] sm:$0xff]  ;;  %v4799_v41 = vld [vmem:[%s5777_s12 + $0xf8] sm:$0xff]  ;;  %s4585_s12 = sld [smem:[#allocation2 + $0x81]] }
  0x39   : > { %4521 = vmatmul.mubr.msk.f32.gmra.mrb[6].mxu0 %vm336_vm1, %v5813_v15  ;;  %4527 = vmatmul.mubr.msk.f32.gmra.mrb[6].mxu1 %vm336_vm1, %v5813_v15 }
  0x3a   : > { %716 = vmatprep.mubr.f32.mxu0 %v5637_v4  ;;  %787 = vmatprep.mubr.f32.mxu1 %v5637_v4 }
  0x3b   : > { %849 = vperm.xlu0 %5027, %v4552_v16   ;;  %854 = vperm.xlu1 %5028, %v4553_v17  }
  0x3f   : > { %1347 = vperm.xlu0 %5027, %v4591_v18   ;;  %1352 = vperm.xlu1 %5028, %v4592_v19  }
  0x43   : > { %1357 = vperm.xlu0 %5027, %v4593_v20   ;;  %1362 = vperm.xlu1 %5028, %v4594_v21  }
  0x47   : > { %1855 = vperm.xlu0 %5027, %v4632_v22   ;;  %1860 = vperm.xlu1 %5028, %v4633_v23  }
  0x4b   : > { %1865 = vperm.xlu0 %5027, %v4634_v24   ;;  %1870 = vperm.xlu1 %5028, %v4635_v25  }
  0x4f   : > { %2363 = vperm.xlu0 %5027, %v4673_v26   ;;  %2368 = vperm.xlu1 %5028, %v4674_v27  }
  0x53   : > { %2373 = vperm.xlu0 %5027, %v4675_v28   ;;  %2378 = vperm.xlu1 %5028, %v4676_v29  }
  0x57   : > { %2871 = vperm.xlu0 %5027, %v4714_v30   ;;  %2876 = vperm.xlu1 %5028, %v4715_v31  }
  0x5b   : > { %2881 = vperm.xlu0 %5027, %v4716_v32   ;;  %2886 = vperm.xlu1 %5028, %v4717_v33  }
  0x5f   : > { %3379 = vperm.xlu0 %5027, %v4755_v34   ;;  %3384 = vperm.xlu1 %5028, %v4756_v35  }
  0x63   : > { %3389 = vperm.xlu0 %5027, %v4757_v36   ;;  %3394 = vperm.xlu1 %5028, %v4758_v37  }
  0x67   : > { %3887 = vperm.xlu0 %5027, %v4796_v38   ;;  %3892 = vperm.xlu1 %5028, %v4797_v39  }
  0x6b   : > { %3897 = vperm.xlu0 %5027, %v4798_v40   ;;  %3902 = vperm.xlu1 %5028, %v4799_v41  }
  0xae   : > { %v315_v42 = vpop.permute.xlu0 %314  ;;  %v325_v52 = vpop.permute.xlu1 %324 }
  0xb2   : > { %v320_v51 = vpop.permute.xlu0 %319  ;;  %v330_v19 = vpop.permute.xlu1 %329 }
 0x100   : > { %v424_v43 = vpop.f32.mrb[0].mxu0  ;;  %v513_v44 = vpop.f32.mrb[0].mxu1 }
 0x101   : > { %v5847_v45 = vadd.f32 %v424_v43, %v315_v42  ;;  %v5849_v46 = vadd.f32 %v513_v44, %v315_v42  ;;  %v426_v47 = vpop.f32.mrb[1].mxu0  ;;  %v515_v48 = vpop.f32.mrb[1].mxu1 }
 0x102   : > { %v5851_v49 = vadd.f32 %v426_v47, %v315_v42  ;;  %v5853_v50 = vadd.f32 %v515_v48, %v315_v42 }
 0x103   : > { %v4528_v53 = vmul.f32 -1.442695, %v5847_v45  ;;  %v4530_v54 = vmul.f32 -1.442695, %v5849_v46 }
 0x104   : > { %v4529_v55 = vmul.f32 -1.442695, %v5851_v49  ;;  %v4531_v56 = vmul.f32 -1.442695, %v5853_v50  ;;  %v430_v57 = vpop.f32.mrb[2].mxu0  ;;  %v519_v58 = vpop.f32.mrb[2].mxu1 }
 0x105   : > { %5031 = vpow2.f32 %v4528_v53  ;;  %v5859_v59 = vadd.f32 %v430_v57, %v320_v51  ;;  %v5861_v60 = vadd.f32 %v519_v58, %v320_v51  ;;  %v432_v61 = vpop.f32.mrb[3].mxu0  ;;  %v521_v62 = vpop.f32.mrb[3].mxu1 }
 0x106   : > { %5033 = vpow2.f32 %v4530_v54  ;;  %v5863_v63 = vadd.f32 %v432_v61, %v320_v51  ;;  %v5865_v2 = vadd.f32 %v521_v62, %v320_v51 }
 0x107   : > { %5035 = vpow2.f32 %v4529_v55  ;;  %v4532_v3 = vmul.f32 -1.442695, %v5859_v59  ;;  %v4534_v5 = vmul.f32 -1.442695, %v5861_v60 }
 0x108   : > { %5037 = vpow2.f32 %v4531_v56  ;;  %v4533_v7 = vmul.f32 -1.442695, %v5863_v63  ;;  %v4535_v9 = vmul.f32 -1.442695, %v5865_v2  ;;  %v436_v10 = vpop.f32.mrb[4].mxu0  ;;  %v525_v11 = vpop.f32.mrb[4].mxu1 }
 0x109   : > { %5039 = vpow2.f32 %v4532_v3  ;;  %v5871_v13 = vadd.f32 %v436_v10, %v325_v52  ;;  %v5873_v14 = vadd.f32 %v525_v11, %v325_v52  ;;  %v438_v16 = vpop.f32.mrb[5].mxu0  ;;  %v527_v17 = vpop.f32.mrb[5].mxu1 }
 0x10a   : > { %5041 = vpow2.f32 %v4534_v5  ;;  %v5875_v18 = vadd.f32 %v438_v16, %v325_v52  ;;  %v5883_v36 = vadd.f32 %v527_v17, %v325_v52 }
 0x10b   : > { %5043 = vpow2.f32 %v4533_v7  ;;  %v4536_v20 = vmul.f32 -1.442695, %v5871_v13  ;;  %v4538_v21 = vmul.f32 -1.442695, %v5873_v14 }
 0x10c   : > { %5045 = vpow2.f32 %v4535_v9  ;;  %v4537_v22 = vmul.f32 -1.442695, %v5875_v18  ;;  %v442_v23 = vpop.f32.mrb[6].mxu0  ;;  %v531_v24 = vpop.f32.mrb[6].mxu1  ;;  %v4539_v47 = vmul.f32 -1.442695, %v5883_v36 }
 0x10d   : > { %5047 = vpow2.f32 %v4536_v20  ;;  %v5880_v25 = vadd.f32 %v442_v23, %v330_v19  ;;  %v444_v26 = vpop.f32.mrb[7].mxu0  ;;  %v533_v27 = vpop.f32.mrb[7].mxu1  ;;  %v5886_v53 = vadd.f32 %v531_v24, %v330_v19 }
 0x10e   : > { %5049 = vpow2.f32 %v4538_v21  ;;  %v5888_v54 = vadd.f32 %v444_v26, %v330_v19  ;;  %v5890_v56 = vadd.f32 %v533_v27, %v330_v19 }
 0x10f   : > { %v5032_v28 = vpop.eup %5031  ;;  %v4540_v29 = vmul.f32 -1.442695, %v5880_v25  ;;  %5051 = vpow2.f32 %v4537_v22  ;;  %v4542_v61 = vmul.f32 -1.442695, %v5886_v53 }
 0x110   : > { %v5034_v30 = vpop.eup %5033  ;;  %v584_v31 = vadd.f32 1.0, %v5032_v28  ;;  %v4541_v5 = vmul.f32 -1.442695, %v5888_v54  ;;  %v4543_v9 = vmul.f32 -1.442695, %v5890_v56 }
 0x111   : > { %v5036_v32 = vpop.eup %5035  ;;  %v586_v33 = vadd.f32 1.0, %v5034_v30  ;;  %5053 = vpow2.f32 %v4540_v29 }
 0x112   : > { %v5038_v34 = vpop.eup %5037  ;;  %5055 = vrcp.f32 %v584_v31  ;;  %v585_v35 = vadd.f32 1.0, %v5036_v32 }
 0x113   : > { %v5040_v37 = vpop.eup %5039  ;;  %5057 = vrcp.f32 %v586_v33  ;;  %v587_v38 = vadd.f32 1.0, %v5038_v34 }
 0x114   : > { %v5042_v39 = vpop.eup %5041  ;;  %5059 = vrcp.f32 %v585_v35  ;;  %v588_v40 = vadd.f32 1.0, %v5040_v37 }
 0x115   : > { %v5044_v41 = vpop.eup %5043  ;;  %5061 = vrcp.f32 %v587_v38  ;;  %v590_v42 = vadd.f32 1.0, %v5042_v39 }
 0x116   : > { %v5046_v43 = vpop.eup %5045  ;;  %5063 = vrcp.f32 %v588_v40  ;;  %v589_v44 = vadd.f32 1.0, %v5044_v41 }
 0x117   : > { %v5048_v48 = vpop.eup %5047  ;;  %5065 = vrcp.f32 %v590_v42  ;;  %v591_v51 = vadd.f32 1.0, %v5046_v43 }
 0x118   : > { %5067 = vrcp.f32 %v589_v44  ;;  %v592_v52 = vadd.f32 1.0, %v5048_v48  ;;  %v5050_v55 = vpop.eup %5049 }
 0x119   : > { %5069 = vrcp.f32 %v591_v51  ;;  %v5052_v57 = vpop.eup %5051  ;;  %v594_v32 = vadd.f32 1.0, %v5050_v55 }
 0x11a   : > { %5071 = vpow2.f32 %v4539_v47  ;;  %v593_v34 = vadd.f32 1.0, %v5052_v57 }
 0x11b   : > { %v5054_v58 = vpop.eup %5053  ;;  %5073 = vrcp.f32 %v592_v52 }
 0x11c   : > { %v5056_v62 = vpop.eup %5055  ;;  %v596_v3 = vadd.f32 1.0, %v5054_v58 }
 0x11d   : > { %v5058_v7 = vpop.eup %5057  ;;  %v632_v19 = vmul.f32 %v5056_v62, %v5847_v45 }
 0x11e   : > { %v5060_v10 = vpop.eup %5059  ;;  %5075 = vrcp.f32 %v596_v3  ;;  %v634_v22 = vmul.f32 %v5058_v7, %v5849_v46 }
 0x11f   : > { %v5062_v11 = vpop.eup %5061  ;;  %5077 = vpow2.f32 %v4542_v61  ;;  %v633_v26 = vmul.f32 %v5060_v10, %v5851_v49 }
 0x120   : > { %v5064_v16 = vpop.eup %5063  ;;  %5079 = vpow2.f32 %v4541_v5  ;;  %v635_v30 = vmul.f32 %v5062_v11, %v5853_v50 }
 0x121   : > { %v5066_v17 = vpop.eup %5065  ;;  %v636_v20 = vmul.f32 %v5064_v16, %v5859_v59  ;;  %5081 = vpow2.f32 %v4543_v9  ;;  %v820_v16 = vstv %s4548_s19  ;;  %s4666_s19 = sld [smem:[#allocation2 + $0x3]] }
 0x122   : > { %v5068_v21 = vpop.eup %5067  ;;  %v638_v23 = vmul.f32 %v5066_v17, %v5861_v60  ;;  %5083 = vrcp.f32 %v594_v32 }
 0x123   : > { %v5070_v24 = vpop.eup %5069  ;;  %v4849_v27 = vpack.c.bf16 %v636_v20, %v632_v19  ;;  %v637_v28 = vmul.f32 %v5068_v21, %v5863_v63  ;;  %5085 = vrcp.f32 %v593_v34  ;;  %v817_v21 = vstv %s4547_s20  ;;  %s4669_s20 = sld [smem:[#allocation2 + $0x183]] }
 0x124   : > { %v5072_v29 = vpop.eup %5071  ;;  %v4857_v31 = vpack.c.bf16 %v638_v23, %v634_v22  ;;  %v639_v45 = vmul.f32 %v5070_v24, %v5865_v2  ;;  %v825_v22 = vld [vmem:[%s6843_s2] sm:$0xff]  ;;  %v827_v23 = vstv %s4549_s26  ;;  %s4668_s26 = sld [smem:[#allocation2 + $0x103]] }
 0x125   : > { %v4847_v59 = vpack.c.bf16 %v637_v28, %v633_v26  ;;  %v5074_v33 = vpop.eup %5073  ;;  %v595_v46 = vadd.f32 1.0, %v5072_v29  ;;  %v821_v26 = vmul.f32 %v820_v16, %v5744_v0  ;;  %v826_v28 = vld [vmem:[%s6843_s2 + $0x8] sm:$0xff]  ;;  %v822_v29 = vmul.f32 %v820_v16, %v5749_v1 }
 0x126   : > { %v4855_v35 = vpack.c.bf16 %v639_v45, %v635_v30  ;;  %v640_v37 = vmul.f32 %v5074_v33, %v5871_v13  ;;  %v828_v45 = vmul.f32 %v827_v23, %v825_v22 }
 0x127   : > { %4848 = vmatprep.subr.bf16.mxu0 %v4847_v59  ;;  %5087 = vrcp.f32 %v595_v46  ;;  %v829_v59 = vmul.f32 %v827_v23, %v826_v28 }
 0x128   : > { %v5076_v60 = vpop.eup %5075  ;;  %4856 = vmatprep.subr.bf16.mxu1 %v4855_v35  ;;  %4850 = vmatpush1.bf16.msra.mxu0 %v4849_v27 }
 0x129   : > { %v5078_v49 = vpop.eup %5077  ;;  %v644_v63 = vmul.f32 %v5076_v60, %v5880_v25  ;;  %4858 = vmatpush1.bf16.msra.mxu1 %v4857_v31 }
 0x12a   : > { %v5080_v50 = vpop.eup %5079  ;;  %v598_v2 = vadd.f32 1.0, %v5078_v49 }
 0x12b   : > { %v5082_v38 = vpop.eup %5081  ;;  %v4853_v39 = vpack.c.bf16 %v644_v63, %v640_v37  ;;  %v597_v40 = vadd.f32 1.0, %v5080_v50 }
 0x12c   : > { %5089 = vrcp.f32 %v598_v2  ;;  %v599_v41 = vadd.f32 1.0, %v5082_v38  ;;  %v5084_v42 = vpop.eup %5083 }
 0x12d   : > { %5091 = vrcp.f32 %v597_v40  ;;  %v5086_v43 = vpop.eup %5085  ;;  %v642_v25 = vmul.f32 %v5084_v42, %v5873_v14 }
 0x12e   : > { %5093 = vrcp.f32 %v599_v41  ;;  %v641_v52 = vmul.f32 %v5086_v43, %v5875_v18  ;;  %v802_v18 = vstv %s4546_s17  ;;  %s4588_s17 = sld [smem:[#allocation2 + $0x201]] }
 0x131   : > { %v5088_v44 = vpop.eup %5087 }
 0x132   : > { %v643_v57 = vmul.f32 %v5088_v44, %v5883_v36  ;;  %v799_v36 = vstv %s794_s18  ;;  %s4667_s18 = sld [smem:[#allocation2 + $0x83]] }
 0x133   : > { %v800_v9 = vmul.f32 %v799_v36, %v5744_v0  ;;  %v801_v17 = vmul.f32 %v799_v36, %v5749_v1  ;;  %v840_v1 = vpop.permute.xlu0 %839 }
 0x136   : > { %v5090_v13 = vpop.eup %5089 }
 0x137   : > { %v5092_v47 = vpop.eup %5091  ;;  %v646_v48 = vmul.f32 %v5090_v13, %v5886_v53  ;;  %v5918_v53 = vld [vmem:[%s5915_s16] sm:$0xf] }
 0x138   : > { %v5094_v51 = vpop.eup %5093  ;;  %v645_v55 = vmul.f32 %v5092_v47, %v5888_v54 }
 0x139   : > { %v4861_v58 = vpack.c.bf16 %v646_v48, %v642_v25  ;;  %v647_v61 = vmul.f32 %v5094_v51, %v5890_v56 }
 0x13a   : > { %v4851_v62 = vpack.c.bf16 %v645_v55, %v641_v52 }
 0x13b   : > { %v4859_v14 = vpack.c.bf16 %v647_v61, %v643_v57  ;;  %v850_v57 = vpop.permute.xlu0 %849 }
 0x13c   : > { %4852 = vmatprep.subr.bf16.mxu0 %v4851_v62 }
 0x13d   : > { %4860 = vmatprep.subr.bf16.mxu1 %v4859_v14  ;;  %4854 = vmatpush1.bf16.msra.mxu0 %v4853_v39  ;;  %v845_v39 = vpop.permute.xlu1 %844 }
 0x13e   : > { %4862 = vmatpush1.bf16.msra.mxu1 %v4861_v58 }
 0x140   : > { %4544 = vmatmul.mubr.msk.f32.vlgmr.msra.gmra.mrb[8].mxu0 %vm648_vm2, %v5918_v53 }
 0x141   : > { %4545 = vmatmul.mubr.msk.f32.vlgmr.msra.gmra.mrb[8].mxu1 %vm648_vm2, %v5918_v53  ;;  %933 = vmatprep.mubr.f32.mxu0 %v5637_v4 }
 0x142   : > { %1022 = vmatprep.mubr.f32.mxu1 %v5637_v4 }
 0x213   : > { %v718_v54 = vpop.f32.mrb[8].mxu0 }
 0x214   : > { %v803_v56 = vmul.f32 %v802_v18, %v718_v54  ;;  %v789_v3 = vpop.f32.mrb[8].mxu1  ;;  %v720_v5 = vpop.f32.mrb[9].mxu0 }
 0x215   : > { %v805_v7 = vmul.f32 %v802_v18, %v789_v3  ;;  %v804_v10 = vmul.f32 %v802_v18, %v720_v5  ;;  %v791_v11 = vpop.f32.mrb[9].mxu1 }
 0x216   : > { %v806_v19 = vmul.f32 %v802_v18, %v791_v11 }
 0x217   : > { %v811_v20 = vcombine.low %v803_v56, %v804_v10 }
 0x218   : > { %v812_v24 = vcombine.low %v805_v7, %v806_v19 }
 0x219   : > { %v815_v27 = vsub.f32 %v800_v9, %v811_v20  ;;  %v855_v9 = vpop.permute.xlu1 %854 }
 0x21a   : > { %v816_v30 = vsub.f32 %v801_v17, %v812_v24 }
 0x21b   : > { %v818_v31 = vmul.f32 %v817_v21, %v815_v27 }
 0x21c   : > { %v819_v32 = vmul.f32 %v817_v21, %v816_v30 }
 0x21d   : > { %v823_v33 = vadd.f32 %v821_v26, %v818_v31 }
 0x21e   : > { %v824_v34 = vadd.f32 %v822_v29, %v819_v32 }
 0x21f   : > { %v5936_v35 = vadd.f32 %v828_v45, %v823_v33 }
 0x220   : > { %v5938_v46 = vadd.f32 %v829_v59, %v824_v34 }
 0x221   : > { %v859_v0 = vcombine.high %v5936_v35, %v5936_v35 }
 0x222   : > { %v860_v60 = vcombine.high %v5938_v46, %v5938_v46 }
 0x223   : > { %4554 = vmatprep.subr.msk.mxu0 %vm349_vm0, %v859_v0 }
 0x224   : > { %4560 = vmatprep.subr.msk.mxu1 %vm349_vm0, %v860_v60  ;;  %4555 = vmatpush1.msk.msra.mxu0 %vm349_vm0, %v5936_v35 }
 0x225   : > { %4561 = vmatpush1.msk.msra.mxu1 %vm349_vm0, %v5938_v46  ;;  %4556 = vmatmul.mubr.msk.f32.vlgmr.msra.gmra.mrb[10].mxu0 %vm336_vm1, %v5780_v6 }
 0x226   : > { %4562 = vmatmul.mubr.msk.f32.vlgmr.msra.gmra.mrb[10].mxu1 %vm336_vm1, %v5780_v6  ;;  %939 = vmatprep.mubr.f32.mxu0 %v5637_v4 }
 0x227   : > { %1028 = vmatprep.mubr.f32.mxu1 %v5637_v4 }
 0x229   : > { %4557 = vmatmul.mubr.msk.f32.gmra.mrb[12].mxu0 %vm336_vm1, %v5790_v8 }
 0x22a   : > { %4563 = vmatmul.mubr.msk.f32.gmra.mrb[12].mxu1 %vm336_vm1, %v5790_v8  ;;  %945 = vmatprep.mubr.f32.mxu0 %v5637_v4 }
 0x22b   : > { %1034 = vmatprep.mubr.f32.mxu1 %v5637_v4 }
 0x22d   : > { %4558 = vmatmul.mubr.msk.f32.gmra.mrb[14].mxu0 %vm336_vm1, %v5802_v12 }
 0x22e   : > { %4564 = vmatmul.mubr.msk.f32.gmra.mrb[14].mxu1 %vm336_vm1, %v5802_v12  ;;  %951 = vmatprep.mubr.f32.mxu0 %v5637_v4 }
 0x22f   : > { %1040 = vmatprep.mubr.f32.mxu1 %v5637_v4 }
 0x231   : > { %4559 = vmatmul.mubr.msk.f32.gmra.mrb[16].mxu0 %vm336_vm1, %v5813_v15 }
 0x232   : > { %4565 = vmatmul.mubr.msk.f32.gmra.mrb[16].mxu1 %vm336_vm1, %v5813_v15  ;;  %1223 = vmatprep.mubr.f32.mxu0 %v5637_v4 }
 0x233   : > { %1294 = vmatprep.mubr.f32.mxu1 %v5637_v4 }
 0x2f8   : > { %v935_v6 = vpop.f32.mrb[10].mxu0 }
 0x2f9   : > { %v5974_v8 = vadd.f32 %v935_v6, %v840_v1  ;;  %v1024_v49 = vpop.f32.mrb[10].mxu1  ;;  %v937_v12 = vpop.f32.mrb[11].mxu0 }
 0x2fa   : > { %v5976_v37 = vadd.f32 %v1024_v49, %v840_v1  ;;  %v5978_v63 = vadd.f32 %v937_v12, %v840_v1  ;;  %v1026_v50 = vpop.f32.mrb[11].mxu1 }
 0x2fb   : > { %v4566_v2 = vmul.f32 -1.442695, %v5974_v8  ;;  %v5981_v38 = vadd.f32 %v1026_v50, %v840_v1 }
 0x2fc   : > { %v4568_v40 = vmul.f32 -1.442695, %v5976_v37  ;;  %v4567_v41 = vmul.f32 -1.442695, %v5978_v63  ;;  %v941_v42 = vpop.f32.mrb[12].mxu0 }
 0x2fd   : > { %5095 = vpow2.f32 %v4566_v2  ;;  %v4569_v43 = vmul.f32 -1.442695, %v5981_v38  ;;  %v5986_v44 = vadd.f32 %v941_v42, %v845_v39  ;;  %v1030_v13 = vpop.f32.mrb[12].mxu1  ;;  %v943_v47 = vpop.f32.mrb[13].mxu0 }
 0x2fe   : > { %5097 = vpow2.f32 %v4568_v40  ;;  %v5988_v25 = vadd.f32 %v1030_v13, %v845_v39  ;;  %v5990_v48 = vadd.f32 %v943_v47, %v845_v39  ;;  %v1032_v51 = vpop.f32.mrb[13].mxu1 }
 0x2ff   : > { %5099 = vpow2.f32 %v4567_v41  ;;  %v4570_v52 = vmul.f32 -1.442695, %v5986_v44  ;;  %v5993_v55 = vadd.f32 %v1032_v51, %v845_v39 }
 0x300   : > { %5101 = vpow2.f32 %v4569_v43  ;;  %v4572_v58 = vmul.f32 -1.442695, %v5988_v25  ;;  %v4571_v61 = vmul.f32 -1.442695, %v5990_v48  ;;  %v947_v62 = vpop.f32.mrb[14].mxu0 }
 0x301   : > { %5103 = vpow2.f32 %v4570_v52  ;;  %v4573_v14 = vmul.f32 -1.442695, %v5993_v55  ;;  %v5998_v18 = vadd.f32 %v947_v62, %v850_v57  ;;  %v1036_v36 = vpop.f32.mrb[14].mxu1  ;;  %v949_v54 = vpop.f32.mrb[15].mxu0 }
 0x302   : > { %5105 = vpow2.f32 %v4572_v58  ;;  %v6000_v56 = vadd.f32 %v1036_v36, %v850_v57  ;;  %v6002_v3 = vadd.f32 %v949_v54, %v850_v57  ;;  %v1038_v5 = vpop.f32.mrb[15].mxu1 }
 0x303   : > { %5107 = vpow2.f32 %v4571_v61  ;;  %v4574_v7 = vmul.f32 -1.442695, %v5998_v18  ;;  %v6010_v31 = vadd.f32 %v1038_v5, %v850_v57 }
 0x304   : > { %5109 = vpow2.f32 %v4573_v14  ;;  %v4576_v10 = vmul.f32 -1.442695, %v6000_v56  ;;  %v4575_v11 = vmul.f32 -1.442695, %v6002_v3  ;;  %v953_v16 = vpop.f32.mrb[16].mxu0 }
 0x305   : > { %5111 = vpow2.f32 %v4574_v7  ;;  %v6007_v17 = vadd.f32 %v953_v16, %v855_v9  ;;  %v1042_v19 = vpop.f32.mrb[16].mxu1  ;;  %v955_v20 = vpop.f32.mrb[17].mxu0  ;;  %v4577_v6 = vmul.f32 -1.442695, %v6010_v31 }
 0x306   : > { %v1044_v21 = vpop.f32.mrb[17].mxu1  ;;  %5113 = vpow2.f32 %v4576_v10  ;;  %v6013_v50 = vadd.f32 %v1042_v19, %v855_v9  ;;  %v6015_v39 = vadd.f32 %v955_v20, %v855_v9 }
 0x307   : > { %v5096_v22 = vpop.eup %5095  ;;  %v4578_v23 = vmul.f32 -1.442695, %v6007_v17  ;;  %5115 = vpow2.f32 %v4575_v11  ;;  %v6017_v41 = vadd.f32 %v1044_v21, %v855_v9 }
 0x308   : > { %v5098_v24 = vpop.eup %5097  ;;  %v1095_v26 = vadd.f32 1.0, %v5096_v22  ;;  %v4580_v13 = vmul.f32 -1.442695, %v6013_v50  ;;  %v4579_v52 = vmul.f32 -1.442695, %v6015_v39 }
 0x309   : > { %v5100_v27 = vpop.eup %5099  ;;  %v1097_v28 = vadd.f32 1.0, %v5098_v24  ;;  %5117 = vpow2.f32 %v4578_v23  ;;  %v4581_v58 = vmul.f32 -1.442695, %v6017_v41 }
 0x30a   : > { %v5102_v29 = vpop.eup %5101  ;;  %5119 = vrcp.f32 %v1095_v26  ;;  %v1096_v30 = vadd.f32 1.0, %v5100_v27 }
 0x30b   : > { %v5104_v45 = vpop.eup %5103  ;;  %5121 = vrcp.f32 %v1097_v28  ;;  %v1098_v32 = vadd.f32 1.0, %v5102_v29 }
 0x30c   : > { %v5106_v59 = vpop.eup %5105  ;;  %5123 = vrcp.f32 %v1096_v30  ;;  %v1099_v33 = vadd.f32 1.0, %v5104_v45 }
 0x30d   : > { %v5108_v34 = vpop.eup %5107  ;;  %5125 = vrcp.f32 %v1098_v32  ;;  %v1101_v0 = vadd.f32 1.0, %v5106_v59 }
 0x30e   : > { %v5110_v60 = vpop.eup %5109  ;;  %5127 = vrcp.f32 %v1099_v33  ;;  %v1100_v1 = vadd.f32 1.0, %v5108_v34 }
 0x30f   : > { %v5112_v49 = vpop.eup %5111  ;;  %5129 = vrcp.f32 %v1101_v0  ;;  %v1102_v12 = vadd.f32 1.0, %v5110_v60 }
 0x310   : > { %5131 = vrcp.f32 %v1100_v1  ;;  %v1103_v2 = vadd.f32 1.0, %v5112_v49  ;;  %v5114_v40 = vpop.eup %5113 }
 0x311   : > { %5133 = vrcp.f32 %v1102_v12  ;;  %v5116_v42 = vpop.eup %5115  ;;  %v1105_v24 = vadd.f32 1.0, %v5114_v40 }
 0x312   : > { %5135 = vpow2.f32 %v4577_v6  ;;  %v1104_v27 = vadd.f32 1.0, %v5116_v42 }
 0x313   : > { %v5118_v43 = vpop.eup %5117  ;;  %5137 = vrcp.f32 %v1103_v2 }
 0x314   : > { %v5120_v47 = vpop.eup %5119  ;;  %v1107_v51 = vadd.f32 1.0, %v5118_v43 }
 0x315   : > { %v5122_v57 = vpop.eup %5121  ;;  %v1143_v54 = vmul.f32 %v5120_v47, %v5974_v8 }
 0x316   : > { %v5124_v61 = vpop.eup %5123  ;;  %5139 = vrcp.f32 %v1107_v51  ;;  %v1145_v9 = vmul.f32 %v5122_v57, %v5976_v37 }
 0x317   : > { %v5126_v62 = vpop.eup %5125  ;;  %5141 = vpow2.f32 %v4580_v13  ;;  %v1144_v16 = vmul.f32 %v5124_v61, %v5978_v63 }
 0x318   : > { %v5128_v14 = vpop.eup %5127  ;;  %5143 = vpow2.f32 %v4579_v52  ;;  %v1146_v22 = vmul.f32 %v5126_v62, %v5981_v38  ;;  %v1327_v62 = vstv %s4587_s14  ;;  %s4707_s14 = sld [smem:[#allocation2 + $0x4]] }
 0x319   : > { %v5130_v36 = vpop.eup %5129  ;;  %v1147_v5 = vmul.f32 %v5128_v14, %v5986_v44  ;;  %5145 = vpow2.f32 %v4581_v58  ;;  %v1324_v14 = vstv %s4586_s15  ;;  %s4710_s15 = sld [smem:[#allocation2 + $0x184]] }
 0x31a   : > { %v5132_v7 = vpop.eup %5131  ;;  %v1149_v10 = vmul.f32 %v5130_v36, %v5988_v25  ;;  %5147 = vrcp.f32 %v1105_v24  ;;  %v4589_v36 = vld [vmem:[%s6843_s2 + $0x10] sm:$0xff] }
 0x31b   : > { %v5134_v11 = vpop.eup %5133  ;;  %v4865_v19 = vpack.c.bf16 %v1147_v5, %v1143_v54  ;;  %v1148_v20 = vmul.f32 %v5132_v7, %v5990_v48  ;;  %5149 = vrcp.f32 %v1104_v27  ;;  %v1335_v54 = vstv %s4588_s17  ;;  %s4709_s17 = sld [smem:[#allocation2 + $0x104]] }
 0x31c   : > { %v5136_v21 = vpop.eup %5135  ;;  %v4873_v23 = vpack.c.bf16 %v1149_v10, %v1145_v9  ;;  %v1150_v8 = vmul.f32 %v5134_v11, %v5993_v55  ;;  %v4590_v10 = vld [vmem:[%s6843_s2 + $0x18] sm:$0xff] }
 0x31d   : > { %v4863_v44 = vpack.c.bf16 %v1148_v20, %v1144_v16  ;;  %v5138_v26 = vpop.eup %5137  ;;  %v1106_v37 = vadd.f32 1.0, %v5136_v21  ;;  %v1336_v20 = vmul.f32 %v4589_v36, %v1335_v54 }
 0x31e   : > { %v4871_v28 = vpack.c.bf16 %v1150_v8, %v1146_v22  ;;  %v1151_v29 = vmul.f32 %v5138_v26, %v5998_v18  ;;  %v1329_v22 = vmul.f32 %v1327_v62, %v5938_v46 }
 0x31f   : > { %4864 = vmatprep.subr.bf16.mxu0 %v4863_v44  ;;  %5151 = vrcp.f32 %v1106_v37  ;;  %v6087_v37 = vld [vmem:[%s5772_s9 + $0x10] sm:$0xff] }
 0x320   : > { %v5140_v25 = vpop.eup %5139  ;;  %4872 = vmatprep.subr.bf16.mxu1 %v4871_v28  ;;  %4866 = vmatpush1.bf16.msra.mxu0 %v4865_v19  ;;  %v1328_v19 = vmul.f32 %v1327_v62, %v5936_v35 }
 0x321   : > { %v5142_v63 = vpop.eup %5141  ;;  %v1155_v48 = vmul.f32 %v5140_v25, %v6007_v17  ;;  %4874 = vmatpush1.bf16.msra.mxu1 %v4873_v23  ;;  %v1337_v23 = vmul.f32 %v4590_v10, %v1335_v54  ;;  %v6098_v25 = vld [vmem:[%s5772_s9 + $0x18] sm:$0xff] }
 0x322   : > { %v5144_v38 = vpop.eup %5143  ;;  %v1109_v55 = vadd.f32 1.0, %v5142_v63  ;;  %v1348_v63 = vpop.permute.xlu0 %1347 }
 0x323   : > { %v5146_v30 = vpop.eup %5145  ;;  %v4869_v45 = vpack.c.bf16 %v1155_v48, %v1151_v29  ;;  %v1108_v32 = vadd.f32 1.0, %v5144_v38 }
 0x324   : > { %5153 = vrcp.f32 %v1109_v55  ;;  %v1110_v59 = vadd.f32 1.0, %v5146_v30  ;;  %v5148_v33 = vpop.eup %5147 }
 0x325   : > { %5155 = vrcp.f32 %v1108_v32  ;;  %v5150_v34 = vpop.eup %5149  ;;  %v1153_v1 = vmul.f32 %v5148_v33, %v6000_v56  ;;  %v1309_v56 = vstv %s4585_s12  ;;  %v1353_v33 = vpop.permute.xlu1 %1352  ;;  %s4629_s12 = sld [smem:[#allocation2 + $0x202]] }
 0x326   : > { %5157 = vrcp.f32 %v1110_v59  ;;  %v1152_v49 = vmul.f32 %v5150_v34, %v6002_v3 }
 0x329   : > { %v5152_v0 = vpop.eup %5151 }
 0x32a   : > { %v1154_v2 = vmul.f32 %v5152_v0, %v6010_v31 }
 0x32e   : > { %v5154_v60 = vpop.eup %5153 }
 0x32f   : > { %v5156_v18 = vpop.eup %5155  ;;  %v1157_v17 = vmul.f32 %v5154_v60, %v6013_v50 }
 0x330   : > { %v5158_v6 = vpop.eup %5157  ;;  %v1156_v12 = vmul.f32 %v5156_v18, %v6015_v39 }
 0x331   : > { %v4877_v40 = vpack.c.bf16 %v1157_v17, %v1153_v1  ;;  %v1158_v42 = vmul.f32 %v5158_v6, %v6017_v41  ;;  %v1306_v41 = vstv %s4584_s13  ;;  %s4708_s13 = sld [smem:[#allocation2 + $0x84]] }
 0x332   : > { %v4867_v43 = vpack.c.bf16 %v1156_v12, %v1152_v49  ;;  %v1307_v58 = vmul.f32 %v1306_v41, %v5936_v35  ;;  %v1308_v5 = vmul.f32 %v1306_v41, %v5938_v46  ;;  %v6069_v35 = vld [vmem:[%s5772_s9] sm:$0xff]  ;;  %v6078_v46 = vld [vmem:[%s5772_s9 + $0x8] sm:$0xff] }
 0x333   : > { %v4875_v13 = vpack.c.bf16 %v1158_v42, %v1154_v2 }
 0x334   : > { %4868 = vmatprep.subr.bf16.mxu0 %v4867_v43  ;;  %v1358_v43 = vpop.permute.xlu0 %1357 }
 0x335   : > { %4876 = vmatprep.subr.bf16.mxu1 %v4875_v13  ;;  %4870 = vmatpush1.bf16.msra.mxu0 %v4869_v45 }
 0x336   : > { %4878 = vmatpush1.bf16.msra.mxu1 %v4877_v40 }
 0x338   : > { %4582 = vmatmul.mubr.msk.f32.vlgmr.msra.gmra.mrb[18].mxu0 %vm648_vm2, %v5918_v53 }
 0x339   : > { %4583 = vmatmul.mubr.msk.f32.vlgmr.msra.gmra.mrb[18].mxu1 %vm648_vm2, %v5918_v53  ;;  %1441 = vmatprep.mubr.f32.mxu0 %v5637_v4 }
 0x33a   : > { %1530 = vmatprep.mubr.f32.mxu1 %v5637_v4 }
 0x40b   : > { %v1225_v3 = vpop.f32.mrb[18].mxu0 }
 0x40c   : > { %v1310_v31 = vmul.f32 %v1309_v56, %v1225_v3  ;;  %v1296_v50 = vpop.f32.mrb[18].mxu1  ;;  %v1227_v39 = vpop.f32.mrb[19].mxu0 }
 0x40d   : > { %v1312_v47 = vmul.f32 %v1309_v56, %v1296_v50  ;;  %v1311_v51 = vmul.f32 %v1309_v56, %v1227_v39  ;;  %v1298_v52 = vpop.f32.mrb[19].mxu1 }
 0x40e   : > { %v1313_v57 = vmul.f32 %v1309_v56, %v1298_v52 }
 0x40f   : > { %v1318_v61 = vcombine.low %v1310_v31, %v1311_v51 }
 0x410   : > { %v1319_v7 = vcombine.low %v1312_v47, %v1313_v57 }
 0x411   : > { %v1322_v9 = vsub.f32 %v1307_v58, %v1318_v61  ;;  %v1363_v58 = vpop.permute.xlu1 %1362 }
 0x412   : > { %v1323_v11 = vsub.f32 %v1308_v5, %v1319_v7 }
 0x413   : > { %v1325_v16 = vmul.f32 %v1324_v14, %v1322_v9 }
 0x414   : > { %v1326_v21 = vmul.f32 %v1324_v14, %v1323_v11 }
 0x415   : > { %v1330_v8 = vadd.f32 %v1328_v19, %v1325_v16 }
 0x416   : > { %v1331_v24 = vadd.f32 %v1329_v22, %v1326_v21 }
 0x417   : > { %v6054_v44 = vadd.f32 %v1336_v20, %v1330_v8 }
 0x418   : > { %v6056_v26 = vadd.f32 %v1337_v23, %v1331_v24 }
 0x419   : > { %v1367_v27 = vcombine.high %v6054_v44, %v6054_v44 }
 0x41a   : > { %v1368_v28 = vcombine.high %v6056_v26, %v6056_v26 }
 0x41b   : > { %4595 = vmatprep.subr.msk.mxu0 %vm349_vm0, %v1367_v27 }
 0x41c   : > { %4601 = vmatprep.subr.msk.mxu1 %vm349_vm0, %v1368_v28  ;;  %4596 = vmatpush1.msk.msra.mxu0 %vm349_vm0, %v6054_v44 }
 0x41d   : > { %4602 = vmatpush1.msk.msra.mxu1 %vm349_vm0, %v6056_v26  ;;  %4597 = vmatmul.mubr.msk.f32.vlgmr.msra.gmra.mrb[20].mxu0 %vm336_vm1, %v6069_v35 }
 0x41e   : > { %4603 = vmatmul.mubr.msk.f32.vlgmr.msra.gmra.mrb[20].mxu1 %vm336_vm1, %v6069_v35  ;;  %1447 = vmatprep.mubr.f32.mxu0 %v5637_v4 }
 0x41f   : > { %1536 = vmatprep.mubr.f32.mxu1 %v5637_v4 }
 0x421   : > { %4598 = vmatmul.mubr.msk.f32.gmra.mrb[22].mxu0 %vm336_vm1, %v6078_v46 }
 0x422   : > { %4604 = vmatmul.mubr.msk.f32.gmra.mrb[22].mxu1 %vm336_vm1, %v6078_v46  ;;  %1453 = vmatprep.mubr.f32.mxu0 %v5637_v4 }
 0x423   : > { %1542 = vmatprep.mubr.f32.mxu1 %v5637_v4 }
 0x425   : > { %4599 = vmatmul.mubr.msk.f32.gmra.mrb[24].mxu0 %vm336_vm1, %v6087_v37 }
 0x426   : > { %4605 = vmatmul.mubr.msk.f32.gmra.mrb[24].mxu1 %vm336_vm1, %v6087_v37  ;;  %1459 = vmatprep.mubr.f32.mxu0 %v5637_v4 }
 0x427   : > { %1548 = vmatprep.mubr.f32.mxu1 %v5637_v4 }
 0x429   : > { %4600 = vmatmul.mubr.msk.f32.gmra.mrb[26].mxu0 %vm336_vm1, %v5813_v15 }
 0x42a   : > { %4606 = vmatmul.mubr.msk.f32.gmra.mrb[26].mxu1 %vm336_vm1, %v6098_v25  ;;  %1731 = vmatprep.mubr.f32.mxu0 %v5637_v4 }
 0x42b   : > { %1802 = vmatprep.mubr.f32.mxu1 %v5637_v4 }
 0x4f0   : > { %v1443_v29 = vpop.f32.mrb[20].mxu0 }
 0x4f1   : > { %v6104_v48 = vadd.f32 %v1443_v29, %v1348_v63  ;;  %v1532_v38 = vpop.f32.mrb[20].mxu1  ;;  %v1445_v55 = vpop.f32.mrb[21].mxu0 }
 0x4f2   : > { %v6106_v30 = vadd.f32 %v1532_v38, %v1348_v63  ;;  %v6108_v45 = vadd.f32 %v1445_v55, %v1348_v63  ;;  %v1534_v15 = vpop.f32.mrb[21].mxu1 }
 0x4f3   : > { %v4607_v32 = vmul.f32 -1.442695, %v6104_v48  ;;  %v6111_v59 = vadd.f32 %v1534_v15, %v1348_v63 }
 0x4f4   : > { %v4609_v34 = vmul.f32 -1.442695, %v6106_v30  ;;  %v4608_v0 = vmul.f32 -1.442695, %v6108_v45  ;;  %v1449_v60 = vpop.f32.mrb[22].mxu0 }
 0x4f5   : > { %5159 = vpow2.f32 %v4607_v32  ;;  %v4610_v18 = vmul.f32 -1.442695, %v6111_v59  ;;  %v6116_v1 = vadd.f32 %v1449_v60, %v1353_v33  ;;  %v1538_v17 = vpop.f32.mrb[22].mxu1  ;;  %v1451_v6 = vpop.f32.mrb[23].mxu0 }
 0x4f6   : > { %5161 = vpow2.f32 %v4609_v34  ;;  %v6118_v49 = vadd.f32 %v1538_v17, %v1353_v33  ;;  %v6120_v12 = vadd.f32 %v1451_v6, %v1353_v33  ;;  %v1540_v2 = vpop.f32.mrb[23].mxu1 }
 0x4f7   : > { %5163 = vpow2.f32 %v4608_v0  ;;  %v4611_v40 = vmul.f32 -1.442695, %v6116_v1  ;;  %v6123_v42 = vadd.f32 %v1540_v2, %v1353_v33 }
 0x4f8   : > { %5165 = vpow2.f32 %v4610_v18  ;;  %v4613_v13 = vmul.f32 -1.442695, %v6118_v49  ;;  %v4612_v56 = vmul.f32 -1.442695, %v6120_v12  ;;  %v1455_v3 = vpop.f32.mrb[24].mxu0 }
 0x4f9   : > { %5167 = vpow2.f32 %v4611_v40  ;;  %v4614_v31 = vmul.f32 -1.442695, %v6123_v42  ;;  %v6128_v50 = vadd.f32 %v1455_v3, %v1358_v43  ;;  %v1544_v39 = vpop.f32.mrb[24].mxu1  ;;  %v1457_v41 = vpop.f32.mrb[25].mxu0 }
 0x4fa   : > { %5169 = vpow2.f32 %v4613_v13  ;;  %v6130_v47 = vadd.f32 %v1544_v39, %v1358_v43  ;;  %v6132_v51 = vadd.f32 %v1457_v41, %v1358_v43  ;;  %v1546_v52 = vpop.f32.mrb[25].mxu1 }
 0x4fb   : > { %5171 = vpow2.f32 %v4612_v56  ;;  %v4615_v57 = vmul.f32 -1.442695, %v6128_v50  ;;  %v6140_v23 = vadd.f32 %v1546_v52, %v1358_v43 }
 0x4fc   : > { %5173 = vpow2.f32 %v4614_v31  ;;  %v4617_v61 = vmul.f32 -1.442695, %v6130_v47  ;;  %v4616_v62 = vmul.f32 -1.442695, %v6132_v51  ;;  %v1461_v14 = vpop.f32.mrb[26].mxu0 }
 0x4fd   : > { %5175 = vpow2.f32 %v4615_v57  ;;  %v6137_v36 = vadd.f32 %v1461_v14, %v1363_v58  ;;  %v1550_v54 = vpop.f32.mrb[26].mxu1  ;;  %v1463_v5 = vpop.f32.mrb[27].mxu0  ;;  %v4618_v15 = vmul.f32 -1.442695, %v6140_v23 }
 0x4fe   : > { %v1552_v7 = vpop.f32.mrb[27].mxu1  ;;  %5177 = vpow2.f32 %v4617_v61  ;;  %v6143_v34 = vadd.f32 %v1550_v54, %v1363_v58  ;;  %v6145_v60 = vadd.f32 %v1463_v5, %v1363_v58 }
 0x4ff   : > { %v5160_v9 = vpop.eup %5159  ;;  %v4619_v10 = vmul.f32 -1.442695, %v6137_v36  ;;  %5179 = vpow2.f32 %v4616_v62  ;;  %v6147_v17 = vadd.f32 %v1552_v7, %v1363_v58 }
 0x500   : > { %v5162_v11 = vpop.eup %5161  ;;  %v1603_v16 = vadd.f32 1.0, %v5160_v9  ;;  %v4621_v40 = vmul.f32 -1.442695, %v6143_v34  ;;  %v4620_v56 = vmul.f32 -1.442695, %v6145_v60 }
 0x501   : > { %v5164_v19 = vpop.eup %5163  ;;  %v1605_v20 = vadd.f32 1.0, %v5162_v11  ;;  %5181 = vpow2.f32 %v4619_v10  ;;  %v4622_v31 = vmul.f32 -1.442695, %v6147_v17 }
 0x502   : > { %v5166_v21 = vpop.eup %5165  ;;  %5183 = vrcp.f32 %v1603_v16  ;;  %v1604_v22 = vadd.f32 1.0, %v5164_v19 }
 0x503   : > { %v5168_v8 = vpop.eup %5167  ;;  %5185 = vrcp.f32 %v1605_v20  ;;  %v1606_v24 = vadd.f32 1.0, %v5166_v21 }
 0x504   : > { %v5170_v27 = vpop.eup %5169  ;;  %5187 = vrcp.f32 %v1604_v22  ;;  %v1607_v28 = vadd.f32 1.0, %v5168_v8 }
 0x505   : > { %v5172_v63 = vpop.eup %5171  ;;  %5189 = vrcp.f32 %v1606_v24  ;;  %v1609_v29 = vadd.f32 1.0, %v5170_v27 }
 0x506   : > { %v5174_v38 = vpop.eup %5173  ;;  %5191 = vrcp.f32 %v1607_v28  ;;  %v1608_v55 = vadd.f32 1.0, %v5172_v63 }
 0x507   : > { %v5176_v32 = vpop.eup %5175  ;;  %5193 = vrcp.f32 %v1609_v29  ;;  %v1610_v33 = vadd.f32 1.0, %v5174_v38 }
 0x508   : > { %5195 = vrcp.f32 %v1608_v55  ;;  %v1611_v0 = vadd.f32 1.0, %v5176_v32  ;;  %v5178_v18 = vpop.eup %5177 }
 0x509   : > { %5197 = vrcp.f32 %v1610_v33  ;;  %v5180_v6 = vpop.eup %5179  ;;  %v1613_v20 = vadd.f32 1.0, %v5178_v18 }
 0x50a   : > { %5199 = vpow2.f32 %v4618_v15  ;;  %v1612_v22 = vadd.f32 1.0, %v5180_v6 }
 0x50b   : > { %v5182_v2 = vpop.eup %5181  ;;  %5201 = vrcp.f32 %v1611_v0 }
 0x50c   : > { %v5184_v43 = vpop.eup %5183  ;;  %v1615_v13 = vadd.f32 1.0, %v5182_v2 }
 0x50d   : > { %v5186_v3 = vpop.eup %5185  ;;  %v1651_v58 = vmul.f32 %v5184_v43, %v6104_v48 }
 0x50e   : > { %v5188_v39 = vpop.eup %5187  ;;  %5203 = vrcp.f32 %v1615_v13  ;;  %v1653_v14 = vmul.f32 %v5186_v3, %v6106_v30 }
 0x50f   : > { %v5190_v41 = vpop.eup %5189  ;;  %5205 = vpow2.f32 %v4621_v40  ;;  %v1652_v7 = vmul.f32 %v5188_v39, %v6108_v45 }
 0x510   : > { %v5192_v52 = vpop.eup %5191  ;;  %5207 = vpow2.f32 %v4620_v56  ;;  %v1654_v16 = vmul.f32 %v5190_v41, %v6111_v59 }
 0x511   : > { %v5194_v57 = vpop.eup %5193  ;;  %v1655_v61 = vmul.f32 %v5192_v52, %v6116_v1  ;;  %5209 = vpow2.f32 %v4622_v31 }
 0x512   : > { %v5196_v62 = vpop.eup %5195  ;;  %v1657_v54 = vmul.f32 %v5194_v57, %v6118_v49  ;;  %5211 = vrcp.f32 %v1613_v20  ;;  %v1835_v57 = vstv %s4628_s10  ;;  %s4751_s10 = sld [smem:[#allocation2 + $0x185]] }
 0x513   : > { %v5198_v5 = vpop.eup %5197  ;;  %v4881_v9 = vpack.c.bf16 %v1655_v61, %v1651_v58  ;;  %v1656_v10 = vmul.f32 %v5196_v62, %v6120_v12  ;;  %5213 = vrcp.f32 %v1612_v22  ;;  %v1832_v58 = vstv %s4627_s11  ;;  %v4630_v61 = vld [vmem:[%s6843_s2 + $0x20] sm:$0xff]  ;;  %s4750_s11 = sld [smem:[#allocation2 + $0x105]] }
 0x514   : > { %v5200_v11 = vpop.eup %5199  ;;  %v4889_v19 = vpack.c.bf16 %v1657_v54, %v1653_v14  ;;  %v1658_v48 = vmul.f32 %v5198_v5, %v6123_v42  ;;  %v1843_v62 = vstv %s4629_s12  ;;  %s4752_s12 = sld [smem:[#allocation2 + $0x205]] }
 0x515   : > { %v4879_v1 = vpack.c.bf16 %v1656_v10, %v1652_v7  ;;  %v5202_v21 = vpop.eup %5201  ;;  %v1614_v30 = vadd.f32 1.0, %v5200_v11  ;;  %v4631_v7 = vld [vmem:[%s6843_s2 + $0x28] sm:$0xff]  ;;  %v1836_v11 = vmul.f32 %v1835_v57, %v6054_v44 }
 0x516   : > { %v4887_v8 = vpack.c.bf16 %v1658_v48, %v1654_v16  ;;  %v1659_v24 = vmul.f32 %v5202_v21, %v6128_v50  ;;  %v1844_v16 = vmul.f32 %v4630_v61, %v1843_v62  ;;  %v1837_v48 = vmul.f32 %v1835_v57, %v6056_v26 }
 0x517   : > { %4880 = vmatprep.subr.bf16.mxu0 %v4879_v1  ;;  %5215 = vrcp.f32 %v1614_v30  ;;  %v1845_v20 = vmul.f32 %v4631_v7, %v1843_v62 }
 0x518   : > { %v5204_v49 = vpop.eup %5203  ;;  %4888 = vmatprep.subr.bf16.mxu1 %v4887_v8  ;;  %4882 = vmatpush1.bf16.msra.mxu0 %v4881_v9 }
 0x519   : > { %v5206_v45 = vpop.eup %5205  ;;  %v1663_v12 = vmul.f32 %v5204_v49, %v6137_v36  ;;  %4890 = vmatpush1.bf16.msra.mxu1 %v4889_v19 }
 0x51a   : > { %v5208_v59 = vpop.eup %5207  ;;  %v1617_v42 = vadd.f32 1.0, %v5206_v45 }
 0x51b   : > { %v5210_v27 = vpop.eup %5209  ;;  %v4885_v28 = vpack.c.bf16 %v1663_v12, %v1659_v24  ;;  %v1616_v63 = vadd.f32 1.0, %v5208_v59 }
 0x51c   : > { %5217 = vrcp.f32 %v1617_v42  ;;  %v1618_v29 = vadd.f32 1.0, %v5210_v27  ;;  %v5212_v38 = vpop.eup %5211 }
 0x51d   : > { %5219 = vrcp.f32 %v1616_v63  ;;  %v5214_v55 = vpop.eup %5213  ;;  %v1661_v33 = vmul.f32 %v5212_v38, %v6130_v47  ;;  %v1817_v47 = vstv %s4626_s28  ;;  %s4670_s28 = sld [smem:[#allocation2 + $0x203]] }
 0x51e   : > { %5221 = vrcp.f32 %v1618_v29  ;;  %v1660_v18 = vmul.f32 %v5214_v55, %v6132_v51  ;;  %v1861_v29 = vpop.permute.xlu1 %1860 }
 0x521   : > { %v5216_v15 = vpop.eup %5215 }
 0x522   : > { %v1662_v2 = vmul.f32 %v5216_v15, %v6140_v23 }
 0x526   : > { %v5218_v32 = vpop.eup %5217 }
 0x527   : > { %v5220_v50 = vpop.eup %5219  ;;  %v1665_v36 = vmul.f32 %v5218_v32, %v6143_v34 }
 0x528   : > { %v5222_v0 = vpop.eup %5221  ;;  %v1664_v6 = vmul.f32 %v5220_v50, %v6145_v60 }
 0x529   : > { %v4893_v40 = vpack.c.bf16 %v1665_v36, %v1661_v33  ;;  %v1666_v43 = vmul.f32 %v5222_v0, %v6147_v17  ;;  %v1814_v17 = vstv %s4625_s29  ;;  %s4748_s29 = sld [smem:[#allocation2 + $0x5]] }
 0x52a   : > { %v4883_v13 = vpack.c.bf16 %v1664_v6, %v1660_v18  ;;  %v1816_v14 = vmul.f32 %v1814_v17, %v6056_v26 }
 0x52b   : > { %v4891_v56 = vpack.c.bf16 %v1666_v43, %v1662_v2 }
 0x52c   : > { %4884 = vmatprep.subr.bf16.mxu0 %v4883_v13 }
 0x52d   : > { %4892 = vmatprep.subr.bf16.mxu1 %v4891_v56  ;;  %4886 = vmatpush1.bf16.msra.mxu0 %v4885_v28 }
 0x52e   : > { %4894 = vmatpush1.bf16.msra.mxu1 %v4893_v40 }
 0x530   : > { %4623 = vmatmul.mubr.msk.f32.vlgmr.msra.gmra.mrb[28].mxu0 %vm648_vm2, %v5918_v53 }
 0x531   : > { %4624 = vmatmul.mubr.msk.f32.vlgmr.msra.gmra.mrb[28].mxu1 %vm648_vm2, %v5918_v53  ;;  %1949 = vmatprep.mubr.f32.mxu0 %v5637_v4  ;;  %v1815_v53 = vmul.f32 %v1814_v17, %v6054_v44  ;;  %v1856_v44 = vpop.permute.xlu0 %1855 }
 0x532   : > { %2038 = vmatprep.mubr.f32.mxu1 %v5637_v4 }
 0x535   : > { %v1866_v43 = vpop.permute.xlu0 %1865 }
 0x603   : > { %v1733_v51 = vpop.f32.mrb[28].mxu0 }
 0x604   : > { %v1818_v23 = vmul.f32 %v1817_v47, %v1733_v51  ;;  %v1804_v34 = vpop.f32.mrb[28].mxu1  ;;  %v1735_v60 = vpop.f32.mrb[29].mxu0 }
 0x605   : > { %v1820_v3 = vmul.f32 %v1817_v47, %v1804_v34  ;;  %v1819_v31 = vmul.f32 %v1817_v47, %v1735_v60  ;;  %v1806_v39 = vpop.f32.mrb[29].mxu1 }
 0x606   : > { %v1821_v41 = vmul.f32 %v1817_v47, %v1806_v39 }
 0x607   : > { %v1826_v52 = vcombine.low %v1818_v23, %v1819_v31 }
 0x608   : > { %v1827_v54 = vcombine.low %v1820_v3, %v1821_v41  ;;  %v1871_v41 = vpop.permute.xlu1 %1870 }
 0x609   : > { %v1830_v5 = vsub.f32 %v1815_v53, %v1826_v52 }
 0x60a   : > { %v1831_v9 = vsub.f32 %v1816_v14, %v1827_v54 }
 0x60b   : > { %v1833_v10 = vmul.f32 %v1832_v58, %v1830_v5 }
 0x60c   : > { %v1834_v19 = vmul.f32 %v1832_v58, %v1831_v9 }
 0x60d   : > { %v1838_v1 = vadd.f32 %v1836_v11, %v1833_v10 }
 0x60e   : > { %v1839_v21 = vadd.f32 %v1837_v48, %v1834_v19 }
 0x60f   : > { %v6184_v22 = vadd.f32 %v1844_v16, %v1838_v1 }
 0x610   : > { %v6186_v8 = vadd.f32 %v1845_v20, %v1839_v21 }
 0x611   : > { %v1875_v30 = vcombine.high %v6184_v22, %v6184_v22 }
 0x612   : > { %v1876_v49 = vcombine.high %v6186_v8, %v6186_v8 }
 0x613   : > { %4636 = vmatprep.subr.msk.mxu0 %vm349_vm0, %v1875_v30 }
 0x614   : > { %4642 = vmatprep.subr.msk.mxu1 %vm349_vm0, %v1876_v49  ;;  %4637 = vmatpush1.msk.msra.mxu0 %vm349_vm0, %v6184_v22 }
 0x615   : > { %4643 = vmatpush1.msk.msra.mxu1 %vm349_vm0, %v6186_v8  ;;  %4638 = vmatmul.mubr.msk.f32.vlgmr.msra.gmra.mrb[30].mxu0 %vm336_vm1, %v6069_v35 }
 0x616   : > { %4644 = vmatmul.mubr.msk.f32.vlgmr.msra.gmra.mrb[30].mxu1 %vm336_vm1, %v6069_v35  ;;  %1955 = vmatprep.mubr.f32.mxu0 %v5637_v4 }
 0x617   : > { %2044 = vmatprep.mubr.f32.mxu1 %v5637_v4 }
 0x619   : > { %4639 = vmatmul.mubr.msk.f32.gmra.mrb[32].mxu0 %vm336_vm1, %v6078_v46 }
 0x61a   : > { %4645 = vmatmul.mubr.msk.f32.gmra.mrb[32].mxu1 %vm336_vm1, %v6078_v46  ;;  %1961 = vmatprep.mubr.f32.mxu0 %v5637_v4 }
 0x61b   : > { %2050 = vmatprep.mubr.f32.mxu1 %v5637_v4 }
 0x61d   : > { %4640 = vmatmul.mubr.msk.f32.gmra.mrb[34].mxu0 %vm336_vm1, %v6087_v37 }
 0x61e   : > { %4646 = vmatmul.mubr.msk.f32.gmra.mrb[34].mxu1 %vm336_vm1, %v6087_v37  ;;  %1967 = vmatprep.mubr.f32.mxu0 %v5637_v4 }
 0x61f   : > { %2056 = vmatprep.mubr.f32.mxu1 %v5637_v4 }
 0x621   : > { %4641 = vmatmul.mubr.msk.f32.gmra.mrb[36].mxu0 %vm336_vm1, %v6098_v25 }
 0x622   : > { %4647 = vmatmul.mubr.msk.f32.gmra.mrb[36].mxu1 %vm336_vm1, %v6098_v25  ;;  %2239 = vmatprep.mubr.f32.mxu0 %v5637_v4 }
 0x623   : > { %2310 = vmatprep.mubr.f32.mxu1 %v5637_v4 }
 0x6e8   : > { %v1951_v26 = vpop.f32.mrb[30].mxu0 }
 0x6e9   : > { %v6222_v45 = vadd.f32 %v1951_v26, %v1856_v44  ;;  %v2040_v24 = vpop.f32.mrb[30].mxu1  ;;  %v1953_v12 = vpop.f32.mrb[31].mxu0 }
 0x6ea   : > { %v6224_v59 = vadd.f32 %v2040_v24, %v1856_v44  ;;  %v6226_v42 = vadd.f32 %v1953_v12, %v1856_v44  ;;  %v2042_v27 = vpop.f32.mrb[31].mxu1 }
 0x6eb   : > { %v4648_v28 = vmul.f32 -1.442695, %v6222_v45  ;;  %v6229_v63 = vadd.f32 %v2042_v27, %v1856_v44 }
 0x6ec   : > { %v4650_v38 = vmul.f32 -1.442695, %v6224_v59  ;;  %v4649_v55 = vmul.f32 -1.442695, %v6226_v42  ;;  %v1957_v15 = vpop.f32.mrb[32].mxu0 }
 0x6ed   : > { %5223 = vpow2.f32 %v4648_v28  ;;  %v4651_v32 = vmul.f32 -1.442695, %v6229_v63  ;;  %v6234_v50 = vadd.f32 %v1957_v15, %v1861_v29  ;;  %v2046_v33 = vpop.f32.mrb[32].mxu1  ;;  %v1959_v36 = vpop.f32.mrb[33].mxu0 }
 0x6ee   : > { %5225 = vpow2.f32 %v4650_v38  ;;  %v6236_v0 = vadd.f32 %v2046_v33, %v1861_v29  ;;  %v6238_v18 = vadd.f32 %v1959_v36, %v1861_v29  ;;  %v2048_v6 = vpop.f32.mrb[33].mxu1 }
 0x6ef   : > { %5227 = vpow2.f32 %v4649_v55  ;;  %v4652_v2 = vmul.f32 -1.442695, %v6234_v50  ;;  %v6241_v40 = vadd.f32 %v2048_v6, %v1861_v29 }
 0x6f0   : > { %5229 = vpow2.f32 %v4651_v32  ;;  %v4654_v13 = vmul.f32 -1.442695, %v6236_v0  ;;  %v4653_v56 = vmul.f32 -1.442695, %v6238_v18  ;;  %v1963_v47 = vpop.f32.mrb[34].mxu0 }
 0x6f1   : > { %5231 = vpow2.f32 %v4652_v2  ;;  %v4655_v51 = vmul.f32 -1.442695, %v6241_v40  ;;  %v6246_v23 = vadd.f32 %v1963_v47, %v1866_v43  ;;  %v2052_v34 = vpop.f32.mrb[34].mxu1  ;;  %v1965_v60 = vpop.f32.mrb[35].mxu0 }
 0x6f2   : > { %5233 = vpow2.f32 %v4654_v13  ;;  %v6248_v17 = vadd.f32 %v2052_v34, %v1866_v43  ;;  %v6250_v3 = vadd.f32 %v1965_v60, %v1866_v43  ;;  %v2054_v31 = vpop.f32.mrb[35].mxu1 }
 0x6f3   : > { %5235 = vpow2.f32 %v4653_v56  ;;  %v4656_v39 = vmul.f32 -1.442695, %v6246_v23  ;;  %v6258_v48 = vadd.f32 %v2054_v31, %v1866_v43 }
 0x6f4   : > { %5237 = vpow2.f32 %v4655_v51  ;;  %v4658_v53 = vmul.f32 -1.442695, %v6248_v17  ;;  %v4657_v52 = vmul.f32 -1.442695, %v6250_v3  ;;  %v1969_v57 = vpop.f32.mrb[36].mxu0 }
 0x6f5   : > { %5239 = vpow2.f32 %v4656_v39  ;;  %v6255_v58 = vadd.f32 %v1969_v57, %v1871_v41  ;;  %v2058_v61 = vpop.f32.mrb[36].mxu1  ;;  %v1971_v62 = vpop.f32.mrb[37].mxu0  ;;  %v4659_v12 = vmul.f32 -1.442695, %v6258_v48 }
 0x6f6   : > { %v2060_v14 = vpop.f32.mrb[37].mxu1  ;;  %5241 = vpow2.f32 %v4658_v53  ;;  %v6261_v29 = vadd.f32 %v2058_v61, %v1871_v41  ;;  %v6263_v55 = vadd.f32 %v1971_v62, %v1871_v41 }
 0x6f7   : > { %v5224_v54 = vpop.eup %5223  ;;  %v4660_v5 = vmul.f32 -1.442695, %v6255_v58  ;;  %5243 = vpow2.f32 %v4657_v52  ;;  %v6265_v32 = vadd.f32 %v2060_v14, %v1871_v41 }
 0x6f8   : > { %v5226_v7 = vpop.eup %5225  ;;  %v2111_v9 = vadd.f32 1.0, %v5224_v54  ;;  %v4662_v6 = vmul.f32 -1.442695, %v6261_v29  ;;  %v4661_v13 = vmul.f32 -1.442695, %v6263_v55 }
 0x6f9   : > { %v5228_v10 = vpop.eup %5227  ;;  %v2113_v11 = vadd.f32 1.0, %v5226_v7  ;;  %5245 = vpow2.f32 %v4660_v5  ;;  %v4663_v47 = vmul.f32 -1.442695, %v6265_v32 }
 0x6fa   : > { %v5230_v16 = vpop.eup %5229  ;;  %5247 = vrcp.f32 %v2111_v9  ;;  %v2112_v19 = vadd.f32 1.0, %v5228_v10 }
 0x6fb   : > { %v5232_v20 = vpop.eup %5231  ;;  %5249 = vrcp.f32 %v2113_v11  ;;  %v2114_v1 = vadd.f32 1.0, %v5230_v16 }
 0x6fc   : > { %v5234_v21 = vpop.eup %5233  ;;  %5251 = vrcp.f32 %v2112_v19  ;;  %v2115_v30 = vadd.f32 1.0, %v5232_v20 }
 0x6fd   : > { %v5236_v49 = vpop.eup %5235  ;;  %5253 = vrcp.f32 %v2114_v1  ;;  %v2117_v44 = vadd.f32 1.0, %v5234_v21 }
 0x6fe   : > { %v5238_v26 = vpop.eup %5237  ;;  %5255 = vrcp.f32 %v2115_v30  ;;  %v2116_v24 = vadd.f32 1.0, %v5236_v49 }
 0x6ff   : > { %v5240_v27 = vpop.eup %5239  ;;  %5257 = vrcp.f32 %v2117_v44  ;;  %v2118_v28 = vadd.f32 1.0, %v5238_v26 }
 0x700   : > { %5259 = vrcp.f32 %v2116_v24  ;;  %v2119_v38 = vadd.f32 1.0, %v5240_v27  ;;  %v5242_v15 = vpop.eup %5241 }
 0x701   : > { %5261 = vrcp.f32 %v2118_v28  ;;  %v5244_v33 = vpop.eup %5243  ;;  %v2121_v10 = vadd.f32 1.0, %v5242_v15 }
 0x702   : > { %5263 = vpow2.f32 %v4659_v12  ;;  %v2120_v16 = vadd.f32 1.0, %v5244_v33 }
 0x703   : > { %v5246_v36 = vpop.eup %5245  ;;  %5265 = vrcp.f32 %v2119_v38 }
 0x704   : > { %v5248_v2 = vpop.eup %5247  ;;  %v2123_v43 = vadd.f32 1.0, %v5246_v36 }
 0x705   : > { %v5250_v56 = vpop.eup %5249  ;;  %v2159_v39 = vmul.f32 %v5248_v2, %v6222_v45 }
 0x706   : > { %v5252_v51 = vpop.eup %5251  ;;  %5267 = vrcp.f32 %v2123_v43  ;;  %v2161_v52 = vmul.f32 %v5250_v56, %v6224_v59 }
 0x707   : > { %v5254_v34 = vpop.eup %5253  ;;  %5269 = vpow2.f32 %v4662_v6  ;;  %v2160_v62 = vmul.f32 %v5252_v51, %v6226_v42 }
 0x708   : > { %v5256_v60 = vpop.eup %5255  ;;  %5271 = vpow2.f32 %v4661_v13  ;;  %v2162_v7 = vmul.f32 %v5254_v34, %v6229_v63  ;;  %v6287_v13 = vld [vmem:[%s5915_s16] sm:$0xf] }
 0x709   : > { %v5258_v31 = vpop.eup %5257  ;;  %v2163_v41 = vmul.f32 %v5256_v60, %v6234_v50  ;;  %5273 = vpow2.f32 %v4663_v47 }
 0x70a   : > { %v5260_v53 = vpop.eup %5259  ;;  %v2165_v57 = vmul.f32 %v5258_v31, %v6236_v0  ;;  %5275 = vrcp.f32 %v2121_v10 }
 0x70b   : > { %v5262_v61 = vpop.eup %5261  ;;  %v4897_v14 = vpack.c.bf16 %v2163_v41, %v2159_v39  ;;  %v2164_v54 = vmul.f32 %v5260_v53, %v6238_v18  ;;  %5277 = vrcp.f32 %v2120_v16  ;;  %v2343_v39 = vstv %s4669_s20  ;;  %v4671_v53 = vld [vmem:[%s6843_s2 + $0x30] sm:$0xff]  ;;  %s4792_s20 = sld [smem:[#allocation2 + $0x186]] }
 0x70c   : > { %v5264_v5 = vpop.eup %5263  ;;  %v4905_v9 = vpack.c.bf16 %v2165_v57, %v2161_v52  ;;  %v2166_v45 = vmul.f32 %v5262_v61, %v6241_v40  ;;  %v2340_v41 = vstv %s4668_s26  ;;  %v2351_v52 = vstv %s4670_s28  ;;  %s4791_s26 = sld [smem:[#allocation2 + $0x106]] }
 0x70d   : > { %v4895_v50 = vpack.c.bf16 %v2164_v54, %v2160_v62  ;;  %v5266_v11 = vpop.eup %5265  ;;  %v2122_v59 = vadd.f32 1.0, %v5264_v5  ;;  %v2345_v10 = vmul.f32 %v2343_v39, %v6186_v8  ;;  %s4793_s28 = sld [smem:[#allocation2 + $0x206]] }
 0x70e   : > { %v4903_v19 = vpack.c.bf16 %v2166_v45, %v2162_v7  ;;  %v2167_v20 = vmul.f32 %v5266_v11, %v6246_v23  ;;  %v2344_v7 = vmul.f32 %v2343_v39, %v6184_v22 }
 0x70f   : > { %4896 = vmatprep.subr.bf16.mxu0 %v4895_v50  ;;  %5279 = vrcp.f32 %v2122_v59 }
 0x710   : > { %v5268_v0 = vpop.eup %5267  ;;  %4904 = vmatprep.subr.bf16.mxu1 %v4903_v19  ;;  %4898 = vmatpush1.bf16.msra.mxu0 %v4897_v14  ;;  %v4672_v14 = vld [vmem:[%s6843_s2 + $0x38] sm:$0xff] }
 0x711   : > { %v5270_v42 = vpop.eup %5269  ;;  %v2171_v18 = vmul.f32 %v5268_v0, %v6255_v58  ;;  %4906 = vmatpush1.bf16.msra.mxu1 %v4905_v9  ;;  %v2352_v9 = vmul.f32 %v4671_v53, %v2351_v52  ;;  %v2353_v50 = vmul.f32 %v4672_v14, %v2351_v52 }
 0x712   : > { %v5272_v63 = vpop.eup %5271  ;;  %v2125_v40 = vadd.f32 1.0, %v5270_v42 }
 0x713   : > { %v5274_v1 = vpop.eup %5273  ;;  %v4901_v21 = vpack.c.bf16 %v2171_v18, %v2167_v20  ;;  %v2124_v30 = vadd.f32 1.0, %v5272_v63 }
 0x714   : > { %5281 = vrcp.f32 %v2125_v40  ;;  %v2126_v49 = vadd.f32 1.0, %v5274_v1  ;;  %v5276_v44 = vpop.eup %5275 }
 0x715   : > { %5283 = vrcp.f32 %v2124_v30  ;;  %v5278_v26 = vpop.eup %5277  ;;  %v2169_v58 = vmul.f32 %v5276_v44, %v6248_v17  ;;  %v2325_v17 = vstv %s4667_s18  ;;  %s4711_s18 = sld [smem:[#allocation2 + $0x204]] }
 0x716   : > { %5285 = vrcp.f32 %v2126_v49  ;;  %v2168_v38 = vmul.f32 %v5278_v26, %v6250_v3 }
 0x719   : > { %v5280_v24 = vpop.eup %5279 }
 0x71a   : > { %v2170_v33 = vmul.f32 %v5280_v24, %v6258_v48 }
 0x71e   : > { %v5282_v12 = vpop.eup %5281 }
 0x71f   : > { %v5284_v23 = vpop.eup %5283  ;;  %v2173_v27 = vmul.f32 %v5282_v12, %v6261_v29 }
 0x720   : > { %v5286_v28 = vpop.eup %5285  ;;  %v2172_v15 = vmul.f32 %v5284_v23, %v6263_v55 }
 0x721   : > { %v4909_v36 = vpack.c.bf16 %v2173_v27, %v2169_v58  ;;  %v2174_v6 = vmul.f32 %v5286_v28, %v6265_v32  ;;  %v2322_v32 = vstv %s4666_s19  ;;  %s4789_s19 = sld [smem:[#allocation2 + $0x6]] }
 0x722   : > { %v4899_v2 = vpack.c.bf16 %v2172_v15, %v2168_v38  ;;  %v2323_v60 = vmul.f32 %v2322_v32, %v6184_v22  ;;  %v2324_v57 = vmul.f32 %v2322_v32, %v6186_v8 }
 0x723   : > { %v4907_v43 = vpack.c.bf16 %v2174_v6, %v2170_v33 }
 0x724   : > { %4900 = vmatprep.subr.bf16.mxu0 %v4899_v2 }
 0x725   : > { %4908 = vmatprep.subr.bf16.mxu1 %v4907_v43  ;;  %4902 = vmatpush1.bf16.msra.mxu0 %v4901_v21 }
 0x726   : > { %4910 = vmatpush1.bf16.msra.mxu1 %v4909_v36 }
 0x728   : > { %4664 = vmatmul.mubr.msk.f32.vlgmr.msra.gmra.mrb[38].mxu0 %vm648_vm2, %v6287_v13 }
 0x729   : > { %4665 = vmatmul.mubr.msk.f32.vlgmr.msra.gmra.mrb[38].mxu1 %vm648_vm2, %v6287_v13  ;;  %2457 = vmatprep.mubr.f32.mxu0 %v5637_v4 }
 0x72a   : > { %2546 = vmatprep.mubr.f32.mxu1 %v5637_v4 }
 0x7fb   : > { %v2241_v3 = vpop.f32.mrb[38].mxu0 }
 0x7fc   : > { %v2326_v48 = vmul.f32 %v2325_v17, %v2241_v3  ;;  %v2312_v29 = vpop.f32.mrb[38].mxu1  ;;  %v2243_v55 = vpop.f32.mrb[39].mxu0 }
 0x7fd   : > { %v2328_v56 = vmul.f32 %v2325_v17, %v2312_v29  ;;  %v2327_v47 = vmul.f32 %v2325_v17, %v2243_v55  ;;  %v2314_v51 = vpop.f32.mrb[39].mxu1 }
 0x7fe   : > { %v2329_v34 = vmul.f32 %v2325_v17, %v2314_v51 }
 0x7ff   : > { %v2334_v31 = vcombine.low %v2326_v48, %v2327_v47 }
 0x800   : > { %v2335_v61 = vcombine.low %v2328_v56, %v2329_v34 }
 0x801   : > { %v2338_v62 = vsub.f32 %v2323_v60, %v2334_v31 }
 0x802   : > { %v2339_v54 = vsub.f32 %v2324_v57, %v2335_v61 }
 0x803   : > { %v2341_v5 = vmul.f32 %v2340_v41, %v2338_v62 }
 0x804   : > { %v2342_v45 = vmul.f32 %v2340_v41, %v2339_v54 }
 0x805   : > { %v2346_v11 = vadd.f32 %v2344_v7, %v2341_v5 }
 0x806   : > { %v2347_v16 = vadd.f32 %v2345_v10, %v2342_v45 }
 0x807   : > { %v6305_v19 = vadd.f32 %v2352_v9, %v2346_v11 }
 0x808   : > { %v6307_v59 = vadd.f32 %v2353_v50, %v2347_v16 }
 0x809   : > { %v2383_v0 = vcombine.high %v6305_v19, %v6305_v19 }
 0x80a   : > { %v2384_v42 = vcombine.high %v6307_v59, %v6307_v59 }
 0x80b   : > { %4677 = vmatprep.subr.msk.mxu0 %vm349_vm0, %v2383_v0 }
 0x80c   : > { %4683 = vmatprep.subr.msk.mxu1 %vm349_vm0, %v2384_v42  ;;  %4678 = vmatpush1.msk.msra.mxu0 %vm349_vm0, %v6305_v19 }
 0x80d   : > { %4684 = vmatpush1.msk.msra.mxu1 %vm349_vm0, %v6307_v59  ;;  %4679 = vmatmul.mubr.msk.f32.vlgmr.msra.gmra.mrb[40].mxu0 %vm336_vm1, %v6069_v35 }
 0x80e   : > { %4685 = vmatmul.mubr.msk.f32.vlgmr.msra.gmra.mrb[40].mxu1 %vm336_vm1, %v6069_v35  ;;  %2463 = vmatprep.mubr.f32.mxu0 %v5637_v4  ;;  %v2364_v35 = vpop.permute.xlu0 %2363 }
 0x80f   : > { %2552 = vmatprep.mubr.f32.mxu1 %v5637_v4 }
 0x811   : > { %4680 = vmatmul.mubr.msk.f32.gmra.mrb[42].mxu0 %vm336_vm1, %v6078_v46 }
 0x812   : > { %4686 = vmatmul.mubr.msk.f32.gmra.mrb[42].mxu1 %vm336_vm1, %v6078_v46  ;;  %2469 = vmatprep.mubr.f32.mxu0 %v5637_v4  ;;  %v2374_v15 = vpop.permute.xlu0 %2373 }
 0x813   : > { %2558 = vmatprep.mubr.f32.mxu1 %v5637_v4 }
 0x815   : > { %4681 = vmatmul.mubr.msk.f32.gmra.mrb[44].mxu0 %vm336_vm1, %v6087_v37 }
 0x816   : > { %4687 = vmatmul.mubr.msk.f32.gmra.mrb[44].mxu1 %vm336_vm1, %v6087_v37  ;;  %2475 = vmatprep.mubr.f32.mxu0 %v5637_v4 }
 0x817   : > { %2564 = vmatprep.mubr.f32.mxu1 %v5637_v4 }
 0x819   : > { %4682 = vmatmul.mubr.msk.f32.gmra.mrb[46].mxu0 %vm336_vm1, %v6098_v25 }
 0x81a   : > { %4688 = vmatmul.mubr.msk.f32.gmra.mrb[46].mxu1 %vm336_vm1, %v6098_v25  ;;  %2747 = vmatprep.mubr.f32.mxu0 %v5637_v4  ;;  %v2369_v25 = vpop.permute.xlu1 %2368 }
 0x81b   : > { %2818 = vmatprep.mubr.f32.mxu1 %v5637_v4 }
 0x81e   : > { %v2379_v56 = vpop.permute.xlu1 %2378 }
 0x8e0   : > { %v2459_v46 = vpop.f32.mrb[40].mxu0 }
 0x8e1   : > { %v6343_v22 = vadd.f32 %v2459_v46, %v2364_v35  ;;  %v2548_v8 = vpop.f32.mrb[40].mxu1  ;;  %v2461_v37 = vpop.f32.mrb[41].mxu0 }
 0x8e2   : > { %v6345_v20 = vadd.f32 %v2548_v8, %v2364_v35  ;;  %v6347_v18 = vadd.f32 %v2461_v37, %v2364_v35  ;;  %v2550_v63 = vpop.f32.mrb[41].mxu1 }
 0x8e3   : > { %v4689_v40 = vmul.f32 -1.442695, %v6343_v22  ;;  %v6350_v1 = vadd.f32 %v2550_v63, %v2364_v35 }
 0x8e4   : > { %v4691_v21 = vmul.f32 -1.442695, %v6345_v20  ;;  %v4690_v30 = vmul.f32 -1.442695, %v6347_v18  ;;  %v2465_v49 = vpop.f32.mrb[42].mxu0 }
 0x8e5   : > { %5287 = vpow2.f32 %v4689_v40  ;;  %v4692_v44 = vmul.f32 -1.442695, %v6350_v1  ;;  %v6355_v26 = vadd.f32 %v2465_v49, %v2369_v25  ;;  %v2554_v24 = vpop.f32.mrb[42].mxu1  ;;  %v2467_v12 = vpop.f32.mrb[43].mxu0 }
 0x8e6   : > { %5289 = vpow2.f32 %v4691_v21  ;;  %v6357_v23 = vadd.f32 %v2554_v24, %v2369_v25  ;;  %v6359_v58 = vadd.f32 %v2467_v12, %v2369_v25  ;;  %v2556_v27 = vpop.f32.mrb[43].mxu1 }
 0x8e7   : > { %5291 = vpow2.f32 %v4690_v30  ;;  %v4693_v28 = vmul.f32 -1.442695, %v6355_v26  ;;  %v6362_v38 = vadd.f32 %v2556_v27, %v2369_v25 }
 0x8e8   : > { %5293 = vpow2.f32 %v4692_v44  ;;  %v4695_v33 = vmul.f32 -1.442695, %v6357_v23  ;;  %v4694_v36 = vmul.f32 -1.442695, %v6359_v58  ;;  %v2471_v6 = vpop.f32.mrb[44].mxu0 }
 0x8e9   : > { %5295 = vpow2.f32 %v4693_v28  ;;  %v4696_v2 = vmul.f32 -1.442695, %v6362_v38  ;;  %v6367_v43 = vadd.f32 %v2471_v6, %v2374_v15  ;;  %v2560_v17 = vpop.f32.mrb[44].mxu1  ;;  %v2473_v3 = vpop.f32.mrb[45].mxu0 }
 0x8ea   : > { %5297 = vpow2.f32 %v4695_v33  ;;  %v6369_v48 = vadd.f32 %v2560_v17, %v2374_v15  ;;  %v6371_v29 = vadd.f32 %v2473_v3, %v2374_v15  ;;  %v2562_v55 = vpop.f32.mrb[45].mxu1 }
 0x8eb   : > { %5299 = vpow2.f32 %v4694_v36  ;;  %v4697_v32 = vmul.f32 -1.442695, %v6367_v43  ;;  %v6379_v7 = vadd.f32 %v2562_v55, %v2374_v15 }
 0x8ec   : > { %5301 = vpow2.f32 %v4696_v2  ;;  %v4699_v47 = vmul.f32 -1.442695, %v6369_v48  ;;  %v4698_v51 = vmul.f32 -1.442695, %v6371_v29  ;;  %v2477_v34 = vpop.f32.mrb[46].mxu0 }
 0x8ed   : > { %5303 = vpow2.f32 %v4697_v32  ;;  %v6376_v60 = vadd.f32 %v2477_v34, %v2379_v56  ;;  %v2566_v31 = vpop.f32.mrb[46].mxu1  ;;  %v2479_v39 = vpop.f32.mrb[47].mxu0  ;;  %v4700_v35 = vmul.f32 -1.442695, %v6379_v7 }
 0x8ee   : > { %v2568_v41 = vpop.f32.mrb[47].mxu1  ;;  %5305 = vpow2.f32 %v4699_v47  ;;  %v6382_v37 = vadd.f32 %v2566_v31, %v2379_v56  ;;  %v6384_v40 = vadd.f32 %v2479_v39, %v2379_v56 }
 0x8ef   : > { %v5288_v53 = vpop.eup %5287  ;;  %v4701_v52 = vmul.f32 -1.442695, %v6376_v60  ;;  %5307 = vpow2.f32 %v4698_v51  ;;  %v6386_v21 = vadd.f32 %v2568_v41, %v2379_v56 }
 0x8f0   : > { %v5290_v57 = vpop.eup %5289  ;;  %v2619_v61 = vadd.f32 1.0, %v5288_v53  ;;  %v4703_v44 = vmul.f32 -1.442695, %v6382_v37  ;;  %v4702_v27 = vmul.f32 -1.442695, %v6384_v40 }
 0x8f1   : > { %v5292_v62 = vpop.eup %5291  ;;  %v2621_v14 = vadd.f32 1.0, %v5290_v57  ;;  %5309 = vpow2.f32 %v4701_v52  ;;  %v4704_v15 = vmul.f32 -1.442695, %v6386_v21 }
 0x8f2   : > { %v5294_v54 = vpop.eup %5293  ;;  %5311 = vrcp.f32 %v2619_v61  ;;  %v2620_v5 = vadd.f32 1.0, %v5292_v62 }
 0x8f3   : > { %v5296_v9 = vpop.eup %5295  ;;  %5313 = vrcp.f32 %v2621_v14  ;;  %v2622_v45 = vadd.f32 1.0, %v5294_v54 }
 0x8f4   : > { %v5298_v10 = vpop.eup %5297  ;;  %5315 = vrcp.f32 %v2620_v5  ;;  %v2623_v50 = vadd.f32 1.0, %v5296_v9 }
 0x8f5   : > { %v5300_v11 = vpop.eup %5299  ;;  %5317 = vrcp.f32 %v2622_v45  ;;  %v2625_v16 = vadd.f32 1.0, %v5298_v10 }
 0x8f6   : > { %v5302_v0 = vpop.eup %5301  ;;  %5319 = vrcp.f32 %v2623_v50  ;;  %v2624_v42 = vadd.f32 1.0, %v5300_v11 }
 0x8f7   : > { %v5304_v46 = vpop.eup %5303  ;;  %5321 = vrcp.f32 %v2625_v16  ;;  %v2626_v8 = vadd.f32 1.0, %v5302_v0 }
 0x8f8   : > { %5323 = vrcp.f32 %v2624_v42  ;;  %v2627_v63 = vadd.f32 1.0, %v5304_v46  ;;  %v5306_v25 = vpop.eup %5305 }
 0x8f9   : > { %5325 = vrcp.f32 %v2626_v8  ;;  %v5308_v30 = vpop.eup %5307  ;;  %v2629_v52 = vadd.f32 1.0, %v5306_v25 }
 0x8fa   : > { %5327 = vpow2.f32 %v4700_v35  ;;  %v2628_v61 = vadd.f32 1.0, %v5308_v30 }
 0x8fb   : > { %v5310_v49 = vpop.eup %5309  ;;  %5329 = vrcp.f32 %v2627_v63 }
 0x8fc   : > { %v5312_v24 = vpop.eup %5311  ;;  %v2631_v12 = vadd.f32 1.0, %v5310_v49 }
 0x8fd   : > { %v5314_v28 = vpop.eup %5313  ;;  %v2667_v17 = vmul.f32 %v5312_v24, %v6343_v22 }
 0x8fe   : > { %v5316_v33 = vpop.eup %5315  ;;  %5331 = vrcp.f32 %v2631_v12  ;;  %v2669_v32 = vmul.f32 %v5314_v28, %v6345_v20 }
 0x8ff   : > { %v5318_v36 = vpop.eup %5317  ;;  %5333 = vpow2.f32 %v4703_v44  ;;  %v2668_v51 = vmul.f32 %v5316_v33, %v6347_v18  ;;  %v2851_v33 = vstv %s4710_s15  ;;  %s4834_s15 = sld [smem:[#allocation2 + $0x207]] }
 0x900   : > { %v5320_v6 = vpop.eup %5319  ;;  %5335 = vpow2.f32 %v4702_v27  ;;  %v2670_v41 = vmul.f32 %v5318_v36, %v6350_v1  ;;  %v2848_v36 = vstv %s4709_s17  ;;  %s284_s17 = sand.u32 1, %s5626_s22  }
 0x901   : > { %v5322_v2 = vpop.eup %5321  ;;  %v2671_v3 = vmul.f32 %v5320_v6, %v6355_v26  ;;  %5337 = vpow2.f32 %v4704_v15  ;;  %v4712_v6 = vld [vmem:[%s6843_s2 + $0x40] sm:$0xff] }
 0x902   : > { %v5324_v55 = vpop.eup %5323  ;;  %v2673_v56 = vmul.f32 %v5322_v2, %v6357_v23  ;;  %5339 = vrcp.f32 %v2629_v52  ;;  %v2859_v2 = vstv %s4711_s18  ;;  %s4790_s18 = sld [smem:[#allocation2 + $0x86]] }
 0x903   : > { %v5326_v47 = vpop.eup %5325  ;;  %v4913_v34 = vpack.c.bf16 %v2671_v3, %v2667_v17  ;;  %v2672_v31 = vmul.f32 %v5324_v55, %v6359_v58  ;;  %5341 = vrcp.f32 %v2628_v61 }
 0x904   : > { %v5328_v39 = vpop.eup %5327  ;;  %v4921_v53 = vpack.c.bf16 %v2673_v56, %v2669_v32  ;;  %v2674_v22 = vmul.f32 %v5326_v47, %v6362_v38  ;;  %v4713_v32 = vld [vmem:[%s6843_s2 + $0x48] sm:$0xff] }
 0x905   : > { %v4911_v26 = vpack.c.bf16 %v2672_v31, %v2668_v51  ;;  %v5330_v57 = vpop.eup %5329  ;;  %v2630_v20 = vadd.f32 1.0, %v5328_v39  ;;  %v2852_v51 = vmul.f32 %v2851_v33, %v6305_v19  ;;  %v2853_v39 = vmul.f32 %v2851_v33, %v6307_v59 }
 0x906   : > { %v4919_v62 = vpack.c.bf16 %v2674_v22, %v2670_v41  ;;  %v2675_v14 = vmul.f32 %v5330_v57, %v6367_v43  ;;  %v2861_v41 = vmul.f32 %v4713_v32, %v2859_v2 }
 0x907   : > { %4912 = vmatprep.subr.bf16.mxu0 %v4911_v26  ;;  %5343 = vrcp.f32 %v2630_v20  ;;  %v6465_v20 = vld [vmem:[%s5772_s9 + $0x18] sm:$0xff] }
 0x908   : > { %v5332_v23 = vpop.eup %5331  ;;  %4920 = vmatprep.subr.bf16.mxu1 %v4919_v62  ;;  %4914 = vmatpush1.bf16.msra.mxu0 %v4913_v34  ;;  %v2860_v34 = vmul.f32 %v4712_v6, %v2859_v2  ;;  %v6456_v62 = vld [vmem:[%s5772_s9 + $0x10] sm:$0xff] }
 0x909   : > { %v5334_v18 = vpop.eup %5333  ;;  %v2679_v58 = vmul.f32 %v5332_v23, %v6376_v60  ;;  %4922 = vmatpush1.bf16.msra.mxu1 %v4921_v53  ;;  %v2872_v23 = vpop.permute.xlu0 %2871 }
 0x90a   : > { %v5336_v1 = vpop.eup %5335  ;;  %v2633_v38 = vadd.f32 1.0, %v5334_v18 }
 0x90b   : > { %v5338_v54 = vpop.eup %5337  ;;  %v4917_v5 = vpack.c.bf16 %v2679_v58, %v2675_v14  ;;  %v2632_v9 = vadd.f32 1.0, %v5336_v1 }
 0x90c   : > { %5345 = vrcp.f32 %v2633_v38  ;;  %v2634_v45 = vadd.f32 1.0, %v5338_v54  ;;  %v5340_v10 = vpop.eup %5339 }
 0x90d   : > { %5347 = vrcp.f32 %v2632_v9  ;;  %v5342_v50 = vpop.eup %5341  ;;  %v2677_v0 = vmul.f32 %v5340_v10, %v6369_v48  ;;  %v2833_v48 = vstv %s4708_s13  ;;  %v2877_v10 = vpop.permute.xlu1 %2876  ;;  %s4833_s13 = sld [smem:[#allocation2 + $0x187]] }
 0x90e   : > { %5349 = vrcp.f32 %v2634_v45  ;;  %v2676_v35 = vmul.f32 %v5342_v50, %v6371_v29 }
 0x911   : > { %v5344_v11 = vpop.eup %5343 }
 0x912   : > { %v2678_v8 = vmul.f32 %v5344_v11, %v6379_v7 }
 0x916   : > { %v5346_v16 = vpop.eup %5345 }
 0x917   : > { %v5348_v43 = vpop.eup %5347  ;;  %v2681_v60 = vmul.f32 %v5346_v16, %v6382_v37 }
 0x918   : > { %v5350_v42 = vpop.eup %5349  ;;  %v2680_v46 = vmul.f32 %v5348_v43, %v6384_v40 }
 0x919   : > { %v4925_v63 = vpack.c.bf16 %v2681_v60, %v2677_v0  ;;  %v2682_v25 = vmul.f32 %v5350_v42, %v6386_v21  ;;  %v2830_v21 = vstv %s4707_s14  ;;  %s4832_s14 = sld [smem:[#allocation2 + $0x107]] }
 0x91a   : > { %v4915_v30 = vpack.c.bf16 %v2680_v46, %v2676_v35  ;;  %v2831_v28 = vmul.f32 %v2830_v21, %v6305_v19  ;;  %v2832_v17 = vmul.f32 %v2830_v21, %v6307_v59  ;;  %v6438_v19 = vld [vmem:[%s5772_s9] sm:$0xff]  ;;  %v6447_v59 = vld [vmem:[%s5772_s9 + $0x8] sm:$0xff]  ;;  %s4749_s9 = sld [smem:[#allocation2 + $0x85]] }
 0x91b   : > { %v4923_v49 = vpack.c.bf16 %v2682_v25, %v2678_v8 }
 0x91c   : > { %4916 = vmatprep.subr.bf16.mxu0 %v4915_v30  ;;  %v2882_v30 = vpop.permute.xlu0 %2881 }
 0x91d   : > { %4924 = vmatprep.subr.bf16.mxu1 %v4923_v49  ;;  %4918 = vmatpush1.bf16.msra.mxu0 %v4917_v5 }
 0x91e   : > { %4926 = vmatpush1.bf16.msra.mxu1 %v4925_v63 }
 0x920   : > { %4705 = vmatmul.mubr.msk.f32.vlgmr.msra.gmra.mrb[48].mxu0 %vm648_vm2, %v6287_v13 }
 0x921   : > { %4706 = vmatmul.mubr.msk.f32.vlgmr.msra.gmra.mrb[48].mxu1 %vm648_vm2, %v6287_v13  ;;  %2965 = vmatprep.mubr.f32.mxu0 %v5637_v4 }
 0x922   : > { %3054 = vmatprep.mubr.f32.mxu1 %v5637_v4 }
 0x9f3   : > { %v2749_v29 = vpop.f32.mrb[48].mxu0 }
 0x9f4   : > { %v2834_v7 = vmul.f32 %v2833_v48, %v2749_v29  ;;  %v2820_v37 = vpop.f32.mrb[48].mxu1  ;;  %v2751_v40 = vpop.f32.mrb[49].mxu0 }
 0x9f5   : > { %v2836_v44 = vmul.f32 %v2833_v48, %v2820_v37  ;;  %v2835_v24 = vmul.f32 %v2833_v48, %v2751_v40  ;;  %v2822_v12 = vpop.f32.mrb[49].mxu1 }
 0x9f6   : > { %v2837_v27 = vmul.f32 %v2833_v48, %v2822_v12 }
 0x9f7   : > { %v2842_v15 = vcombine.low %v2834_v7, %v2835_v24 }
 0x9f8   : > { %v2843_v3 = vcombine.low %v2836_v44, %v2837_v27 }
 0x9f9   : > { %v2846_v55 = vsub.f32 %v2831_v28, %v2842_v15  ;;  %v2887_v28 = vpop.permute.xlu1 %2886 }
 0x9fa   : > { %v2847_v56 = vsub.f32 %v2832_v17, %v2843_v3 }
 0x9fb   : > { %v2849_v47 = vmul.f32 %v2848_v36, %v2846_v55 }
 0x9fc   : > { %v2850_v31 = vmul.f32 %v2848_v36, %v2847_v56 }
 0x9fd   : > { %v2854_v53 = vadd.f32 %v2852_v51, %v2849_v47 }
 0x9fe   : > { %v2855_v22 = vadd.f32 %v2853_v39, %v2850_v31 }
 0x9ff   : > { %v6423_v52 = vadd.f32 %v2860_v34, %v2854_v53 }
 0xa00   : > { %v6425_v26 = vadd.f32 %v2861_v41, %v2855_v22 }
 0xa01   : > { %v2891_v57 = vcombine.high %v6423_v52, %v6423_v52 }
 0xa02   : > { %v2892_v61 = vcombine.high %v6425_v26, %v6425_v26 }
 0xa03   : > { %4718 = vmatprep.subr.msk.mxu0 %vm349_vm0, %v2891_v57 }
 0xa04   : > { %4724 = vmatprep.subr.msk.mxu1 %vm349_vm0, %v2892_v61  ;;  %4719 = vmatpush1.msk.msra.mxu0 %vm349_vm0, %v6423_v52 }
 0xa05   : > { %4725 = vmatpush1.msk.msra.mxu1 %vm349_vm0, %v6425_v26  ;;  %4720 = vmatmul.mubr.msk.f32.vlgmr.msra.gmra.mrb[50].mxu0 %vm336_vm1, %v6438_v19 }
 0xa06   : > { %4726 = vmatmul.mubr.msk.f32.vlgmr.msra.gmra.mrb[50].mxu1 %vm336_vm1, %v6438_v19  ;;  %2971 = vmatprep.mubr.f32.mxu0 %v5637_v4 }
 0xa07   : > { %3060 = vmatprep.mubr.f32.mxu1 %v5637_v4 }
 0xa09   : > { %4721 = vmatmul.mubr.msk.f32.gmra.mrb[52].mxu0 %vm336_vm1, %v6447_v59 }
 0xa0a   : > { %4727 = vmatmul.mubr.msk.f32.gmra.mrb[52].mxu1 %vm336_vm1, %v6447_v59  ;;  %2977 = vmatprep.mubr.f32.mxu0 %v5637_v4 }
 0xa0b   : > { %3066 = vmatprep.mubr.f32.mxu1 %v5637_v4 }
 0xa0d   : > { %4722 = vmatmul.mubr.msk.f32.gmra.mrb[54].mxu0 %vm336_vm1, %v6456_v62 }
 0xa0e   : > { %4728 = vmatmul.mubr.msk.f32.gmra.mrb[54].mxu1 %vm336_vm1, %v6456_v62  ;;  %2983 = vmatprep.mubr.f32.mxu0 %v5637_v4 }
 0xa0f   : > { %3072 = vmatprep.mubr.f32.mxu1 %v5637_v4 }
 0xa11   : > { %4723 = vmatmul.mubr.msk.f32.gmra.mrb[56].mxu0 %vm336_vm1, %v6465_v20 }
 0xa12   : > { %4729 = vmatmul.mubr.msk.f32.gmra.mrb[56].mxu1 %vm336_vm1, %v6465_v20  ;;  %3255 = vmatprep.mubr.f32.mxu0 %v5637_v4 }
 0xa13   : > { %3326 = vmatprep.mubr.f32.mxu1 %v5637_v4 }
 0xad8   : > { %v2967_v18 = vpop.f32.mrb[50].mxu0 }
 0xad9   : > { %v6473_v14 = vadd.f32 %v2967_v18, %v2872_v23  ;;  %v3056_v58 = vpop.f32.mrb[50].mxu1  ;;  %v2969_v1 = vpop.f32.mrb[51].mxu0 }
 0xada   : > { %v6475_v38 = vadd.f32 %v3056_v58, %v2872_v23  ;;  %v6477_v54 = vadd.f32 %v2969_v1, %v2872_v23  ;;  %v3058_v5 = vpop.f32.mrb[51].mxu1 }
 0xadb   : > { %v4730_v9 = vmul.f32 -1.442695, %v6473_v14  ;;  %v6480_v45 = vadd.f32 %v3058_v5, %v2872_v23 }
 0xadc   : > { %v4732_v50 = vmul.f32 -1.442695, %v6475_v38  ;;  %v4731_v11 = vmul.f32 -1.442695, %v6477_v54  ;;  %v2973_v16 = vpop.f32.mrb[52].mxu0 }
 0xadd   : > { %5351 = vpow2.f32 %v4730_v9  ;;  %v4733_v43 = vmul.f32 -1.442695, %v6480_v45  ;;  %v6485_v0 = vadd.f32 %v2973_v16, %v2877_v10  ;;  %v3062_v60 = vpop.f32.mrb[52].mxu1  ;;  %v2975_v42 = vpop.f32.mrb[53].mxu0 }
 0xade   : > { %5353 = vpow2.f32 %v4732_v50  ;;  %v6487_v35 = vadd.f32 %v3062_v60, %v2877_v10  ;;  %v6489_v46 = vadd.f32 %v2975_v42, %v2877_v10  ;;  %v3064_v8 = vpop.f32.mrb[53].mxu1 }
 0xadf   : > { %5355 = vpow2.f32 %v4731_v11  ;;  %v4734_v63 = vmul.f32 -1.442695, %v6485_v0  ;;  %v6492_v25 = vadd.f32 %v3064_v8, %v2877_v10 }
 0xae0   : > { %5357 = vpow2.f32 %v4733_v43  ;;  %v4736_v49 = vmul.f32 -1.442695, %v6487_v35  ;;  %v4735_v48 = vmul.f32 -1.442695, %v6489_v46  ;;  %v2979_v29 = vpop.f32.mrb[54].mxu0 }
 0xae1   : > { %5359 = vpow2.f32 %v4734_v63  ;;  %v4737_v7 = vmul.f32 -1.442695, %v6492_v25  ;;  %v6497_v37 = vadd.f32 %v2979_v29, %v2882_v30  ;;  %v3068_v40 = vpop.f32.mrb[54].mxu1  ;;  %v2981_v21 = vpop.f32.mrb[55].mxu0 }
 0xae2   : > { %5361 = vpow2.f32 %v4736_v49  ;;  %v6499_v44 = vadd.f32 %v3068_v40, %v2882_v30  ;;  %v6501_v24 = vadd.f32 %v2981_v21, %v2882_v30  ;;  %v3070_v12 = vpop.f32.mrb[55].mxu1 }
 0xae3   : > { %5363 = vpow2.f32 %v4735_v48  ;;  %v4738_v27 = vmul.f32 -1.442695, %v6497_v37  ;;  %v6509_v41 = vadd.f32 %v3070_v12, %v2882_v30 }
 0xae4   : > { %5365 = vpow2.f32 %v4737_v7  ;;  %v4740_v15 = vmul.f32 -1.442695, %v6499_v44  ;;  %v4739_v33 = vmul.f32 -1.442695, %v6501_v24  ;;  %v2985_v36 = vpop.f32.mrb[56].mxu0 }
 0xae5   : > { %5367 = vpow2.f32 %v4738_v27  ;;  %v6506_v6 = vadd.f32 %v2985_v36, %v2887_v28  ;;  %v3074_v2 = vpop.f32.mrb[56].mxu1  ;;  %v2987_v17 = vpop.f32.mrb[57].mxu0  ;;  %v4741_v5 = vmul.f32 -1.442695, %v6509_v41 }
 0xae6   : > { %v3076_v3 = vpop.f32.mrb[57].mxu1  ;;  %5369 = vpow2.f32 %v4740_v15  ;;  %v6512_v50 = vadd.f32 %v3074_v2, %v2887_v28  ;;  %v6514_v16 = vadd.f32 %v2987_v17, %v2887_v28 }
 0xae7   : > { %v5352_v55 = vpop.eup %5351  ;;  %v4742_v32 = vmul.f32 -1.442695, %v6506_v6  ;;  %5371 = vpow2.f32 %v4739_v33  ;;  %v6516_v60 = vadd.f32 %v3076_v3, %v2887_v28 }
 0xae8   : > { %v5354_v56 = vpop.eup %5353  ;;  %v3127_v47 = vadd.f32 1.0, %v5352_v55  ;;  %v4744_v63 = vmul.f32 -1.442695, %v6512_v50  ;;  %v4743_v48 = vmul.f32 -1.442695, %v6514_v16 }
 0xae9   : > { %v5356_v51 = vpop.eup %5355  ;;  %v3129_v34 = vadd.f32 1.0, %v5354_v56  ;;  %5373 = vpow2.f32 %v4742_v32  ;;  %v4745_v7 = vmul.f32 -1.442695, %v6516_v60 }
 0xaea   : > { %v5358_v31 = vpop.eup %5357  ;;  %5375 = vrcp.f32 %v3127_v47  ;;  %v3128_v39 = vadd.f32 1.0, %v5356_v51 }
 0xaeb   : > { %v5360_v53 = vpop.eup %5359  ;;  %5377 = vrcp.f32 %v3129_v34  ;;  %v3130_v22 = vadd.f32 1.0, %v5358_v31 }
 0xaec   : > { %v5362_v57 = vpop.eup %5361  ;;  %5379 = vrcp.f32 %v3128_v39  ;;  %v3131_v61 = vadd.f32 1.0, %v5360_v53 }
 0xaed   : > { %v5364_v23 = vpop.eup %5363  ;;  %5381 = vrcp.f32 %v3130_v22  ;;  %v3133_v18 = vadd.f32 1.0, %v5362_v57 }
 0xaee   : > { %v5366_v58 = vpop.eup %5365  ;;  %5383 = vrcp.f32 %v3131_v61  ;;  %v3132_v1 = vadd.f32 1.0, %v5364_v23 }
 0xaef   : > { %v5368_v9 = vpop.eup %5367  ;;  %5385 = vrcp.f32 %v3133_v18  ;;  %v3134_v10 = vadd.f32 1.0, %v5366_v58 }
 0xaf0   : > { %5387 = vrcp.f32 %v3132_v1  ;;  %v3135_v11 = vadd.f32 1.0, %v5368_v9  ;;  %v5370_v43 = vpop.eup %5369 }
 0xaf1   : > { %5389 = vrcp.f32 %v3134_v10  ;;  %v5372_v42 = vpop.eup %5371  ;;  %v3137_v34 = vadd.f32 1.0, %v5370_v43 }
 0xaf2   : > { %5391 = vpow2.f32 %v4741_v5  ;;  %v3136_v39 = vadd.f32 1.0, %v5372_v42 }
 0xaf3   : > { %v5374_v8 = vpop.eup %5373  ;;  %5393 = vrcp.f32 %v3135_v11 }
 0xaf4   : > { %v5376_v30 = vpop.eup %5375  ;;  %v3139_v49 = vadd.f32 1.0, %v5374_v8 }
 0xaf5   : > { %v5378_v29 = vpop.eup %5377  ;;  %v3175_v28 = vmul.f32 %v5376_v30, %v6473_v14 }
 0xaf6   : > { %v5380_v40 = vpop.eup %5379  ;;  %5395 = vrcp.f32 %v3139_v49  ;;  %v3177_v36 = vmul.f32 %v5378_v29, %v6475_v38 }
 0xaf7   : > { %v5382_v21 = vpop.eup %5381  ;;  %5397 = vpow2.f32 %v4744_v63  ;;  %v3176_v3 = vmul.f32 %v5380_v40, %v6477_v54 }
 0xaf8   : > { %v5384_v12 = vpop.eup %5383  ;;  %5399 = vpow2.f32 %v4743_v48  ;;  %v3178_v47 = vmul.f32 %v5382_v21, %v6480_v45 }
 0xaf9   : > { %v5386_v27 = vpop.eup %5385  ;;  %v3179_v15 = vmul.f32 %v5384_v12, %v6485_v0  ;;  %5401 = vpow2.f32 %v4745_v7 }
 0xafa   : > { %v5388_v33 = vpop.eup %5387  ;;  %v3181_v2 = vmul.f32 %v5386_v27, %v6487_v35  ;;  %5403 = vrcp.f32 %v3137_v34  ;;  %v3359_v27 = vstv %s4751_s10 }
 0xafb   : > { %v5390_v17 = vpop.eup %5389  ;;  %v4929_v55 = vpack.c.bf16 %v3179_v15, %v3175_v28  ;;  %v3180_v32 = vmul.f32 %v5388_v33, %v6489_v46  ;;  %5405 = vrcp.f32 %v3136_v39  ;;  %v3356_v28 = vstv %s4750_s11  ;;  %v4753_v15 = vld [vmem:[%s6843_s2 + $0x50] sm:$0xff]  ;;  %s4831_s11 = sld [smem:[#allocation2 + $0x87]] }
 0xafc   : > { %v5392_v56 = vpop.eup %5391  ;;  %v4937_v51 = vpack.c.bf16 %v3181_v2, %v3177_v36  ;;  %v3182_v14 = vmul.f32 %v5390_v17, %v6492_v25  ;;  %v3367_v33 = vstv %s4752_s12  ;;  %s4830_s12 = sld [smem:[#allocation2 + $0x7]] }
 0xafd   : > { %v4927_v0 = vpack.c.bf16 %v3180_v32, %v3176_v3  ;;  %v5394_v31 = vpop.eup %5393  ;;  %v3138_v38 = vadd.f32 1.0, %v5392_v56  ;;  %v4754_v3 = vld [vmem:[%s6843_s2 + $0x58] sm:$0xff]  ;;  %v3360_v56 = vmul.f32 %v3359_v27, %v6423_v52 }
 0xafe   : > { %v4935_v53 = vpack.c.bf16 %v3182_v14, %v3178_v47  ;;  %v3183_v22 = vmul.f32 %v5394_v31, %v6497_v37  ;;  %v3368_v47 = vmul.f32 %v4753_v15, %v3367_v33  ;;  %v3361_v14 = vmul.f32 %v3359_v27, %v6425_v26 }
 0xaff   : > { %4928 = vmatprep.subr.bf16.mxu0 %v4927_v0  ;;  %5407 = vrcp.f32 %v3138_v38  ;;  %v3369_v34 = vmul.f32 %v4754_v3, %v3367_v33 }
 0xb00   : > { %v5396_v35 = vpop.eup %5395  ;;  %4936 = vmatprep.subr.bf16.mxu1 %v4935_v53  ;;  %4930 = vmatpush1.bf16.msra.mxu0 %v4929_v55 }
 0xb01   : > { %v5398_v54 = vpop.eup %5397  ;;  %v3187_v46 = vmul.f32 %v5396_v35, %v6506_v6  ;;  %4938 = vmatpush1.bf16.msra.mxu1 %v4937_v51 }
 0xb02   : > { %v5400_v45 = vpop.eup %5399  ;;  %v3141_v25 = vadd.f32 1.0, %v5398_v54 }
 0xb03   : > { %v5402_v57 = vpop.eup %5401  ;;  %v4933_v61 = vpack.c.bf16 %v3187_v46, %v3183_v22  ;;  %v3140_v23 = vadd.f32 1.0, %v5400_v45 }
 0xb04   : > { %5409 = vrcp.f32 %v3141_v25  ;;  %v3142_v18 = vadd.f32 1.0, %v5402_v57  ;;  %v5404_v58 = vpop.eup %5403 }
 0xb05   : > { %5411 = vrcp.f32 %v3140_v23  ;;  %v5406_v1 = vpop.eup %5405  ;;  %v3185_v10 = vmul.f32 %v5404_v58, %v6499_v44  ;;  %v3341_v44 = vstv %s4749_s9 }
 0xb06   : > { %5413 = vrcp.f32 %v3142_v18  ;;  %v3184_v43 = vmul.f32 %v5406_v1, %v6501_v24  ;;  %v3385_v18 = vpop.permute.xlu1 %3384 }
 0xb09   : > { %v5408_v5 = vpop.eup %5407 }
 0xb0a   : > { %v3186_v8 = vmul.f32 %v5408_v5, %v6509_v41 }
 0xb0e   : > { %v5410_v9 = vpop.eup %5409 }
 0xb0f   : > { %v5412_v37 = vpop.eup %5411  ;;  %v3189_v6 = vmul.f32 %v5410_v9, %v6512_v50 }
 0xb10   : > { %v5414_v11 = vpop.eup %5413  ;;  %v3188_v42 = vmul.f32 %v5412_v37, %v6514_v16 }
 0xb11   : > { %v4941_v63 = vpack.c.bf16 %v3189_v6, %v3185_v10  ;;  %v3190_v30 = vmul.f32 %v5414_v11, %v6516_v60  ;;  %v3338_v60 = vstv %s4748_s29 }
 0xb12   : > { %v4931_v49 = vpack.c.bf16 %v3188_v42, %v3184_v43  ;;  %v3340_v36 = vmul.f32 %v3338_v60, %v6425_v26 }
 0xb13   : > { %v4939_v48 = vpack.c.bf16 %v3190_v30, %v3186_v8 }
 0xb14   : > { %4932 = vmatprep.subr.bf16.mxu0 %v4931_v49 }
 0xb15   : > { %4940 = vmatprep.subr.bf16.mxu1 %v4939_v48  ;;  %4934 = vmatpush1.bf16.msra.mxu0 %v4933_v61 }
 0xb16   : > { %4942 = vmatpush1.bf16.msra.mxu1 %v4941_v63 }
 0xb18   : > { %4746 = vmatmul.mubr.msk.f32.vlgmr.msra.gmra.mrb[58].mxu0 %vm648_vm2, %v6287_v13 }
 0xb19   : > { %4747 = vmatmul.mubr.msk.f32.vlgmr.msra.gmra.mrb[58].mxu1 %vm648_vm2, %v6287_v13  ;;  %3473 = vmatprep.mubr.f32.mxu0 %v5637_v4  ;;  %v3339_v13 = vmul.f32 %v3338_v60, %v6423_v52  ;;  %v3380_v52 = vpop.permute.xlu0 %3379 }
 0xb1a   : > { %3562 = vmatprep.mubr.f32.mxu1 %v5637_v4 }
 0xb1d   : > { %v3390_v30 = vpop.permute.xlu0 %3389 }
 0xbeb   : > { %v3257_v24 = vpop.f32.mrb[58].mxu0 }
 0xbec   : > { %v3342_v41 = vmul.f32 %v3341_v44, %v3257_v24  ;;  %v3328_v50 = vpop.f32.mrb[58].mxu1  ;;  %v3259_v16 = vpop.f32.mrb[59].mxu0 }
 0xbed   : > { %v3344_v29 = vmul.f32 %v3341_v44, %v3328_v50  ;;  %v3343_v7 = vmul.f32 %v3341_v44, %v3259_v16  ;;  %v3330_v40 = vpop.f32.mrb[59].mxu1 }
 0xbee   : > { %v3345_v21 = vmul.f32 %v3341_v44, %v3330_v40 }
 0xbef   : > { %v3350_v12 = vcombine.low %v3342_v41, %v3343_v7 }
 0xbf0   : > { %v3351_v2 = vcombine.low %v3344_v29, %v3345_v21  ;;  %v3395_v21 = vpop.permute.xlu1 %3394 }
 0xbf1   : > { %v3354_v17 = vsub.f32 %v3339_v13, %v3350_v12 }
 0xbf2   : > { %v3355_v55 = vsub.f32 %v3340_v36, %v3351_v2 }
 0xbf3   : > { %v3357_v32 = vmul.f32 %v3356_v28, %v3354_v17 }
 0xbf4   : > { %v3358_v51 = vmul.f32 %v3356_v28, %v3355_v55 }
 0xbf5   : > { %v3362_v0 = vadd.f32 %v3360_v56, %v3357_v32 }
 0xbf6   : > { %v3363_v31 = vadd.f32 %v3361_v14, %v3358_v51 }
 0xbf7   : > { %v6553_v39 = vadd.f32 %v3368_v47, %v3362_v0 }
 0xbf8   : > { %v6555_v53 = vadd.f32 %v3369_v34, %v3363_v31 }
 0xbf9   : > { %v3399_v38 = vcombine.high %v6553_v39, %v6553_v39 }
 0xbfa   : > { %v3400_v35 = vcombine.high %v6555_v53, %v6555_v53 }
 0xbfb   : > { %4759 = vmatprep.subr.msk.mxu0 %vm349_vm0, %v3399_v38 }
 0xbfc   : > { %4765 = vmatprep.subr.msk.mxu1 %vm349_vm0, %v3400_v35  ;;  %4760 = vmatpush1.msk.msra.mxu0 %vm349_vm0, %v6553_v39 }
 0xbfd   : > { %4766 = vmatpush1.msk.msra.mxu1 %vm349_vm0, %v6555_v53  ;;  %4761 = vmatmul.mubr.msk.f32.vlgmr.msra.gmra.mrb[60].mxu0 %vm336_vm1, %v6438_v19 }
 0xbfe   : > { %4767 = vmatmul.mubr.msk.f32.vlgmr.msra.gmra.mrb[60].mxu1 %vm336_vm1, %v6438_v19  ;;  %3479 = vmatprep.mubr.f32.mxu0 %v5637_v4 }
 0xbff   : > { %3568 = vmatprep.mubr.f32.mxu1 %v5637_v4 }
 0xc01   : > { %4762 = vmatmul.mubr.msk.f32.gmra.mrb[62].mxu0 %vm336_vm1, %v6447_v59 }
 0xc02   : > { %4768 = vmatmul.mubr.msk.f32.gmra.mrb[62].mxu1 %vm336_vm1, %v6447_v59  ;;  %3485 = vmatprep.mubr.f32.mxu0 %v5637_v4 }
 0xc03   : > { %3574 = vmatprep.mubr.f32.mxu1 %v5637_v4 }
 0xc05   : > { %4763 = vmatmul.mubr.msk.f32.gmra.mrb[64].mxu0 %vm336_vm1, %v6456_v62 }
 0xc06   : > { %4769 = vmatmul.mubr.msk.f32.gmra.mrb[64].mxu1 %vm336_vm1, %v6456_v62  ;;  %3491 = vmatprep.mubr.f32.mxu0 %v5637_v4 }
 0xc07   : > { %3580 = vmatprep.mubr.f32.mxu1 %v5637_v4 }
 0xc09   : > { %4764 = vmatmul.mubr.msk.f32.gmra.mrb[66].mxu0 %vm336_vm1, %v6465_v20 }
 0xc0a   : > { %4770 = vmatmul.mubr.msk.f32.gmra.mrb[66].mxu1 %vm336_vm1, %v6465_v20  ;;  %3763 = vmatprep.mubr.f32.mxu0 %v5637_v4 }
 0xc0b   : > { %3834 = vmatprep.mubr.f32.mxu1 %v5637_v4 }
 0xcd0   : > { %v3475_v26 = vpop.f32.mrb[60].mxu0 }
 0xcd1   : > { %v6591_v54 = vadd.f32 %v3475_v26, %v3380_v52  ;;  %v3564_v22 = vpop.f32.mrb[60].mxu1  ;;  %v3477_v46 = vpop.f32.mrb[61].mxu0 }
 0xcd2   : > { %v6593_v45 = vadd.f32 %v3564_v22, %v3380_v52  ;;  %v6595_v25 = vadd.f32 %v3477_v46, %v3380_v52  ;;  %v3566_v57 = vpop.f32.mrb[61].mxu1 }
 0xcd3   : > { %v4771_v61 = vmul.f32 -1.442695, %v6591_v54  ;;  %v6598_v23 = vadd.f32 %v3566_v57, %v3380_v52 }
 0xcd4   : > { %v4773_v58 = vmul.f32 -1.442695, %v6593_v45  ;;  %v4772_v1 = vmul.f32 -1.442695, %v6595_v25  ;;  %v3481_v5 = vpop.f32.mrb[62].mxu0 }
 0xcd5   : > { %5415 = vpow2.f32 %v4771_v61  ;;  %v4774_v9 = vmul.f32 -1.442695, %v6598_v23  ;;  %v6603_v37 = vadd.f32 %v3481_v5, %v3385_v18  ;;  %v3570_v10 = vpop.f32.mrb[62].mxu1  ;;  %v3483_v6 = vpop.f32.mrb[63].mxu0 }
 0xcd6   : > { %5417 = vpow2.f32 %v4773_v58  ;;  %v6605_v11 = vadd.f32 %v3570_v10, %v3385_v18  ;;  %v6607_v43 = vadd.f32 %v3483_v6, %v3385_v18  ;;  %v3572_v42 = vpop.f32.mrb[63].mxu1 }
 0xcd7   : > { %5419 = vpow2.f32 %v4772_v1  ;;  %v4775_v8 = vmul.f32 -1.442695, %v6603_v37  ;;  %v6610_v63 = vadd.f32 %v3572_v42, %v3385_v18 }
 0xcd8   : > { %5421 = vpow2.f32 %v4774_v9  ;;  %v4777_v49 = vmul.f32 -1.442695, %v6605_v11  ;;  %v4776_v48 = vmul.f32 -1.442695, %v6607_v43  ;;  %v3487_v44 = vpop.f32.mrb[64].mxu0 }
 0xcd9   : > { %5423 = vpow2.f32 %v4775_v8  ;;  %v4778_v24 = vmul.f32 -1.442695, %v6610_v63  ;;  %v6615_v41 = vadd.f32 %v3487_v44, %v3390_v30  ;;  %v3576_v50 = vpop.f32.mrb[64].mxu1  ;;  %v3489_v16 = vpop.f32.mrb[65].mxu0 }
 0xcda   : > { %5425 = vpow2.f32 %v4777_v49  ;;  %v6617_v60 = vadd.f32 %v3576_v50, %v3390_v30  ;;  %v6619_v29 = vadd.f32 %v3489_v16, %v3390_v30  ;;  %v3578_v7 = vpop.f32.mrb[65].mxu1 }
 0xcdb   : > { %5427 = vpow2.f32 %v4776_v48  ;;  %v4779_v40 = vmul.f32 -1.442695, %v6615_v41  ;;  %v6627_v14 = vadd.f32 %v3578_v7, %v3390_v30 }
 0xcdc   : > { %5429 = vpow2.f32 %v4778_v24  ;;  %v4781_v13 = vmul.f32 -1.442695, %v6617_v60  ;;  %v4780_v12 = vmul.f32 -1.442695, %v6619_v29  ;;  %v3493_v27 = vpop.f32.mrb[66].mxu0 }
 0xcdd   : > { %5431 = vpow2.f32 %v4779_v40  ;;  %v6624_v28 = vadd.f32 %v3493_v27, %v3395_v21  ;;  %v3582_v15 = vpop.f32.mrb[66].mxu1  ;;  %v3495_v33 = vpop.f32.mrb[67].mxu0  ;;  %v4782_v46 = vmul.f32 -1.442695, %v6627_v14 }
 0xcde   : > { %v3584_v36 = vpop.f32.mrb[67].mxu1  ;;  %5433 = vpow2.f32 %v4781_v13  ;;  %v6630_v18 = vadd.f32 %v3582_v15, %v3395_v21  ;;  %v6632_v1 = vadd.f32 %v3495_v33, %v3395_v21 }
 0xcdf   : > { %v5416_v2 = vpop.eup %5415  ;;  %v4783_v17 = vmul.f32 -1.442695, %v6624_v28  ;;  %5435 = vpow2.f32 %v4780_v12  ;;  %v6634_v9 = vadd.f32 %v3584_v36, %v3395_v21 }
 0xce0   : > { %v5418_v3 = vpop.eup %5417  ;;  %v3635_v55 = vadd.f32 1.0, %v5416_v2  ;;  %v4785_v42 = vmul.f32 -1.442695, %v6630_v18  ;;  %v4784_v49 = vmul.f32 -1.442695, %v6632_v1 }
 0xce1   : > { %v5420_v32 = vpop.eup %5419  ;;  %v3637_v56 = vadd.f32 1.0, %v5418_v3  ;;  %5437 = vpow2.f32 %v4783_v17  ;;  %v4786_v44 = vmul.f32 -1.442695, %v6634_v9 }
 0xce2   : > { %v5422_v47 = vpop.eup %5421  ;;  %5439 = vrcp.f32 %v3635_v55  ;;  %v3636_v51 = vadd.f32 1.0, %v5420_v32 }
 0xce3   : > { %v5424_v34 = vpop.eup %5423  ;;  %5441 = vrcp.f32 %v3637_v56  ;;  %v3638_v0 = vadd.f32 1.0, %v5422_v47 }
 0xce4   : > { %v5426_v31 = vpop.eup %5425  ;;  %5443 = vrcp.f32 %v3636_v51  ;;  %v3639_v38 = vadd.f32 1.0, %v5424_v34 }
 0xce5   : > { %v5428_v35 = vpop.eup %5427  ;;  %5445 = vrcp.f32 %v3638_v0  ;;  %v3641_v52 = vadd.f32 1.0, %v5426_v31 }
 0xce6   : > { %v5430_v26 = vpop.eup %5429  ;;  %5447 = vrcp.f32 %v3639_v38  ;;  %v3640_v22 = vadd.f32 1.0, %v5428_v35 }
 0xce7   : > { %v5432_v57 = vpop.eup %5431  ;;  %5449 = vrcp.f32 %v3641_v52  ;;  %v3642_v61 = vadd.f32 1.0, %v5430_v26 }
 0xce8   : > { %5451 = vrcp.f32 %v3640_v22  ;;  %v3643_v58 = vadd.f32 1.0, %v5432_v57  ;;  %v5434_v5 = vpop.eup %5433 }
 0xce9   : > { %5453 = vrcp.f32 %v3642_v61  ;;  %v5436_v10 = vpop.eup %5435  ;;  %v3645_v32 = vadd.f32 1.0, %v5434_v5 }
 0xcea   : > { %5455 = vpow2.f32 %v4782_v46  ;;  %v3644_v47 = vadd.f32 1.0, %v5436_v10 }
 0xceb   : > { %v5438_v6 = vpop.eup %5437  ;;  %5457 = vrcp.f32 %v3643_v58 }
 0xcec   : > { %v5440_v8 = vpop.eup %5439  ;;  %v3647_v30 = vadd.f32 1.0, %v5438_v6 }
 0xced   : > { %v5442_v48 = vpop.eup %5441  ;;  %v3683_v40 = vmul.f32 %v5440_v8, %v6591_v54 }
 0xcee   : > { %v5444_v24 = vpop.eup %5443  ;;  %5459 = vrcp.f32 %v3647_v30  ;;  %v3685_v12 = vmul.f32 %v5442_v48, %v6593_v45 }
 0xcef   : > { %v5446_v50 = vpop.eup %5445  ;;  %5461 = vpow2.f32 %v4785_v42  ;;  %v3684_v33 = vmul.f32 %v5444_v24, %v6595_v25 }
 0xcf0   : > { %v5448_v16 = vpop.eup %5447  ;;  %5463 = vpow2.f32 %v4784_v49  ;;  %v3686_v3 = vmul.f32 %v5446_v50, %v6598_v23  ;;  %v6656_v49 = vld [vmem:[%s5915_s16] sm:$0xf]  ;;  %s4846_s16 = sshll.u32 %s5696_s25, 8 }
 0xcf1   : > { %v5450_v7 = vpop.eup %5449  ;;  %v3687_v21 = vmul.f32 %v5448_v16, %v6603_v37  ;;  %5465 = vpow2.f32 %v4786_v44 }
 0xcf2   : > { %v5452_v13 = vpop.eup %5451  ;;  %v3689_v27 = vmul.f32 %v5450_v7, %v6605_v11  ;;  %5467 = vrcp.f32 %v3645_v32 }
 0xcf3   : > { %v5454_v15 = vpop.eup %5453  ;;  %v4945_v36 = vpack.c.bf16 %v3687_v21, %v3683_v40  ;;  %v3688_v2 = vmul.f32 %v5452_v13, %v6607_v43  ;;  %5469 = vrcp.f32 %v3644_v47  ;;  %v3867_v40 = vstv %s4792_s20  ;;  %v4794_v13 = vld [vmem:[%s6843_s2 + $0x60] sm:$0xff]  ;;  %s4510_s20 = sshll.u32 %s284_s17, 4 }
 0xcf4   : > { %v5456_v17 = vpop.eup %5455  ;;  %v4953_v55 = vpack.c.bf16 %v3689_v27, %v3685_v12  ;;  %v3690_v54 = vmul.f32 %v5454_v15, %v6610_v63  ;;  %v3864_v21 = vstv %s4791_s26  ;;  %v3875_v12 = vstv %s4793_s28  ;;  %s286_s9 = scalar_lea.vmem [#allocation5], %s4510_s20 }
 0xcf5   : > { %v4943_v37 = vpack.c.bf16 %v3688_v2, %v3684_v33  ;;  %v5458_v56 = vpop.eup %5457  ;;  %v3646_v45 = vadd.f32 1.0, %v5456_v17  ;;  %v3869_v32 = vmul.f32 %v3867_v40, %v6555_v53  ;;  %s4409_s29 = sshll.u32 %s286_s9, 4  ;;  %s6799_s29 = int_to_ptr.vmem [resolvable:$true] %s4409_s29 }
 0xcf6   : > { %v4951_v51 = vpack.c.bf16 %v3690_v54, %v3686_v3  ;;  %v3691_v34 = vmul.f32 %v5458_v56, %v6615_v41  ;;  %v3868_v3 = vmul.f32 %v3867_v40, %v6553_v39  ;;  %s5568_s25 = scalar_lea.vmem %s6799_s29, 256 }
 0xcf7   : > { %4944 = vmatprep.subr.bf16.mxu0 %v4943_v37  ;;  %5471 = vrcp.f32 %v3646_v45  ;;  %p5569_p10 = scmp.ne.s32.totalorder %s6799_s29, %s5568_s25 }
 0xcf8   : > { %v5460_v11 = vpop.eup %5459  ;;  %4952 = vmatprep.subr.bf16.mxu1 %v4951_v51  ;;  %4946 = vmatpush1.bf16.msra.mxu0 %v4945_v36  ;;  %v4795_v36 = vld [vmem:[%s6843_s2 + $0x68] sm:$0xff] }
 0xcf9   : > { %v5462_v25 = vpop.eup %5461  ;;  %v3695_v43 = vmul.f32 %v5460_v11, %v6624_v28  ;;  %4954 = vmatpush1.bf16.msra.mxu1 %v4953_v55  ;;  %v3876_v55 = vmul.f32 %v4794_v13, %v3875_v12  ;;  %v3877_v37 = vmul.f32 %v4795_v36, %v3875_v12  ;;  %p5570_p11 = pnand %p5569_p10, %p5713_p5 }
 0xcfa   : > { %v5464_v23 = vpop.eup %5463  ;;  %v3649_v63 = vadd.f32 1.0, %v5462_v25 }
 0xcfb   : > { %v5466_v0 = vpop.eup %5465  ;;  %v4949_v31 = vpack.c.bf16 %v3695_v43, %v3691_v34  ;;  %v3648_v38 = vadd.f32 1.0, %v5464_v23  ;;  %p5571_p12 = pneg %p5570_p11 }
 0xcfc   : > { %5473 = vrcp.f32 %v3649_v63  ;;  %v3650_v35 = vadd.f32 1.0, %v5466_v0  ;;  %v5468_v52 = vpop.eup %5467 }
 0xcfd   : > { %5475 = vrcp.f32 %v3648_v38  ;;  %v5470_v26 = vpop.eup %5469  ;;  %v3693_v28 = vmul.f32 %v5468_v52, %v6617_v60  ;;  %v3849_v60 = vstv %s4790_s18 }
 0xcfe   : > { %5477 = vrcp.f32 %v3650_v35  ;;  %v3692_v58 = vmul.f32 %v5470_v26, %v6619_v29 }
 0xd01   : > { %v5472_v22 = vpop.eup %5471 }
 0xd02   : > { %v3694_v10 = vmul.f32 %v5472_v22, %v6627_v14 }
 0xd06   : > { %v5474_v46 = vpop.eup %5473 }
 0xd07   : > { %v5476_v41 = vpop.eup %5475  ;;  %v3697_v57 = vmul.f32 %v5474_v46, %v6630_v18 }
 0xd08   : > { %v5478_v61 = vpop.eup %5477  ;;  %v3696_v5 = vmul.f32 %v5476_v41, %v6632_v1 }
 0xd09   : > { %v4957_v6 = vpack.c.bf16 %v3697_v57, %v3693_v28  ;;  %v3698_v42 = vmul.f32 %v5478_v61, %v6634_v9  ;;  %v3846_v9 = vstv %s4789_s19 }
 0xd0a   : > { %v4947_v8 = vpack.c.bf16 %v3696_v5, %v3692_v58  ;;  %v3847_v16 = vmul.f32 %v3846_v9, %v6553_v39  ;;  %v3848_v27 = vmul.f32 %v3846_v9, %v6555_v53 }
 0xd0b   : > { %v4955_v30 = vpack.c.bf16 %v3698_v42, %v3694_v10 }
 0xd0c   : > { %4948 = vmatprep.subr.bf16.mxu0 %v4947_v8 }
 0xd0d   : > { %4956 = vmatprep.subr.bf16.mxu1 %v4955_v30  ;;  %4950 = vmatpush1.bf16.msra.mxu0 %v4949_v31 }
 0xd0e   : > { %4958 = vmatpush1.bf16.msra.mxu1 %v4957_v6 }
 0xd10   : > { %4787 = vmatmul.mubr.msk.f32.vlgmr.msra.gmra.mrb[68].mxu0 %vm648_vm2, %v6656_v49 }
 0xd11   : > { %4788 = vmatmul.mubr.msk.f32.vlgmr.msra.gmra.mrb[68].mxu1 %vm648_vm2, %v6656_v49  ;;  %3981 = vmatprep.mubr.f32.mxu0 %v5637_v4 }
 0xd12   : > { %4070 = vmatprep.mubr.f32.mxu1 %v5637_v4 }
 0xde3   : > { %v3765_v29 = vpop.f32.mrb[68].mxu0 }
 0xde4   : > { %v3850_v14 = vmul.f32 %v3849_v60, %v3765_v29  ;;  %v3836_v18 = vpop.f32.mrb[68].mxu1  ;;  %v3767_v1 = vpop.f32.mrb[69].mxu0 }
 0xde5   : > { %v3852_v48 = vmul.f32 %v3849_v60, %v3836_v18  ;;  %v3851_v44 = vmul.f32 %v3849_v60, %v3767_v1  ;;  %v3838_v24 = vpop.f32.mrb[69].mxu1 }
 0xde6   : > { %v3853_v50 = vmul.f32 %v3849_v60, %v3838_v24 }
 0xde7   : > { %v3858_v7 = vcombine.low %v3850_v14, %v3851_v44 }
 0xde8   : > { %v3859_v15 = vcombine.low %v3852_v48, %v3853_v50 }
 0xde9   : > { %v3862_v33 = vsub.f32 %v3847_v16, %v3858_v7 }
 0xdea   : > { %v3863_v2 = vsub.f32 %v3848_v27, %v3859_v15 }
 0xdeb   : > { %v3865_v17 = vmul.f32 %v3864_v21, %v3862_v33 }
 0xdec   : > { %v3866_v54 = vmul.f32 %v3864_v21, %v3863_v2 }
 0xded   : > { %v3870_v56 = vadd.f32 %v3868_v3, %v3865_v17 }
 0xdee   : > { %v3871_v47 = vadd.f32 %v3869_v32, %v3866_v54 }
 0xdef   : > { %v6674_v51 = vadd.f32 %v3876_v55, %v3870_v56 }
 0xdf0   : > { %v6676_v45 = vadd.f32 %v3877_v37, %v3871_v47 }
 0xdf1   : > { %v3907_v11 = vcombine.high %v6674_v51, %v6674_v51 }
 0xdf2   : > { %v3908_v25 = vcombine.high %v6676_v45, %v6676_v45 }
 0xdf3   : > { %4800 = vmatprep.subr.msk.mxu0 %vm349_vm0, %v3907_v11 }
 0xdf4   : > { %4806 = vmatprep.subr.msk.mxu1 %vm349_vm0, %v3908_v25  ;;  %4801 = vmatpush1.msk.msra.mxu0 %vm349_vm0, %v6674_v51 }
 0xdf5   : > { %4807 = vmatpush1.msk.msra.mxu1 %vm349_vm0, %v6676_v45  ;;  %4802 = vmatmul.mubr.msk.f32.vlgmr.msra.gmra.mrb[70].mxu0 %vm336_vm1, %v6438_v19 }
 0xdf6   : > { %4808 = vmatmul.mubr.msk.f32.vlgmr.msra.gmra.mrb[70].mxu1 %vm336_vm1, %v6438_v19  ;;  %3987 = vmatprep.mubr.f32.mxu0 %v5637_v4  ;;  %v3888_v19 = vpop.permute.xlu0 %3887 }
 0xdf7   : > { %4076 = vmatprep.mubr.f32.mxu1 %v5637_v4 }
 0xdf9   : > { %4803 = vmatmul.mubr.msk.f32.gmra.mrb[72].mxu0 %vm336_vm1, %v6447_v59 }
 0xdfa   : > { %4809 = vmatmul.mubr.msk.f32.gmra.mrb[72].mxu1 %vm336_vm1, %v6447_v59  ;;  %3993 = vmatprep.mubr.f32.mxu0 %v5637_v4  ;;  %v3898_v58 = vpop.permute.xlu0 %3897 }
 0xdfb   : > { %4082 = vmatprep.mubr.f32.mxu1 %v5637_v4 }
 0xdfd   : > { %4804 = vmatmul.mubr.msk.f32.gmra.mrb[74].mxu0 %vm336_vm1, %v6456_v62 }
 0xdfe   : > { %4810 = vmatmul.mubr.msk.f32.gmra.mrb[74].mxu1 %vm336_vm1, %v6456_v62  ;;  %3999 = vmatprep.mubr.f32.mxu0 %v5637_v4 }
 0xdff   : > { %4088 = vmatprep.mubr.f32.mxu1 %v5637_v4 }
 0xe01   : > { %4805 = vmatmul.mubr.msk.f32.gmra.mrb[76].mxu0 %vm336_vm1, %v6465_v20 }
 0xe02   : > { %4811 = vmatmul.mubr.msk.f32.gmra.mrb[76].mxu1 %vm336_vm1, %v6465_v20  ;;  %4271 = vmatprep.mubr.f32.mxu0 %v5637_v4  ;;  %v3893_v20 = vpop.permute.xlu1 %3892 }
 0xe03   : > { %4342 = vmatprep.mubr.f32.mxu1 %v5637_v4 }
 0xe06   : > { %v3903_v9 = vpop.permute.xlu1 %3902 }
 0xec8   : > { %v3983_v59 = vpop.f32.mrb[70].mxu0 }
 0xec9   : > { %v6712_v39 = vadd.f32 %v3983_v59, %v3888_v19  ;;  %v4072_v53 = vpop.f32.mrb[70].mxu1  ;;  %v3985_v62 = vpop.f32.mrb[71].mxu0 }
 0xeca   : > { %v6714_v34 = vadd.f32 %v4072_v53, %v3888_v19  ;;  %v6716_v43 = vadd.f32 %v3985_v62, %v3888_v19  ;;  %v4074_v23 = vpop.f32.mrb[71].mxu1 }
 0xecb   : > { %v4812_v63 = vmul.f32 -1.442695, %v6712_v39  ;;  %v6719_v0 = vadd.f32 %v4074_v23, %v3888_v19 }
 0xecc   : > { %v4814_v31 = vmul.f32 -1.442695, %v6714_v34  ;;  %v4813_v4 = vmul.f32 -1.442695, %v6716_v43  ;;  %v3989_v38 = vpop.f32.mrb[72].mxu0 }
 0xecd   : > { %5479 = vpow2.f32 %v4812_v63  ;;  %v4815_v35 = vmul.f32 -1.442695, %v6719_v0  ;;  %v6724_v52 = vadd.f32 %v3989_v38, %v3893_v20  ;;  %v4078_v26 = vpop.f32.mrb[72].mxu1  ;;  %v3991_v22 = vpop.f32.mrb[73].mxu0 }
 0xece   : > { %5481 = vpow2.f32 %v4814_v31  ;;  %v6726_v46 = vadd.f32 %v4078_v26, %v3893_v20  ;;  %v6728_v41 = vadd.f32 %v3991_v22, %v3893_v20  ;;  %v4080_v28 = vpop.f32.mrb[73].mxu1 }
 0xecf   : > { %5483 = vpow2.f32 %v4813_v4  ;;  %v4816_v57 = vmul.f32 -1.442695, %v6724_v52  ;;  %v6731_v61 = vadd.f32 %v4080_v28, %v3893_v20 }
 0xed0   : > { %5485 = vpow2.f32 %v4815_v35  ;;  %v4818_v5 = vmul.f32 -1.442695, %v6726_v46  ;;  %v4817_v10 = vmul.f32 -1.442695, %v6728_v41  ;;  %v3995_v6 = vpop.f32.mrb[74].mxu0 }
 0xed1   : > { %5487 = vpow2.f32 %v4816_v57  ;;  %v4819_v42 = vmul.f32 -1.442695, %v6731_v61  ;;  %v6736_v8 = vadd.f32 %v3995_v6, %v3898_v58  ;;  %v4084_v30 = vpop.f32.mrb[74].mxu1  ;;  %v3997_v60 = vpop.f32.mrb[75].mxu0 }
 0xed2   : > { %5489 = vpow2.f32 %v4818_v5  ;;  %v6738_v29 = vadd.f32 %v4084_v30, %v3898_v58  ;;  %v6740_v14 = vadd.f32 %v3997_v60, %v3898_v58  ;;  %v4086_v18 = vpop.f32.mrb[75].mxu1 }
 0xed3   : > { %5491 = vpow2.f32 %v4817_v10  ;;  %v4820_v1 = vmul.f32 -1.442695, %v6736_v8  ;;  %v6748_v17 = vadd.f32 %v4086_v18, %v3898_v58 }
 0xed4   : > { %5493 = vpow2.f32 %v4819_v42  ;;  %v4822_v48 = vmul.f32 -1.442695, %v6738_v29  ;;  %v4821_v44 = vmul.f32 -1.442695, %v6740_v14  ;;  %v4001_v24 = vpop.f32.mrb[76].mxu0 }
 0xed5   : > { %5495 = vpow2.f32 %v4820_v1  ;;  %v6745_v50 = vadd.f32 %v4001_v24, %v3903_v9  ;;  %v4090_v16 = vpop.f32.mrb[76].mxu1  ;;  %v4003_v7 = vpop.f32.mrb[77].mxu0  ;;  %v4823_v25 = vmul.f32 -1.442695, %v6748_v17 }
 0xed6   : > { %v4092_v40 = vpop.f32.mrb[77].mxu1  ;;  %5497 = vpow2.f32 %v4822_v48  ;;  %v6751_v53 = vadd.f32 %v4090_v16, %v3903_v9  ;;  %v6753_v23 = vadd.f32 %v4003_v7, %v3903_v9 }
 0xed7   : > { %v5480_v21 = vpop.eup %5479  ;;  %v4824_v13 = vmul.f32 -1.442695, %v6745_v50  ;;  %5499 = vpow2.f32 %v4821_v44  ;;  %v6755_v20 = vadd.f32 %v4092_v40, %v3903_v9 }
 0xed8   : > { %v5482_v12 = vpop.eup %5481  ;;  %v4143_v27 = vadd.f32 1.0, %v5480_v21  ;;  %v4826_v38 = vmul.f32 -1.442695, %v6751_v53  ;;  %v4825_v22 = vmul.f32 -1.442695, %v6753_v23 }
 0xed9   : > { %v5484_v15 = vpop.eup %5483  ;;  %v4145_v33 = vadd.f32 1.0, %v5482_v12  ;;  %5501 = vpow2.f32 %v4824_v13  ;;  %v4827_v57 = vmul.f32 -1.442695, %v6755_v20 }
 0xeda   : > { %v5486_v36 = vpop.eup %5485  ;;  %5503 = vrcp.f32 %v4143_v27  ;;  %v4144_v2 = vadd.f32 1.0, %v5484_v15 }
 0xedb   : > { %v5488_v3 = vpop.eup %5487  ;;  %5505 = vrcp.f32 %v4145_v33  ;;  %v4146_v55 = vadd.f32 1.0, %v5486_v36 }
 0xedc   : > { %v5490_v54 = vpop.eup %5489  ;;  %5507 = vrcp.f32 %v4144_v2  ;;  %v4147_v32 = vadd.f32 1.0, %v5488_v3 }
 0xedd   : > { %v5492_v37 = vpop.eup %5491  ;;  %5509 = vrcp.f32 %v4146_v55  ;;  %v4149_v56 = vadd.f32 1.0, %v5490_v54 }
 0xede   : > { %v5494_v47 = vpop.eup %5493  ;;  %5511 = vrcp.f32 %v4147_v32  ;;  %v4148_v11 = vadd.f32 1.0, %v5492_v37 }
 0xedf   : > { %v5496_v19 = vpop.eup %5495  ;;  %5513 = vrcp.f32 %v4149_v56  ;;  %v4150_v59 = vadd.f32 1.0, %v5494_v47 }
 0xee0   : > { %5515 = vrcp.f32 %v4148_v11  ;;  %v4151_v62 = vadd.f32 1.0, %v5496_v19  ;;  %v5498_v63 = vpop.eup %5497 }
 0xee1   : > { %5517 = vrcp.f32 %v4150_v59  ;;  %v5500_v31 = vpop.eup %5499  ;;  %v4153_v21 = vadd.f32 1.0, %v5498_v63 }
 0xee2   : > { %5519 = vpow2.f32 %v4823_v25  ;;  %v4152_v12 = vadd.f32 1.0, %v5500_v31 }
 0xee3   : > { %v5502_v4 = vpop.eup %5501  ;;  %5521 = vrcp.f32 %v4151_v62 }
 0xee4   : > { %v5504_v35 = vpop.eup %5503  ;;  %v4155_v26 = vadd.f32 1.0, %v5502_v4 }
 0xee5   : > { %v5506_v28 = vpop.eup %5505  ;;  %v4191_v42 = vmul.f32 %v5504_v35, %v6712_v39 }
 0xee6   : > { %v5508_v58 = vpop.eup %5507  ;;  %5523 = vrcp.f32 %v4155_v26  ;;  %v4193_v18 = vmul.f32 %v5506_v28, %v6714_v34  ;;  %v4375_v28 = vstv %s4833_s13  ;;  %s4395_s13 = scalar_lea.sflag [#allocation3], %s284_s17 }
 0xee7   : > { %v5510_v5 = vpop.eup %5509  ;;  %5525 = vpow2.f32 %v4826_v38  ;;  %v4192_v48 = vmul.f32 %v5508_v58, %v6716_v43 }
 0xee8   : > { %v5512_v10 = vpop.eup %5511  ;;  %5527 = vpow2.f32 %v4825_v22  ;;  %v4194_v7 = vmul.f32 %v5510_v5, %v6719_v0 }
 0xee9   : > { %v5514_v6 = vpop.eup %5513  ;;  %v4195_v30 = vmul.f32 %v5512_v10, %v6724_v52  ;;  %5529 = vpow2.f32 %v4827_v57  ;;  %v4372_v57 = vstv %s4832_s14  ;;  %v4835_v10 = vld [vmem:[%s6843_s2 + $0x70] sm:$0xff]  ;;  %s5639_s14 = smov [#allocation5]  }
 0xeea   : > { %v5516_v60 = vpop.eup %5515  ;;  %v4197_v1 = vmul.f32 %v5514_v6, %v6726_v46  ;;  %5531 = vrcp.f32 %v4153_v21  ;;  %v4383_v6 = vstv %s4834_s15  ;;  %s5572_s15 = sshll.u32 %s5639_s14, 4  ;;  %s5573_s15 = int_to_ptr.vmem [resolvable:$false] %s5572_s15 }
 0xeeb   : > { %v5518_v9 = vpop.eup %5517  ;;  %v4961_v44 = vpack.c.bf16 %v4195_v30, %v4191_v42  ;;  %v4196_v24 = vmul.f32 %v5516_v60, %v6728_v41  ;;  %5533 = vrcp.f32 %v4152_v12  ;;  %v4836_v30 = vld [vmem:[%s6843_s2 + $0x78] sm:$0xff]  ;;  %s5574_s18 = scalar_lea.vmem %s5573_s15, 512  ;;  %p5575_p13 = scmp.lt.s32.totalorder %s6799_s29, %s5573_s15 }
 0xeec   : > { %v5520_v16 = vpop.eup %5519  ;;  %v4969_v40 = vpack.c.bf16 %v4197_v1, %v4193_v18  ;;  %v4198_v39 = vmul.f32 %v5518_v9, %v6731_v61  ;;  %v4376_v1 = vmul.f32 %v4375_v28, %v6674_v51  ;;  %v4384_v9 = vmul.f32 %v4835_v10, %v4383_v6  ;;  %p5576_p0 = scmp.lt.s32.totalorder %s5574_s18, %s5568_s25 }
 0xeed   : > { %v4959_v52 = vpack.c.bf16 %v4196_v24, %v4192_v48  ;;  %v5522_v13 = vpop.eup %5521  ;;  %v4154_v34 = vadd.f32 1.0, %v5520_v16  ;;  %v4385_v24 = vmul.f32 %v4836_v30, %v4383_v6 }
 0xeee   : > { %v4967_v27 = vpack.c.bf16 %v4198_v39, %v4194_v7  ;;  %v4199_v15 = vmul.f32 %v5522_v13, %v6736_v8  ;;  %p5577_p1 = por %p5576_p0, %p5575_p13 }
 0xeef   : > { %4960 = vmatprep.subr.bf16.mxu0 %v4959_v52  ;;  %5535 = vrcp.f32 %v4154_v34 }
 0xef0   : > { %v5524_v46 = vpop.eup %5523  ;;  %4968 = vmatprep.subr.bf16.mxu1 %v4967_v27  ;;  %4962 = vmatpush1.bf16.msra.mxu0 %v4961_v44  ;;  %v4377_v44 = vmul.f32 %v4375_v28, %v6676_v45  ;;  %p5578_p2 = pnand %p5577_p1, %p5571_p12 }
 0xef1   : > { %v5526_v43 = vpop.eup %5525  ;;  %v4203_v41 = vmul.f32 %v5524_v46, %v6745_v50  ;;  %4970 = vmatpush1.bf16.msra.mxu1 %v4969_v40 }
 0xef2   : > { %v5528_v0 = vpop.eup %5527  ;;  %v4157_v61 = vadd.f32 1.0, %v5526_v43 }
 0xef3   : > { %v5530_v33 = vpop.eup %5529  ;;  %v4965_v36 = vpack.c.bf16 %v4203_v41, %v4199_v15  ;;  %v4156_v2 = vadd.f32 1.0, %v5528_v0 }
 0xef4   : > { %5537 = vrcp.f32 %v4157_v61  ;;  %v4158_v3 = vadd.f32 1.0, %v5530_v33  ;;  %v5532_v55 = vpop.eup %5531 }
 0xef5   : > { %5539 = vrcp.f32 %v4156_v2  ;;  %v5534_v54 = vpop.eup %5533  ;;  %v4201_v56 = vmul.f32 %v5532_v55, %v6738_v29  ;;  %v4357_v29 = vstv %s4831_s11 }
 0xef6   : > { %5541 = vrcp.f32 %v4158_v3  ;;  %v4200_v11 = vmul.f32 %v5534_v54, %v6740_v14 }
 0xef9   : > { %v5536_v32 = vpop.eup %5535 }
 0xefa   : > { %v4202_v19 = vmul.f32 %v5536_v32, %v6748_v17 }
 0xefe   : > { %v5538_v37 = vpop.eup %5537 }
 0xeff   : > { %v5540_v8 = vpop.eup %5539  ;;  %v4205_v50 = vmul.f32 %v5538_v37, %v6751_v53 }
 0xf00   : > { %v5542_v47 = vpop.eup %5541  ;;  %v4204_v25 = vmul.f32 %v5540_v8, %v6753_v23 }
 0xf01   : > { %v4973_v59 = vpack.c.bf16 %v4205_v50, %v4201_v56  ;;  %v4206_v62 = vmul.f32 %v5542_v47, %v6755_v20  ;;  %v4354_v20 = vstv %s4830_s12  ;;  %s6797_s12 = scalar_lea.hbm %s6847_s6, %s4846_s16 }
 0xf02   : > { %v4963_v63 = vpack.c.bf16 %v4204_v25, %v4200_v11  ;;  %v4356_v58 = vmul.f32 %v4354_v20, %v6676_v45 }
 0xf03   : > { %v4971_v31 = vpack.c.bf16 %v4206_v62, %v4202_v19 }
 0xf04   : > { %4964 = vmatprep.subr.bf16.mxu0 %v4963_v63 }
 0xf05   : > { %4972 = vmatprep.subr.bf16.mxu1 %v4971_v31  ;;  %4966 = vmatpush1.bf16.msra.mxu0 %v4965_v36 }
 0xf06   : > { %4974 = vmatpush1.bf16.msra.mxu1 %v4973_v59 }
 0xf08   : > { %4828 = vmatmul.mubr.msk.f32.vlgmr.msra.gmra.mrb[78].mxu0 %vm648_vm2, %v6656_v49 }
 0xf09   : > { %4829 = vmatmul.mubr.msk.f32.vlgmr.msra.gmra.mrb[78].mxu1 %vm648_vm2, %v6656_v49  ;;  %v4355_v49 = vmul.f32 %v4354_v20, %v6674_v51 }
 0xfdb   : > { %v4273_v14 = vpop.f32.mrb[78].mxu0 }
 0xfdc   : > { %v4358_v17 = vmul.f32 %v4357_v29, %v4273_v14  ;;  %v4344_v53 = vpop.f32.mrb[78].mxu1  ;;  %v4275_v23 = vpop.f32.mrb[79].mxu0 }
 0xfdd   : > { %v4360_v4 = vmul.f32 %v4357_v29, %v4344_v53  ;;  %v4359_v38 = vmul.f32 %v4357_v29, %v4275_v23  ;;  %v4346_v35 = vpop.f32.mrb[79].mxu1 }
 0xfde   : > { %v4361_v26 = vmul.f32 %v4357_v29, %v4346_v35 }
 0xfdf   : > { %v4366_v22 = vcombine.low %v4358_v17, %v4359_v38 }
 0xfe0   : > { %v4367_v5 = vcombine.low %v4360_v4, %v4361_v26 }
 0xfe1   : > { %v4370_v42 = vsub.f32 %v4355_v49, %v4366_v22 }
 0xfe2   : > { %v4371_v60 = vsub.f32 %v4356_v58, %v4367_v5 }
 0xfe3   : > { %v4373_v18 = vmul.f32 %v4372_v57, %v4370_v42 }
 0xfe4   : > { %v4374_v48 = vmul.f32 %v4372_v57, %v4371_v60 }
 0xfe5   : > { %v4378_v16 = vadd.f32 %v4376_v1, %v4373_v18 }
 0xfe6   : > { %v4379_v7 = vadd.f32 %v4377_v44, %v4374_v48 }
 0xfe7   : > { %v4386_v40 = vadd.f32 %v4384_v9, %v4378_v16 }
 0xfe8   : > { %v4387_v39 = vadd.f32 %v4385_v24, %v4379_v7 }
 0xfe9   : > { %v4837_v21 = vclamps-f32 %v4386_v40, 1.0 }
 0xfea   : > { %v4838_v52 = vclamps-f32 %v4387_v39, 1.0 }
 0xfeb   : > { %4392 = vst [vmem:[%s286_s9] sm:$0xff] %v4837_v21 }
 0xfec   : > { %4393 = vst [vmem:[%s286_s9 + $0x8] sm:$0xff] %v4838_v52 }
 0xfed   : > { %5581 = shalt.err (!%p5578_p2)
}
 0xfee   : > { %s5582_s17 = scalar_lea.hbm %s6797_s12, 256  ;;  %s5586_s26 = scalar_lea.hbm %s6847_s6, 512 }
 0xfef   : > { %p5583_p3 = scmp.ne.s32.totalorder %s6797_s12, %s5582_s17  ;;  %p5587_p8 = scmp.lt.u32.totalorder %s6797_s12, %s6847_s6 }
 0xff0   : > { %p5588_p9 = scmp.lt.u32.totalorder %s5586_s26, %s5582_s17  ;;  %p5590_p11 = scmp.lt.u32.totalorder %s5582_s17, %s6797_s12 }
 0xff1   : > { %p5584_p4 = pnand %p5583_p3, %p5713_p5 }
 0xff2   : > { %p5589_p10 = por %p5588_p9, %p5587_p8 }
 0xff3   : > { %p5585_p7 = pneg %p5584_p4 }
 0xff4   : > { %p5591_p12 = por %p5590_p11, %p5589_p10 }
 0xff6   : > { %p5592_p13 = pnand %p5591_p12, %p5585_p7 }
 0xff8   : > { %5595 = shalt.err (!%p5592_p13)
}
 0xff9   : > { %4979 = dma.vmem_to_hbm [thread:$0]  (%p5713_p5), %s6799_s29, 256, %s6797_s12, %s4395_s13  }
 0xffa PF: > { %p4991_p0 = scmp.ge.s32.totalorder %s5634_s24, 2  ;;  %s4421_s9 = sand.u32 1, %s5622_s21  }
 0xffb   : > { %s4422_s10 = scalar_lea.sflag [#allocation3], %s4421_s9 }
 0xffc   : > { %p4986_p1 = pnand %p4991_p0, %p5717_p6 }
 0xffe   : > { %5617 = dma.done.wait (!%p4986_p1), %s4422_s10, 256  }
 0xfff   : > { %5619 = vsyncadd (!%p4986_p1), %s4422_s10, 4294967040  ;;  %p17_p2 = scmp.ge.s32.totalorder %s5700_s27, 4   ;;  %s6851_s21 = smov %s5626_s22 }
0x1000   : > { %s6852_s22 = smov %s5630_s23  ;;  %s6853_s23 = smov %s5711_s30 }
0x1001   : > { %s6854_s24 = smov %s5700_s27  ;;  %19 = sbr.rel (!%p17_p2) target bundleno = 4 (0x4), region = 104 }
0x1008   :  { %4427 = vsyncpa [#allocation3], 1 }
0x1009   :  { %4429 = vsyncpa [#allocation3 + $0x1], 1 }
0x100a   :  { %4430 = vsyncpa [#allocation4], 1 }
0x100b   :  { %4432 = vsyncpa [#allocation4 + $0x1], 1 }

</bundles_post_ra>
